<compile_context>
chip_gen: v6e
topology: v6e:2x2x1
jax: 0.10.0
libtpu: 0.0.40
codegen_flags: <defaults>
</compile_context>

<pallas_src>
import functools
import math

import jax
import jax.numpy as jnp
from jax import lax
from jax.experimental import pallas as pl
from jax.experimental.pallas import tpu as pltpu

_C = 128  # lane-dense channel width

# (weight_key, bias_key, bn_key, dilation, pool_after)
_CONV_CFG = (
    ('b0_c0_w', 'b0_c0_b', 'b0_bn0', 2, False),
    ('b0_c1_w', 'b0_c1_b', 'b0_bn1', 2, True),
    ('b1_c0_w', 'b1_c0_b', 'b1_bn0', 2, False),
    ('b1_c1_w', 'b1_c1_b', 'b1_bn1', 2, True),
    ('b2_c0_w', 'b2_c0_b', 'b2_bn0', 4, False),
    ('b2_c1_w', 'b2_c1_b', 'b2_bn1', 4, True),
)


# -----------------------------------------------------------------------------
# Fused Pallas kernel: TB batch elements per grid step (grid parallel over N).
# -----------------------------------------------------------------------------
def _fused_tcn_kernel(x_ref, cw_ref, cb_ref, cs_ref, ct_ref,
                      w0_ref, s0_ref, t0_ref,
                      w1_ref, s1_ref, t1_ref,
                      w2_ref, b2_ref,
                      o_ref, im2col_ref, hfin_ref,
                      *, lengths, dils, pools, pmax, tb, l_final):
    C = _C

    # AvgPool1d(3, stride=2, padding=1, count_include_pad=True) matrices,
    # generated once per grid step from iota (reused by all TB tile elements).
    pool_mats = []
    for L, do_pool in zip(lengths, pools):
        if do_pool:
            Lh = L // 2
            o_idx = lax.broadcasted_iota(jnp.int32, (Lh, L), 0)
            l_idx = lax.broadcasted_iota(jnp.int32, (Lh, L), 1)
            pool_mats.append(
                jnp.where(jnp.abs(l_idx - 2 * o_idx) <= 1, 1.0 / 3.0, 0.0))
        else:
            pool_mats.append(None)

    # ---------------- dilated conv blocks (per tile element) ----------------
    for b in range(tb):
        h = x_ref[b]                                        # (L0, 128) f32
        for i, (L, d, do_pool) in enumerate(zip(lengths, dils, pools)):
            # Build the im2col LHS: lane-block t holds x[l + (t-1)*d] for output
            # position l (row pmax + l). Only the boundary strips that the data
            # writes do not cover inside the read window need explicit zeros
            # (== torch's zero padding); no full-scratch clear required.
            zpad = jnp.zeros((d, C), jnp.float32)
            im2col_ref[pmax:pmax + d, 0:C] = zpad                    # x[l-d], l < d
            im2col_ref[pmax + L - d:pmax + L, 2 * C:3 * C] = zpad    # x[l+d], l >= L-d
            im2col_ref[pmax + d:pmax + d + L, 0:C] = h               # tap 0: x[l-d]
            im2col_ref[pmax:pmax + L, C:2 * C] = h                   # tap 1: x[l]
            im2col_ref[pmax - d:pmax - d + L, 2 * C:3 * C] = h       # tap 2: x[l+d]

            lhs = im2col_ref[pmax:pmax + L, :]                       # (L, 384)
            y = jnp.dot(lhs, cw_ref[i], preferred_element_type=jnp.float32)
            y = y + cb_ref[i]                                        # conv bias (pre-pool!)

            if do_pool:
                y = jnp.dot(pool_mats[i], y, preferred_element_type=jnp.float32)

            # folded eval-mode BatchNorm + ReLU (Dropout == identity in eval)
            h = jnp.maximum(y * cs_ref[i] + ct_ref[i], 0.0)

        # Stage final conv activations, layout row = l * TB + b, so the head can
        # read contiguous (TB, 128) slabs per position.
        for l in range(l_final):
            hfin_ref[l * tb + b:l * tb + b + 1, :] = h[l:l + 1, :]

    # ---------------- batched MLP head (whole TB tile at once) ----------------
    # FC0 over the channel-major torch flatten, using the host-pre-permuted
    # (L_final, 128, 256) weight: one (TB,128)x(128,256) matmul per position.
    z = jnp.dot(hfin_ref[0:tb, :], w0_ref[0], preferred_element_type=jnp.float32)
    for l in range(1, l_final):
        z = z + jnp.dot(hfin_ref[l * tb:(l + 1) * tb, :], w0_ref[l],
                        preferred_element_type=jnp.float32)
    z = jnp.maximum(z * s0_ref[...] + t0_ref[...], 0.0)     # FC0 + BN + ReLU
    z = jnp.dot(z, w1_ref[...], preferred_element_type=jnp.float32)
    z = jnp.maximum(z * s1_ref[...] + t1_ref[...], 0.0)     # FC1 + BN + ReLU
    z = jnp.dot(z, w2_ref[...], preferred_element_type=jnp.float32) + b2_ref[...]
    o_ref[...] = z.astype(o_ref.dtype)                      # (TB, 128) lane-dense


# -----------------------------------------------------------------------------
# Host-side parameter preparation (padding to 128 lanes, BN folding, stacking)
# -----------------------------------------------------------------------------
def _pad_axis(a, target, axis):
    pads = [(0, 0)] * a.ndim
    pads[axis] = (0, target - a.shape[axis])
    return jnp.pad(a, pads)


def _fold_bn(gamma, beta, mean, var, eps=1e-5):
    scale = gamma / jnp.sqrt(var + eps)
    shift = beta - mean * scale
    return scale, shift


def _prep_conv(p):
    ws, bs, ss, ts = [], [], [], []
    for wk, bk, bnk, _d, _pool in _CONV_CFG:
        w = p[wk]                                    # (Cout, Cin, 3) torch layout
        K = w.shape[2]
        wt = jnp.transpose(w, (2, 1, 0))             # (K, Cin, Cout)
        wt = _pad_axis(_pad_axis(wt, _C, 1), _C, 2)  # (K, 128, 128)
        ws.append(wt.reshape(K * _C, _C))            # (384, 128), tap-major rows
        bs.append(_pad_axis(p[bk], _C, 0))
        s, t = _fold_bn(*p[bnk])
        ss.append(_pad_axis(s, _C, 0))
        ts.append(_pad_axis(t, _C, 0))
    conv_w = jnp.stack(ws)                           # (6, 384, 128)
    conv_b = jnp.stack(bs)[:, None, :]               # (6, 1, 128)
    conv_s = jnp.stack(ss)[:, None, :]
    conv_t = jnp.stack(ts)[:, None, :]
    return conv_w, conv_b, conv_s, conv_t


def _prep_head(p, l_final):
    # fc0: torch weight (256, dim_fc), flatten index = c * L_final + l
    w0 = p['fc0_w'].reshape(256, _C, l_final)        # [o, c, l]
    w0 = jnp.transpose(w0, (2, 1, 0))                # (L_final, 128, 256)
    s0, t0 = _fold_bn(*p['fc0_bn'])
    t0 = t0 + p['fc0_b'] * s0                        # fold FC0 bias into shift
    # fc1: (64, 256) -> (256, 64) -> pad out-channels to 128
    w1 = _pad_axis(p['fc1_w'].T, _C, 1)              # (256, 128)
    s1, t1 = _fold_bn(*p['fc1_bn'])
    t1 = t1 + p['fc1_b'] * s1
    s1 = _pad_axis(s1, _C, 0)
    t1 = _pad_axis(t1, _C, 0)
    # gway: (2, 64) -> (64, 2) -> pad to (128, 128)
    w2 = _pad_axis(_pad_axis(p['gway_w'].T, _C, 0), _C, 1)
    b2 = _pad_axis(p['gway_b'], _C, 0)
    return (w0, s0[None, :], t0[None, :], w1, s1[None, :], t1[None, :],
            w2, b2[None, :])


# -----------------------------------------------------------------------------
# Forward
# -----------------------------------------------------------------------------
@jax.jit
def tcn_forward(x_ncl, p):
    N, cin, L0 = x_ncl.shape
    assert L0 % 8 == 0, "history_signal must be a multiple of 8"
    assert cin <= _C
    l_final = L0 // 8
    lengths = (L0, L0, L0 // 2, L0 // 2, L0 // 4, L0 // 4)
    dils = tuple(cfg[3] for cfg in _CONV_CFG)
    pools = tuple(cfg[4] for cfg in _CONV_CFG)
    pmax = 8                                                 # sublane-aligned read base
    hbuf = pmax + max(l + d for l, d in zip(lengths, dils))
    hbuf = ((hbuf + 7) // 8) * 8                             # scratch rows

    TB = min(8, N)                                           # batch tile per grid step
    Npad = ((N + TB - 1) // TB) * TB

    # NCL -> NLC, pad channels to 128 lanes, pad batch to a multiple of TB.
    xp = _pad_axis(jnp.transpose(x_ncl, (0, 2, 1)), _C, 2)   # (N, L0, 128)
    if Npad != N:
        xp = jnp.pad(xp, ((0, Npad - N), (0, 0), (0, 0)))

    conv_w, conv_b, conv_s, conv_t = _prep_conv(p)
    w0, s0, t0, w1, s1, t1, w2, b2 = _prep_head(p, l_final)

    kern = functools.partial(_fused_tcn_kernel, lengths=lengths, dils=dils,
                             pools=pools, pmax=pmax, tb=TB, l_final=l_final)

    def full_spec(a):
        return pl.BlockSpec(a.shape, lambda i, _nd=a.ndim: (0,) * _nd)

    weights = (conv_w, conv_b, conv_s, conv_t, w0, s0, t0, w1, s1, t1, w2, b2)
    in_specs = [pl.BlockSpec((TB, L0, _C), lambda i: (i, 0, 0))]
    in_specs += [full_spec(a) for a in weights]

    out = pl.pallas_call(
        kern,
        out_shape=jax.ShapeDtypeStruct((Npad, _C), jnp.float32),
        grid_spec=pltpu.PrefetchScalarGridSpec(
            num_scalar_prefetch=0,
            grid=(Npad // TB,),
            in_specs=in_specs,
            out_specs=pl.BlockSpec((TB, _C), lambda i: (i, 0)),
            scratch_shapes=[pltpu.VMEM((hbuf, 3 * _C), jnp.float32),
                            pltpu.VMEM((TB * l_final, _C), jnp.float32)]),
        compiler_params=pltpu.CompilerParams(
            dimension_semantics=("parallel",)),
    )(xp, *weights)

    return out[:N, :2]


# -----------------------------------------------------------------------------
# Deterministic parameter init (torch layouts: conv (O,I,K), linear (O,I))
# -----------------------------------------------------------------------------
def init_params(key, num_inputs, history_signal):
    keys = iter(jax.random.split(key, 64))

    def normal(shape, scale=0.1):
        return scale * jax.random.normal(next(keys), shape, jnp.float32)

    def bn(c):
        gamma = 1.0 + normal((c,))
        beta = normal((c,))
        mean = normal((c,))
        var = 1.0 + 0.1 * jnp.abs(jax.random.normal(next(keys), (c,), jnp.float32))
        return (gamma, beta, mean, var)

    dim_fc = int(math.ceil(math.ceil(math.ceil(history_signal / 2) / 2) / 2) * 128)
    return {
        'b0_c0_w': normal((32, num_inputs, 3)), 'b0_c0_b': normal((32,)), 'b0_bn0': bn(32),
        'b0_c1_w': normal((64, 32, 3)),         'b0_c1_b': normal((64,)), 'b0_bn1': bn(64),
        'b1_c0_w': normal((64, 64, 3)),         'b1_c0_b': normal((64,)), 'b1_bn0': bn(64),
        'b1_c1_w': normal((128, 64, 3)),        'b1_c1_b': normal((128,)), 'b1_bn1': bn(128),
        'b2_c0_w': normal((128, 128, 3)),       'b2_c0_b': normal((128,)), 'b2_bn0': bn(128),
        'b2_c1_w': normal((128, 128, 3)),       'b2_c1_b': normal((128,)), 'b2_bn1': bn(128),
        'fc0_w': normal((256, dim_fc)), 'fc0_b': normal((256,)), 'fc0_bn': bn(256),
        'fc1_w': normal((64, 256)),     'fc1_b': normal((64,)),  'fc1_bn': bn(64),
        'gway_w': normal((2, 64)),      'gway_b': normal((2,)),
    }


# -----------------------------------------------------------------------------
# Pure-JAX reference (mirrors PyTorch NCL semantics) for cross-checking
# -----------------------------------------------------------------------------
def avg_pool_matrix(L):
    Lout = (L - 1) // 2 + 1
    rows = []
    for o in range(Lout):
        row = [0.0] * L
        for l in (2 * o - 1, 2 * o, 2 * o + 1):
            if 0 <= l < L:
                row[l] = 1.0 / 3.0
        rows.append(row)
    return jnp.array(rows, dtype=jnp.float32)


def ref_forward(x_ncl, p):
    def conv(x, w, b, dil, pad):
        y = lax.conv_general_dilated(x, w, window_strides=(1,),
                                     padding=[(pad, pad)], rhs_dilation=(dil,),
                                     dimension_numbers=('NCH', 'OIH', 'NCH'))
        return y + b[None, :, None]

    def bn(x, params, eps=1e-5):
        g, b, m, v = params
        return ((x - m[None, :, None]) / jnp.sqrt(v[None, :, None] + eps)
                * g[None, :, None] + b[None, :, None])

    def pool(x):
        P = avg_pool_matrix(x.shape[-1])
        return jnp.einsum('ncl,ol->nco', x, P)

    relu = lambda v: jnp.maximum(v, 0.0)
    x = relu(bn(conv(x_ncl, p['b0_c0_w'], p['b0_c0_b'], 2, 2), p['b0_bn0']))
    x = relu(bn(pool(conv(x, p['b0_c1_w'], p['b0_c1_b'], 2, 2)), p['b0_bn1']))
    x = relu(bn(conv(x, p['b1_c0_w'], p['b1_c0_b'], 2, 2), p['b1_bn0']))
    x = relu(bn(pool(conv(x, p['b1_c1_w'], p['b1_c1_b'], 2, 2)), p['b1_bn1']))
    x = relu(bn(conv(x, p['b2_c0_w'], p['b2_c0_b'], 4, 4), p['b2_bn0']))
    x = relu(bn(pool(conv(x, p['b2_c1_w'], p['b2_c1_b'], 4, 4)), p['b2_bn1']))
    x = x.reshape(x.shape[0], -1)

    def bn1d(v, params, eps=1e-5):
        g, b, m, s = params
        return (v - m) / jnp.sqrt(s + eps) * g + b

    x = relu(bn1d(x @ p['fc0_w'].T + p['fc0_b'], p['fc0_bn']))
    x = relu(bn1d(x @ p['fc1_w'].T + p['fc1_b'], p['fc1_bn']))
    return x @ p['gway_w'].T + p['gway_b']


if __name__ == "__main__":
    history_signal, num_inputs, batch = 16, 4, 2
    key = jax.random.PRNGKey(0)
    key, kx, kp = jax.random.split(key, 3)
    params = init_params(kp, num_inputs, history_signal)
    x = jax.random.normal(kx, (batch, num_inputs, history_signal), jnp.float32)

    out = jax.block_until_ready(tcn_forward(x, params))
    ref = jax.block_until_ready(ref_forward(x, params))

    assert out.shape == (batch, 2), out.shape
    assert jnp.allclose(out, ref, rtol=1e-3, atol=1e-3), (out, ref)
    print("KERNEL_OK")
</pallas_src>

<mosaic_0001>
module attributes {stable_mosaic.version = 11 : i64} {
  func.func @_fused_tcn_kernel(%arg0: i32, %arg1: memref<2x16x128xf32, #tpu.memory_space<vmem>>, %arg2: memref<6x384x128xf32, #tpu.memory_space<vmem>>, %arg3: memref<6x1x128xf32, #tpu.memory_space<vmem>>, %arg4: memref<6x1x128xf32, #tpu.memory_space<vmem>>, %arg5: memref<6x1x128xf32, #tpu.memory_space<vmem>>, %arg6: memref<2x128x256xf32, #tpu.memory_space<vmem>>, %arg7: memref<1x256xf32, #tpu.memory_space<vmem>>, %arg8: memref<1x256xf32, #tpu.memory_space<vmem>>, %arg9: memref<256x128xf32, #tpu.memory_space<vmem>>, %arg10: memref<1x128xf32, #tpu.memory_space<vmem>>, %arg11: memref<1x128xf32, #tpu.memory_space<vmem>>, %arg12: memref<128x128xf32, #tpu.memory_space<vmem>>, %arg13: memref<1x128xf32, #tpu.memory_space<vmem>>, %arg14: memref<2x128xf32, #tpu.memory_space<vmem>>, %arg15: memref<32x384xf32, #tpu.memory_space<vmem>>, %arg16: memref<4x128xf32, #tpu.memory_space<vmem>>) attributes {dimension_semantics = [#tpu.dimension_semantics<parallel>], iteration_bounds = array<i64: 1>, scalar_prefetch = 0 : i64, scratch_operands = 2 : i64, tpu.core_type = #tpu.core_type<tc>, window_params = [{transform_indices = @transform_0, window_bounds = array<i64: 2, 16, 128>}, {pipeline_mode = #tpu.pipeline_mode<synchronous>, transform_indices = @transform_1, window_bounds = array<i64: 6, 384, 128>}, {pipeline_mode = #tpu.pipeline_mode<synchronous>, transform_indices = @transform_2, window_bounds = array<i64: 6, 1, 128>}, {pipeline_mode = #tpu.pipeline_mode<synchronous>, transform_indices = @transform_3, window_bounds = array<i64: 6, 1, 128>}, {pipeline_mode = #tpu.pipeline_mode<synchronous>, transform_indices = @transform_4, window_bounds = array<i64: 6, 1, 128>}, {pipeline_mode = #tpu.pipeline_mode<synchronous>, transform_indices = @transform_5, window_bounds = array<i64: 2, 128, 256>}, {pipeline_mode = #tpu.pipeline_mode<synchronous>, transform_indices = @transform_6, window_bounds = array<i64: 1, 256>}, {pipeline_mode = #tpu.pipeline_mode<synchronous>, transform_indices = @transform_7, window_bounds = array<i64: 1, 256>}, {pipeline_mode = #tpu.pipeline_mode<synchronous>, transform_indices = @transform_8, window_bounds = array<i64: 256, 128>}, {pipeline_mode = #tpu.pipeline_mode<synchronous>, transform_indices = @transform_9, window_bounds = array<i64: 1, 128>}, {pipeline_mode = #tpu.pipeline_mode<synchronous>, transform_indices = @transform_10, window_bounds = array<i64: 1, 128>}, {pipeline_mode = #tpu.pipeline_mode<synchronous>, transform_indices = @transform_11, window_bounds = array<i64: 128, 128>}, {pipeline_mode = #tpu.pipeline_mode<synchronous>, transform_indices = @transform_12, window_bounds = array<i64: 1, 128>}, {transform_indices = @transform_13, window_bounds = array<i64: 2, 128>}]} {
    %0 = tpu.iota {dimensions = array<i32: 0>} : vector<8x16xi32>
    %1 = tpu.iota {dimensions = array<i32: 1>} : vector<8x16xi32>
    %c2_i32 = arith.constant 2 : i32
    %2 = vector.broadcast %c2_i32 : i32 to vector<8x16xi32>
    %3 = arith.muli %2, %0 : vector<8x16xi32>
    %4 = arith.subi %1, %3 : vector<8x16xi32>
    %5 = math.absi %4 : vector<8x16xi32>
    %c1_i32 = arith.constant 1 : i32
    %6 = vector.broadcast %c1_i32 : i32 to vector<8x16xi32>
    %7 = arith.cmpi sle, %5, %6 : vector<8x16xi32>
    %cst = arith.constant 0.333333343 : f32
    %cst_0 = arith.constant 0.000000e+00 : f32
    %8 = vector.broadcast %cst : f32 to vector<8x16xf32>
    %9 = vector.broadcast %cst_0 : f32 to vector<8x16xf32>
    %10 = arith.select %7, %8, %9 : vector<8x16xi1>, vector<8x16xf32>
    %11 = tpu.iota {dimensions = array<i32: 0>} : vector<4x8xi32>
    %12 = tpu.iota {dimensions = array<i32: 1>} : vector<4x8xi32>
    %c2_i32_1 = arith.constant 2 : i32
    %13 = vector.broadcast %c2_i32_1 : i32 to vector<4x8xi32>
    %14 = arith.muli %13, %11 : vector<4x8xi32>
    %15 = arith.subi %12, %14 : vector<4x8xi32>
    %16 = math.absi %15 : vector<4x8xi32>
    %c1_i32_2 = arith.constant 1 : i32
    %17 = vector.broadcast %c1_i32_2 : i32 to vector<4x8xi32>
    %18 = arith.cmpi sle, %16, %17 : vector<4x8xi32>
    %cst_3 = arith.constant 0.333333343 : f32
    %cst_4 = arith.constant 0.000000e+00 : f32
    %19 = vector.broadcast %cst_3 : f32 to vector<4x8xf32>
    %20 = vector.broadcast %cst_4 : f32 to vector<4x8xf32>
    %21 = arith.select %18, %19, %20 : vector<4x8xi1>, vector<4x8xf32>
    %22 = tpu.iota {dimensions = array<i32: 0>} : vector<2x4xi32>
    %23 = tpu.iota {dimensions = array<i32: 1>} : vector<2x4xi32>
    %c2_i32_5 = arith.constant 2 : i32
    %24 = vector.broadcast %c2_i32_5 : i32 to vector<2x4xi32>
    %25 = arith.muli %24, %22 : vector<2x4xi32>
    %26 = arith.subi %23, %25 : vector<2x4xi32>
    %27 = math.absi %26 : vector<2x4xi32>
    %c1_i32_6 = arith.constant 1 : i32
    %28 = vector.broadcast %c1_i32_6 : i32 to vector<2x4xi32>
    %29 = arith.cmpi sle, %27, %28 : vector<2x4xi32>
    %cst_7 = arith.constant 0.333333343 : f32
    %cst_8 = arith.constant 0.000000e+00 : f32
    %30 = vector.broadcast %cst_7 : f32 to vector<2x4xf32>
    %31 = vector.broadcast %cst_8 : f32 to vector<2x4xf32>
    %32 = arith.select %29, %30, %31 : vector<2x4xi1>, vector<2x4xf32>
    %c0 = arith.constant 0 : index
    %c0_9 = arith.constant 0 : index
    %c0_10 = arith.constant 0 : index
    %33 = vector.load %arg1[%c0, %c0_9, %c0_10] : memref<2x16x128xf32, #tpu.memory_space<vmem>>, vector<1x16x128xf32>
    %34 = vector.shape_cast %33 : vector<1x16x128xf32> to vector<16x128xf32>
    %cst_11 = arith.constant 0.000000e+00 : f32
    %35 = vector.broadcast %cst_11 : f32 to vector<2x128xf32>
    %c8 = arith.constant 8 : index
    %c0_12 = arith.constant 0 : index
    %36 = vector.load %arg15[%c8, %c0_12] : memref<32x384xf32, #tpu.memory_space<vmem>>, vector<2x128xf32>
    tpu.vector_store %arg15[%c8, %c0_12], %35 {strides = array<i32>} : memref<32x384xf32, #tpu.memory_space<vmem>>, vector<2x128xf32>,
    %c22 = arith.constant 22 : index
    %c256 = arith.constant 256 : index
    %37 = vector.load %arg15[%c22, %c256] : memref<32x384xf32, #tpu.memory_space<vmem>>, vector<2x128xf32>
    tpu.vector_store %arg15[%c22, %c256], %35 {strides = array<i32>} : memref<32x384xf32, #tpu.memory_space<vmem>>, vector<2x128xf32>,
    %c10 = arith.constant 10 : index
    %c0_13 = arith.constant 0 : index
    %38 = vector.load %arg15[%c10, %c0_13] : memref<32x384xf32, #tpu.memory_space<vmem>>, vector<16x128xf32>
    tpu.vector_store %arg15[%c10, %c0_13], %34 {strides = array<i32>} : memref<32x384xf32, #tpu.memory_space<vmem>>, vector<16x128xf32>,
    %c8_14 = arith.constant 8 : index
    %c128 = arith.constant 128 : index
    %39 = vector.load %arg15[%c8_14, %c128] : memref<32x384xf32, #tpu.memory_space<vmem>>, vector<16x128xf32>
    tpu.vector_store %arg15[%c8_14, %c128], %34 {strides = array<i32>} : memref<32x384xf32, #tpu.memory_space<vmem>>, vector<16x128xf32>,
    %c6 = arith.constant 6 : index
    %c256_15 = arith.constant 256 : index
    %40 = vector.load %arg15[%c6, %c256_15] : memref<32x384xf32, #tpu.memory_space<vmem>>, vector<16x128xf32>
    tpu.vector_store %arg15[%c6, %c256_15], %34 {strides = array<i32>} : memref<32x384xf32, #tpu.memory_space<vmem>>, vector<16x128xf32>,
    %c8_16 = arith.constant 8 : index
    %c0_17 = arith.constant 0 : index
    %41 = vector.load %arg15[%c8_16, %c0_17] : memref<32x384xf32, #tpu.memory_space<vmem>>, vector<16x384xf32>
    %c0_18 = arith.constant 0 : index
    %c0_19 = arith.constant 0 : index
    %c0_20 = arith.constant 0 : index
    %42 = vector.load %arg2[%c0_18, %c0_19, %c0_20] : memref<6x384x128xf32, #tpu.memory_space<vmem>>, vector<1x384x128xf32>
    %43 = vector.shape_cast %42 : vector<1x384x128xf32> to vector<384x128xf32>
    %cst_21 = arith.constant dense<0.000000e+00> : vector<16x128xf32>
    %44 = tpu.matmul %41, %43, %cst_21 {dimension_numbers = #tpu.dot_dimension_numbers<[1], [0], [0], [1], [0, 0, 1, 1], [], []>} : vector<16x384xf32>, vector<384x128xf32>, vector<16x128xf32> -> vector<16x128xf32>
    %c0_22 = arith.constant 0 : index
    %c0_23 = arith.constant 0 : index
    %c0_24 = arith.constant 0 : index
    %45 = vector.load %arg3[%c0_22, %c0_23, %c0_24] : memref<6x1x128xf32, #tpu.memory_space<vmem>>, vector<1x1x128xf32>
    %46 = vector.shape_cast %45 : vector<1x1x128xf32> to vector<1x128xf32>
    %47 = vector.broadcast %46 : vector<1x128xf32> to vector<16x128xf32>
    %48 = arith.addf %44, %47 : vector<16x128xf32>
    %c0_25 = arith.constant 0 : index
    %c0_26 = arith.constant 0 : index
    %c0_27 = arith.constant 0 : index
    %49 = vector.load %arg4[%c0_25, %c0_26, %c0_27] : memref<6x1x128xf32, #tpu.memory_space<vmem>>, vector<1x1x128xf32>
    %50 = vector.shape_cast %49 : vector<1x1x128xf32> to vector<1x128xf32>
    %51 = vector.broadcast %50 : vector<1x128xf32> to vector<16x128xf32>
    %52 = arith.mulf %48, %51 : vector<16x128xf32>
    %c0_28 = arith.constant 0 : index
    %c0_29 = arith.constant 0 : index
    %c0_30 = arith.constant 0 : index
    %53 = vector.load %arg5[%c0_28, %c0_29, %c0_30] : memref<6x1x128xf32, #tpu.memory_space<vmem>>, vector<1x1x128xf32>
    %54 = vector.shape_cast %53 : vector<1x1x128xf32> to vector<1x128xf32>
    %55 = vector.broadcast %54 : vector<1x128xf32> to vector<16x128xf32>
    %56 = arith.addf %52, %55 : vector<16x128xf32>
    %cst_31 = arith.constant 0.000000e+00 : f32
    %57 = vector.broadcast %cst_31 : f32 to vector<16x128xf32>
    %58 = arith.maximumf %56, %57 : vector<16x128xf32>
    %cst_32 = arith.constant 0.000000e+00 : f32
    %59 = vector.broadcast %cst_32 : f32 to vector<2x128xf32>
    %c8_33 = arith.constant 8 : index
    %c0_34 = arith.constant 0 : index
    %60 = vector.load %arg15[%c8_33, %c0_34] : memref<32x384xf32, #tpu.memory_space<vmem>>, vector<2x128xf32>
    tpu.vector_store %arg15[%c8_33, %c0_34], %59 {strides = array<i32>} : memref<32x384xf32, #tpu.memory_space<vmem>>, vector<2x128xf32>,
    %c22_35 = arith.constant 22 : index
    %c256_36 = arith.constant 256 : index
    %61 = vector.load %arg15[%c22_35, %c256_36] : memref<32x384xf32, #tpu.memory_space<vmem>>, vector<2x128xf32>
    tpu.vector_store %arg15[%c22_35, %c256_36], %59 {strides = array<i32>} : memref<32x384xf32, #tpu.memory_space<vmem>>, vector<2x128xf32>,
    %c10_37 = arith.constant 10 : index
    %c0_38 = arith.constant 0 : index
    %62 = vector.load %arg15[%c10_37, %c0_38] : memref<32x384xf32, #tpu.memory_space<vmem>>, vector<16x128xf32>
    tpu.vector_store %arg15[%c10_37, %c0_38], %58 {strides = array<i32>} : memref<32x384xf32, #tpu.memory_space<vmem>>, vector<16x128xf32>,
    %c8_39 = arith.constant 8 : index
    %c128_40 = arith.constant 128 : index
    %63 = vector.load %arg15[%c8_39, %c128_40] : memref<32x384xf32, #tpu.memory_space<vmem>>, vector<16x128xf32>
    tpu.vector_store %arg15[%c8_39, %c128_40], %58 {strides = array<i32>} : memref<32x384xf32, #tpu.memory_space<vmem>>, vector<16x128xf32>,
    %c6_41 = arith.constant 6 : index
    %c256_42 = arith.constant 256 : index
    %64 = vector.load %arg15[%c6_41, %c256_42] : memref<32x384xf32, #tpu.memory_space<vmem>>, vector<16x128xf32>
    tpu.vector_store %arg15[%c6_41, %c256_42], %58 {strides = array<i32>} : memref<32x384xf32, #tpu.memory_space<vmem>>, vector<16x128xf32>,
    %c8_43 = arith.constant 8 : index
    %c0_44 = arith.constant 0 : index
    %65 = vector.load %arg15[%c8_43, %c0_44] : memref<32x384xf32, #tpu.memory_space<vmem>>, vector<16x384xf32>
    %c1 = arith.constant 1 : index
    %c0_45 = arith.constant 0 : index
    %c0_46 = arith.constant 0 : index
    %66 = vector.load %arg2[%c1, %c0_45, %c0_46] : memref<6x384x128xf32, #tpu.memory_space<vmem>>, vector<1x384x128xf32>
    %67 = vector.shape_cast %66 : vector<1x384x128xf32> to vector<384x128xf32>
    %cst_47 = arith.constant dense<0.000000e+00> : vector<16x128xf32>
    %68 = tpu.matmul %65, %67, %cst_47 {dimension_numbers = #tpu.dot_dimension_numbers<[1], [0], [0], [1], [0, 0, 1, 1], [], []>} : vector<16x384xf32>, vector<384x128xf32>, vector<16x128xf32> -> vector<16x128xf32>
    %c1_48 = arith.constant 1 : index
    %c0_49 = arith.constant 0 : index
    %c0_50 = arith.constant 0 : index
    %69 = vector.load %arg3[%c1_48, %c0_49, %c0_50] : memref<6x1x128xf32, #tpu.memory_space<vmem>>, vector<1x1x128xf32>
    %70 = vector.shape_cast %69 : vector<1x1x128xf32> to vector<1x128xf32>
    %71 = vector.broadcast %70 : vector<1x128xf32> to vector<16x128xf32>
    %72 = arith.addf %68, %71 : vector<16x128xf32>
    %cst_51 = arith.constant dense<0.000000e+00> : vector<8x128xf32>
    %73 = tpu.matmul %10, %72, %cst_51 {dimension_numbers = #tpu.dot_dimension_numbers<[1], [0], [0], [1], [0, 0, 1, 1], [], []>} : vector<8x16xf32>, vector<16x128xf32>, vector<8x128xf32> -> vector<8x128xf32>
    %c1_52 = arith.constant 1 : index
    %c0_53 = arith.constant 0 : index
    %c0_54 = arith.constant 0 : index
    %74 = vector.load %arg4[%c1_52, %c0_53, %c0_54] : memref<6x1x128xf32, #tpu.memory_space<vmem>>, vector<1x1x128xf32>
    %75 = vector.shape_cast %74 : vector<1x1x128xf32> to vector<1x128xf32>
    %76 = vector.broadcast %75 : vector<1x128xf32> to vector<8x128xf32>
    %77 = arith.mulf %73, %76 : vector<8x128xf32>
    %c1_55 = arith.constant 1 : index
    %c0_56 = arith.constant 0 : index
    %c0_57 = arith.constant 0 : index
    %78 = vector.load %arg5[%c1_55, %c0_56, %c0_57] : memref<6x1x128xf32, #tpu.memory_space<vmem>>, vector<1x1x128xf32>
    %79 = vector.shape_cast %78 : vector<1x1x128xf32> to vector<1x128xf32>
    %80 = vector.broadcast %79 : vector<1x128xf32> to vector<8x128xf32>
    %81 = arith.addf %77, %80 : vector<8x128xf32>
    %cst_58 = arith.constant 0.000000e+00 : f32
    %82 = vector.broadcast %cst_58 : f32 to vector<8x128xf32>
    %83 = arith.maximumf %81, %82 : vector<8x128xf32>
    %cst_59 = arith.constant 0.000000e+00 : f32
    %84 = vector.broadcast %cst_59 : f32 to vector<2x128xf32>
    %c8_60 = arith.constant 8 : index
    %c0_61 = arith.constant 0 : index
    %85 = vector.load %arg15[%c8_60, %c0_61] : memref<32x384xf32, #tpu.memory_space<vmem>>, vector<2x128xf32>
    tpu.vector_store %arg15[%c8_60, %c0_61], %84 {strides = array<i32>} : memref<32x384xf32, #tpu.memory_space<vmem>>, vector<2x128xf32>,
    %c14 = arith.constant 14 : index
    %c256_62 = arith.constant 256 : index
    %86 = vector.load %arg15[%c14, %c256_62] : memref<32x384xf32, #tpu.memory_space<vmem>>, vector<2x128xf32>
    tpu.vector_store %arg15[%c14, %c256_62], %84 {strides = array<i32>} : memref<32x384xf32, #tpu.memory_space<vmem>>, vector<2x128xf32>,
    %c10_63 = arith.constant 10 : index
    %c0_64 = arith.constant 0 : index
    %87 = vector.load %arg15[%c10_63, %c0_64] : memref<32x384xf32, #tpu.memory_space<vmem>>, vector<8x128xf32>
    tpu.vector_store %arg15[%c10_63, %c0_64], %83 {strides = array<i32>} : memref<32x384xf32, #tpu.memory_space<vmem>>, vector<8x128xf32>,
    %c8_65 = arith.constant 8 : index
    %c128_66 = arith.constant 128 : index
    %88 = vector.load %arg15[%c8_65, %c128_66] : memref<32x384xf32, #tpu.memory_space<vmem>>, vector<8x128xf32>
    tpu.vector_store %arg15[%c8_65, %c128_66], %83 {strides = array<i32>} : memref<32x384xf32, #tpu.memory_space<vmem>>, vector<8x128xf32>,
    %c6_67 = arith.constant 6 : index
    %c256_68 = arith.constant 256 : index
    %89 = vector.load %arg15[%c6_67, %c256_68] : memref<32x384xf32, #tpu.memory_space<vmem>>, vector<8x128xf32>
    tpu.vector_store %arg15[%c6_67, %c256_68], %83 {strides = array<i32>} : memref<32x384xf32, #tpu.memory_space<vmem>>, vector<8x128xf32>,
    %c8_69 = arith.constant 8 : index
    %c0_70 = arith.constant 0 : index
    %90 = vector.load %arg15[%c8_69, %c0_70] : memref<32x384xf32, #tpu.memory_space<vmem>>, vector<8x384xf32>
    %c2 = arith.constant 2 : index
    %c0_71 = arith.constant 0 : index
    %c0_72 = arith.constant 0 : index
    %91 = vector.load %arg2[%c2, %c0_71, %c0_72] : memref<6x384x128xf32, #tpu.memory_space<vmem>>, vector<1x384x128xf32>
    %92 = vector.shape_cast %91 : vector<1x384x128xf32> to vector<384x128xf32>
    %cst_73 = arith.constant dense<0.000000e+00> : vector<8x128xf32>
    %93 = tpu.matmul %90, %92, %cst_73 {dimension_numbers = #tpu.dot_dimension_numbers<[1], [0], [0], [1], [0, 0, 1, 1], [], []>} : vector<8x384xf32>, vector<384x128xf32>, vector<8x128xf32> -> vector<8x128xf32>
    %c2_74 = arith.constant 2 : index
    %c0_75 = arith.constant 0 : index
    %c0_76 = arith.constant 0 : index
    %94 = vector.load %arg3[%c2_74, %c0_75, %c0_76] : memref<6x1x128xf32, #tpu.memory_space<vmem>>, vector<1x1x128xf32>
    %95 = vector.shape_cast %94 : vector<1x1x128xf32> to vector<1x128xf32>
    %96 = vector.broadcast %95 : vector<1x128xf32> to vector<8x128xf32>
    %97 = arith.addf %93, %96 : vector<8x128xf32>
    %c2_77 = arith.constant 2 : index
    %c0_78 = arith.constant 0 : index
    %c0_79 = arith.constant 0 : index
    %98 = vector.load %arg4[%c2_77, %c0_78, %c0_79] : memref<6x1x128xf32, #tpu.memory_space<vmem>>, vector<1x1x128xf32>
    %99 = vector.shape_cast %98 : vector<1x1x128xf32> to vector<1x128xf32>
    %100 = vector.broadcast %99 : vector<1x128xf32> to vector<8x128xf32>
    %101 = arith.mulf %97, %100 : vector<8x128xf32>
    %c2_80 = arith.constant 2 : index
    %c0_81 = arith.constant 0 : index
    %c0_82 = arith.constant 0 : index
    %102 = vector.load %arg5[%c2_80, %c0_81, %c0_82] : memref<6x1x128xf32, #tpu.memory_space<vmem>>, vector<1x1x128xf32>
    %103 = vector.shape_cast %102 : vector<1x1x128xf32> to vector<1x128xf32>
    %104 = vector.broadcast %103 : vector<1x128xf32> to vector<8x128xf32>
    %105 = arith.addf %101, %104 : vector<8x128xf32>
    %cst_83 = arith.constant 0.000000e+00 : f32
    %106 = vector.broadcast %cst_83 : f32 to vector<8x128xf32>
    %107 = arith.maximumf %105, %106 : vector<8x128xf32>
    %cst_84 = arith.constant 0.000000e+00 : f32
    %108 = vector.broadcast %cst_84 : f32 to vector<2x128xf32>
    %c8_85 = arith.constant 8 : index
    %c0_86 = arith.constant 0 : index
    %109 = vector.load %arg15[%c8_85, %c0_86] : memref<32x384xf32, #tpu.memory_space<vmem>>, vector<2x128xf32>
    tpu.vector_store %arg15[%c8_85, %c0_86], %108 {strides = array<i32>} : memref<32x384xf32, #tpu.memory_space<vmem>>, vector<2x128xf32>,
    %c14_87 = arith.constant 14 : index
    %c256_88 = arith.constant 256 : index
    %110 = vector.load %arg15[%c14_87, %c256_88] : memref<32x384xf32, #tpu.memory_space<vmem>>, vector<2x128xf32>
    tpu.vector_store %arg15[%c14_87, %c256_88], %108 {strides = array<i32>} : memref<32x384xf32, #tpu.memory_space<vmem>>, vector<2x128xf32>,
    %c10_89 = arith.constant 10 : index
    %c0_90 = arith.constant 0 : index
    %111 = vector.load %arg15[%c10_89, %c0_90] : memref<32x384xf32, #tpu.memory_space<vmem>>, vector<8x128xf32>
    tpu.vector_store %arg15[%c10_89, %c0_90], %107 {strides = array<i32>} : memref<32x384xf32, #tpu.memory_space<vmem>>, vector<8x128xf32>,
    %c8_91 = arith.constant 8 : index
    %c128_92 = arith.constant 128 : index
    %112 = vector.load %arg15[%c8_91, %c128_92] : memref<32x384xf32, #tpu.memory_space<vmem>>, vector<8x128xf32>
    tpu.vector_store %arg15[%c8_91, %c128_92], %107 {strides = array<i32>} : memref<32x384xf32, #tpu.memory_space<vmem>>, vector<8x128xf32>,
    %c6_93 = arith.constant 6 : index
    %c256_94 = arith.constant 256 : index
    %113 = vector.load %arg15[%c6_93, %c256_94] : memref<32x384xf32, #tpu.memory_space<vmem>>, vector<8x128xf32>
    tpu.vector_store %arg15[%c6_93, %c256_94], %107 {strides = array<i32>} : memref<32x384xf32, #tpu.memory_space<vmem>>, vector<8x128xf32>,
    %c8_95 = arith.constant 8 : index
    %c0_96 = arith.constant 0 : index
    %114 = vector.load %arg15[%c8_95, %c0_96] : memref<32x384xf32, #tpu.memory_space<vmem>>, vector<8x384xf32>
    %c3 = arith.constant 3 : index
    %c0_97 = arith.constant 0 : index
    %c0_98 = arith.constant 0 : index
    %115 = vector.load %arg2[%c3, %c0_97, %c0_98] : memref<6x384x128xf32, #tpu.memory_space<vmem>>, vector<1x384x128xf32>
    %116 = vector.shape_cast %115 : vector<1x384x128xf32> to vector<384x128xf32>
    %cst_99 = arith.constant dense<0.000000e+00> : vector<8x128xf32>
    %117 = tpu.matmul %114, %116, %cst_99 {dimension_numbers = #tpu.dot_dimension_numbers<[1], [0], [0], [1], [0, 0, 1, 1], [], []>} : vector<8x384xf32>, vector<384x128xf32>, vector<8x128xf32> -> vector<8x128xf32>
    %c3_100 = arith.constant 3 : index
    %c0_101 = arith.constant 0 : index
    %c0_102 = arith.constant 0 : index
    %118 = vector.load %arg3[%c3_100, %c0_101, %c0_102] : memref<6x1x128xf32, #tpu.memory_space<vmem>>, vector<1x1x128xf32>
    %119 = vector.shape_cast %118 : vector<1x1x128xf32> to vector<1x128xf32>
    %120 = vector.broadcast %119 : vector<1x128xf32> to vector<8x128xf32>
    %121 = arith.addf %117, %120 : vector<8x128xf32>
    %cst_103 = arith.constant dense<0.000000e+00> : vector<4x128xf32>
    %122 = tpu.matmul %21, %121, %cst_103 {dimension_numbers = #tpu.dot_dimension_numbers<[1], [0], [0], [1], [0, 0, 1, 1], [], []>} : vector<4x8xf32>, vector<8x128xf32>, vector<4x128xf32> -> vector<4x128xf32>
    %c3_104 = arith.constant 3 : index
    %c0_105 = arith.constant 0 : index
    %c0_106 = arith.constant 0 : index
    %123 = vector.load %arg4[%c3_104, %c0_105, %c0_106] : memref<6x1x128xf32, #tpu.memory_space<vmem>>, vector<1x1x128xf32>
    %124 = vector.shape_cast %123 : vector<1x1x128xf32> to vector<1x128xf32>
    %125 = vector.broadcast %124 : vector<1x128xf32> to vector<4x128xf32>
    %126 = arith.mulf %122, %125 : vector<4x128xf32>
    %c3_107 = arith.constant 3 : index
    %c0_108 = arith.constant 0 : index
    %c0_109 = arith.constant 0 : index
    %127 = vector.load %arg5[%c3_107, %c0_108, %c0_109] : memref<6x1x128xf32, #tpu.memory_space<vmem>>, vector<1x1x128xf32>
    %128 = vector.shape_cast %127 : vector<1x1x128xf32> to vector<1x128xf32>
    %129 = vector.broadcast %128 : vector<1x128xf32> to vector<4x128xf32>
    %130 = arith.addf %126, %129 : vector<4x128xf32>
    %cst_110 = arith.constant 0.000000e+00 : f32
    %131 = vector.broadcast %cst_110 : f32 to vector<4x128xf32>
    %132 = arith.maximumf %130, %131 : vector<4x128xf32>
    %cst_111 = arith.constant 0.000000e+00 : f32
    %133 = vector.broadcast %cst_111 : f32 to vector<4x128xf32>
    %c8_112 = arith.constant 8 : index
    %c0_113 = arith.constant 0 : index
    %134 = vector.load %arg15[%c8_112, %c0_113] : memref<32x384xf32, #tpu.memory_space<vmem>>, vector<4x128xf32>
    tpu.vector_store %arg15[%c8_112, %c0_113], %133 {strides = array<i32>} : memref<32x384xf32, #tpu.memory_space<vmem>>, vector<4x128xf32>,
    %c8_114 = arith.constant 8 : index
    %c256_115 = arith.constant 256 : index
    %135 = vector.load %arg15[%c8_114, %c256_115] : memref<32x384xf32, #tpu.memory_space<vmem>>, vector<4x128xf32>
    tpu.vector_store %arg15[%c8_114, %c256_115], %133 {strides = array<i32>} : memref<32x384xf32, #tpu.memory_space<vmem>>, vector<4x128xf32>,
    %c12 = arith.constant 12 : index
    %c0_116 = arith.constant 0 : index
    %136 = vector.load %arg15[%c12, %c0_116] : memref<32x384xf32, #tpu.memory_space<vmem>>, vector<4x128xf32>
    tpu.vector_store %arg15[%c12, %c0_116], %132 {strides = array<i32>} : memref<32x384xf32, #tpu.memory_space<vmem>>, vector<4x128xf32>,
    %c8_117 = arith.constant 8 : index
    %c128_118 = arith.constant 128 : index
    %137 = vector.load %arg15[%c8_117, %c128_118] : memref<32x384xf32, #tpu.memory_space<vmem>>, vector<4x128xf32>
    tpu.vector_store %arg15[%c8_117, %c128_118], %132 {strides = array<i32>} : memref<32x384xf32, #tpu.memory_space<vmem>>, vector<4x128xf32>,
    %c4 = arith.constant 4 : index
    %c256_119 = arith.constant 256 : index
    %138 = vector.load %arg15[%c4, %c256_119] : memref<32x384xf32, #tpu.memory_space<vmem>>, vector<4x128xf32>
    tpu.vector_store %arg15[%c4, %c256_119], %132 {strides = array<i32>} : memref<32x384xf32, #tpu.memory_space<vmem>>, vector<4x128xf32>,
    %c8_120 = arith.constant 8 : index
    %c0_121 = arith.constant 0 : index
    %139 = vector.load %arg15[%c8_120, %c0_121] : memref<32x384xf32, #tpu.memory_space<vmem>>, vector<4x384xf32>
    %c4_122 = arith.constant 4 : index
    %c0_123 = arith.constant 0 : index
    %c0_124 = arith.constant 0 : index
    %140 = vector.load %arg2[%c4_122, %c0_123, %c0_124] : memref<6x384x128xf32, #tpu.memory_space<vmem>>, vector<1x384x128xf32>
    %141 = vector.shape_cast %140 : vector<1x384x128xf32> to vector<384x128xf32>
    %cst_125 = arith.constant dense<0.000000e+00> : vector<4x128xf32>
    %142 = tpu.matmul %139, %141, %cst_125 {dimension_numbers = #tpu.dot_dimension_numbers<[1], [0], [0], [1], [0, 0, 1, 1], [], []>} : vector<4x384xf32>, vector<384x128xf32>, vector<4x128xf32> -> vector<4x128xf32>
    %c4_126 = arith.constant 4 : index
    %c0_127 = arith.constant 0 : index
    %c0_128 = arith.constant 0 : index
    %143 = vector.load %arg3[%c4_126, %c0_127, %c0_128] : memref<6x1x128xf32, #tpu.memory_space<vmem>>, vector<1x1x128xf32>
    %144 = vector.shape_cast %143 : vector<1x1x128xf32> to vector<1x128xf32>
    %145 = vector.broadcast %144 : vector<1x128xf32> to vector<4x128xf32>
    %146 = arith.addf %142, %145 : vector<4x128xf32>
    %c4_129 = arith.constant 4 : index
    %c0_130 = arith.constant 0 : index
    %c0_131 = arith.constant 0 : index
    %147 = vector.load %arg4[%c4_129, %c0_130, %c0_131] : memref<6x1x128xf32, #tpu.memory_space<vmem>>, vector<1x1x128xf32>
    %148 = vector.shape_cast %147 : vector<1x1x128xf32> to vector<1x128xf32>
    %149 = vector.broadcast %148 : vector<1x128xf32> to vector<4x128xf32>
    %150 = arith.mulf %146, %149 : vector<4x128xf32>
    %c4_132 = arith.constant 4 : index
    %c0_133 = arith.constant 0 : index
    %c0_134 = arith.constant 0 : index
    %151 = vector.load %arg5[%c4_132, %c0_133, %c0_134] : memref<6x1x128xf32, #tpu.memory_space<vmem>>, vector<1x1x128xf32>
    %152 = vector.shape_cast %151 : vector<1x1x128xf32> to vector<1x128xf32>
    %153 = vector.broadcast %152 : vector<1x128xf32> to vector<4x128xf32>
    %154 = arith.addf %150, %153 : vector<4x128xf32>
    %cst_135 = arith.constant 0.000000e+00 : f32
    %155 = vector.broadcast %cst_135 : f32 to vector<4x128xf32>
    %156 = arith.maximumf %154, %155 : vector<4x128xf32>
    %cst_136 = arith.constant 0.000000e+00 : f32
    %157 = vector.broadcast %cst_136 : f32 to vector<4x128xf32>
    %c8_137 = arith.constant 8 : index
    %c0_138 = arith.constant 0 : index
    %158 = vector.load %arg15[%c8_137, %c0_138] : memref<32x384xf32, #tpu.memory_space<vmem>>, vector<4x128xf32>
    tpu.vector_store %arg15[%c8_137, %c0_138], %157 {strides = array<i32>} : memref<32x384xf32, #tpu.memory_space<vmem>>, vector<4x128xf32>,
    %c8_139 = arith.constant 8 : index
    %c256_140 = arith.constant 256 : index
    %159 = vector.load %arg15[%c8_139, %c256_140] : memref<32x384xf32, #tpu.memory_space<vmem>>, vector<4x128xf32>
    tpu.vector_store %arg15[%c8_139, %c256_140], %157 {strides = array<i32>} : memref<32x384xf32, #tpu.memory_space<vmem>>, vector<4x128xf32>,
    %c12_141 = arith.constant 12 : index
    %c0_142 = arith.constant 0 : index
    %160 = vector.load %arg15[%c12_141, %c0_142] : memref<32x384xf32, #tpu.memory_space<vmem>>, vector<4x128xf32>
    tpu.vector_store %arg15[%c12_141, %c0_142], %156 {strides = array<i32>} : memref<32x384xf32, #tpu.memory_space<vmem>>, vector<4x128xf32>,
    %c8_143 = arith.constant 8 : index
    %c128_144 = arith.constant 128 : index
    %161 = vector.load %arg15[%c8_143, %c128_144] : memref<32x384xf32, #tpu.memory_space<vmem>>, vector<4x128xf32>
    tpu.vector_store %arg15[%c8_143, %c128_144], %156 {strides = array<i32>} : memref<32x384xf32, #tpu.memory_space<vmem>>, vector<4x128xf32>,
    %c4_145 = arith.constant 4 : index
    %c256_146 = arith.constant 256 : index
    %162 = vector.load %arg15[%c4_145, %c256_146] : memref<32x384xf32, #tpu.memory_space<vmem>>, vector<4x128xf32>
    tpu.vector_store %arg15[%c4_145, %c256_146], %156 {strides = array<i32>} : memref<32x384xf32, #tpu.memory_space<vmem>>, vector<4x128xf32>,
    %c8_147 = arith.constant 8 : index
    %c0_148 = arith.constant 0 : index
    %163 = vector.load %arg15[%c8_147, %c0_148] : memref<32x384xf32, #tpu.memory_space<vmem>>, vector<4x384xf32>
    %c5 = arith.constant 5 : index
    %c0_149 = arith.constant 0 : index
    %c0_150 = arith.constant 0 : index
    %164 = vector.load %arg2[%c5, %c0_149, %c0_150] : memref<6x384x128xf32, #tpu.memory_space<vmem>>, vector<1x384x128xf32>
    %165 = vector.shape_cast %164 : vector<1x384x128xf32> to vector<384x128xf32>
    %cst_151 = arith.constant dense<0.000000e+00> : vector<4x128xf32>
    %166 = tpu.matmul %163, %165, %cst_151 {dimension_numbers = #tpu.dot_dimension_numbers<[1], [0], [0], [1], [0, 0, 1, 1], [], []>} : vector<4x384xf32>, vector<384x128xf32>, vector<4x128xf32> -> vector<4x128xf32>
    %c5_152 = arith.constant 5 : index
    %c0_153 = arith.constant 0 : index
    %c0_154 = arith.constant 0 : index
    %167 = vector.load %arg3[%c5_152, %c0_153, %c0_154] : memref<6x1x128xf32, #tpu.memory_space<vmem>>, vector<1x1x128xf32>
    %168 = vector.shape_cast %167 : vector<1x1x128xf32> to vector<1x128xf32>
    %169 = vector.broadcast %168 : vector<1x128xf32> to vector<4x128xf32>
    %170 = arith.addf %166, %169 : vector<4x128xf32>
    %cst_155 = arith.constant dense<0.000000e+00> : vector<2x128xf32>
    %171 = tpu.matmul %32, %170, %cst_155 {dimension_numbers = #tpu.dot_dimension_numbers<[1], [0], [0], [1], [0, 0, 1, 1], [], []>} : vector<2x4xf32>, vector<4x128xf32>, vector<2x128xf32> -> vector<2x128xf32>
    %c5_156 = arith.constant 5 : index
    %c0_157 = arith.constant 0 : index
    %c0_158 = arith.constant 0 : index
    %172 = vector.load %arg4[%c5_156, %c0_157, %c0_158] : memref<6x1x128xf32, #tpu.memory_space<vmem>>, vector<1x1x128xf32>
    %173 = vector.shape_cast %172 : vector<1x1x128xf32> to vector<1x128xf32>
    %174 = vector.broadcast %173 : vector<1x128xf32> to vector<2x128xf32>
    %175 = arith.mulf %171, %174 : vector<2x128xf32>
    %c5_159 = arith.constant 5 : index
    %c0_160 = arith.constant 0 : index
    %c0_161 = arith.constant 0 : index
    %176 = vector.load %arg5[%c5_159, %c0_160, %c0_161] : memref<6x1x128xf32, #tpu.memory_space<vmem>>, vector<1x1x128xf32>
    %177 = vector.shape_cast %176 : vector<1x1x128xf32> to vector<1x128xf32>
    %178 = vector.broadcast %177 : vector<1x128xf32> to vector<2x128xf32>
    %179 = arith.addf %175, %178 : vector<2x128xf32>
    %cst_162 = arith.constant 0.000000e+00 : f32
    %180 = vector.broadcast %cst_162 : f32 to vector<2x128xf32>
    %181 = arith.maximumf %179, %180 : vector<2x128xf32>
    %182 = vector.extract_strided_slice %181 {offsets = [0, 0], sizes = [1, 128], strides = [1, 1]} : vector<2x128xf32> to vector<1x128xf32>
    %c0_163 = arith.constant 0 : index
    %c0_164 = arith.constant 0 : index
    %183 = vector.load %arg16[%c0_163, %c0_164] : memref<4x128xf32, #tpu.memory_space<vmem>>, vector<1x128xf32>
    tpu.vector_store %arg16[%c0_163, %c0_164], %182 {strides = array<i32>} : memref<4x128xf32, #tpu.memory_space<vmem>>, vector<1x128xf32>,
    %184 = vector.extract_strided_slice %181 {offsets = [1, 0], sizes = [1, 128], strides = [1, 1]} : vector<2x128xf32> to vector<1x128xf32>
    %c2_165 = arith.constant 2 : index
    %c0_166 = arith.constant 0 : index
    %185 = vector.load %arg16[%c2_165, %c0_166] : memref<4x128xf32, #tpu.memory_space<vmem>>, vector<1x128xf32>
    tpu.vector_store %arg16[%c2_165, %c0_166], %184 {strides = array<i32>} : memref<4x128xf32, #tpu.memory_space<vmem>>, vector<1x128xf32>,
    %c1_167 = arith.constant 1 : index
    %c0_168 = arith.constant 0 : index
    %c0_169 = arith.constant 0 : index
    %186 = vector.load %arg1[%c1_167, %c0_168, %c0_169] : memref<2x16x128xf32, #tpu.memory_space<vmem>>, vector<1x16x128xf32>
    %187 = vector.shape_cast %186 : vector<1x16x128xf32> to vector<16x128xf32>
    %cst_170 = arith.constant 0.000000e+00 : f32
    %188 = vector.broadcast %cst_170 : f32 to vector<2x128xf32>
    %c8_171 = arith.constant 8 : index
    %c0_172 = arith.constant 0 : index
    %189 = vector.load %arg15[%c8_171, %c0_172] : memref<32x384xf32, #tpu.memory_space<vmem>>, vector<2x128xf32>
    tpu.vector_store %arg15[%c8_171, %c0_172], %188 {strides = array<i32>} : memref<32x384xf32, #tpu.memory_space<vmem>>, vector<2x128xf32>,
    %c22_173 = arith.constant 22 : index
    %c256_174 = arith.constant 256 : index
    %190 = vector.load %arg15[%c22_173, %c256_174] : memref<32x384xf32, #tpu.memory_space<vmem>>, vector<2x128xf32>
    tpu.vector_store %arg15[%c22_173, %c256_174], %188 {strides = array<i32>} : memref<32x384xf32, #tpu.memory_space<vmem>>, vector<2x128xf32>,
    %c10_175 = arith.constant 10 : index
    %c0_176 = arith.constant 0 : index
    %191 = vector.load %arg15[%c10_175, %c0_176] : memref<32x384xf32, #tpu.memory_space<vmem>>, vector<16x128xf32>
    tpu.vector_store %arg15[%c10_175, %c0_176], %187 {strides = array<i32>} : memref<32x384xf32, #tpu.memory_space<vmem>>, vector<16x128xf32>,
    %c8_177 = arith.constant 8 : index
    %c128_178 = arith.constant 128 : index
    %192 = vector.load %arg15[%c8_177, %c128_178] : memref<32x384xf32, #tpu.memory_space<vmem>>, vector<16x128xf32>
    tpu.vector_store %arg15[%c8_177, %c128_178], %187 {strides = array<i32>} : memref<32x384xf32, #tpu.memory_space<vmem>>, vector<16x128xf32>,
    %c6_179 = arith.constant 6 : index
    %c256_180 = arith.constant 256 : index
    %193 = vector.load %arg15[%c6_179, %c256_180] : memref<32x384xf32, #tpu.memory_space<vmem>>, vector<16x128xf32>
    tpu.vector_store %arg15[%c6_179, %c256_180], %187 {strides = array<i32>} : memref<32x384xf32, #tpu.memory_space<vmem>>, vector<16x128xf32>,
    %c8_181 = arith.constant 8 : index
    %c0_182 = arith.constant 0 : index
    %194 = vector.load %arg15[%c8_181, %c0_182] : memref<32x384xf32, #tpu.memory_space<vmem>>, vector<16x384xf32>
    %c0_183 = arith.constant 0 : index
    %c0_184 = arith.constant 0 : index
    %c0_185 = arith.constant 0 : index
    %195 = vector.load %arg2[%c0_183, %c0_184, %c0_185] : memref<6x384x128xf32, #tpu.memory_space<vmem>>, vector<1x384x128xf32>
    %196 = vector.shape_cast %195 : vector<1x384x128xf32> to vector<384x128xf32>
    %cst_186 = arith.constant dense<0.000000e+00> : vector<16x128xf32>
    %197 = tpu.matmul %194, %196, %cst_186 {dimension_numbers = #tpu.dot_dimension_numbers<[1], [0], [0], [1], [0, 0, 1, 1], [], []>} : vector<16x384xf32>, vector<384x128xf32>, vector<16x128xf32> -> vector<16x128xf32>
    %c0_187 = arith.constant 0 : index
    %c0_188 = arith.constant 0 : index
    %c0_189 = arith.constant 0 : index
    %198 = vector.load %arg3[%c0_187, %c0_188, %c0_189] : memref<6x1x128xf32, #tpu.memory_space<vmem>>, vector<1x1x128xf32>
    %199 = vector.shape_cast %198 : vector<1x1x128xf32> to vector<1x128xf32>
    %200 = vector.broadcast %199 : vector<1x128xf32> to vector<16x128xf32>
    %201 = arith.addf %197, %200 : vector<16x128xf32>
    %c0_190 = arith.constant 0 : index
    %c0_191 = arith.constant 0 : index
    %c0_192 = arith.constant 0 : index
    %202 = vector.load %arg4[%c0_190, %c0_191, %c0_192] : memref<6x1x128xf32, #tpu.memory_space<vmem>>, vector<1x1x128xf32>
    %203 = vector.shape_cast %202 : vector<1x1x128xf32> to vector<1x128xf32>
    %204 = vector.broadcast %203 : vector<1x128xf32> to vector<16x128xf32>
    %205 = arith.mulf %201, %204 : vector<16x128xf32>
    %c0_193 = arith.constant 0 : index
    %c0_194 = arith.constant 0 : index
    %c0_195 = arith.constant 0 : index
    %206 = vector.load %arg5[%c0_193, %c0_194, %c0_195] : memref<6x1x128xf32, #tpu.memory_space<vmem>>, vector<1x1x128xf32>
    %207 = vector.shape_cast %206 : vector<1x1x128xf32> to vector<1x128xf32>
    %208 = vector.broadcast %207 : vector<1x128xf32> to vector<16x128xf32>
    %209 = arith.addf %205, %208 : vector<16x128xf32>
    %cst_196 = arith.constant 0.000000e+00 : f32
    %210 = vector.broadcast %cst_196 : f32 to vector<16x128xf32>
    %211 = arith.maximumf %209, %210 : vector<16x128xf32>
    %cst_197 = arith.constant 0.000000e+00 : f32
    %212 = vector.broadcast %cst_197 : f32 to vector<2x128xf32>
    %c8_198 = arith.constant 8 : index
    %c0_199 = arith.constant 0 : index
    %213 = vector.load %arg15[%c8_198, %c0_199] : memref<32x384xf32, #tpu.memory_space<vmem>>, vector<2x128xf32>
    tpu.vector_store %arg15[%c8_198, %c0_199], %212 {strides = array<i32>} : memref<32x384xf32, #tpu.memory_space<vmem>>, vector<2x128xf32>,
    %c22_200 = arith.constant 22 : index
    %c256_201 = arith.constant 256 : index
    %214 = vector.load %arg15[%c22_200, %c256_201] : memref<32x384xf32, #tpu.memory_space<vmem>>, vector<2x128xf32>
    tpu.vector_store %arg15[%c22_200, %c256_201], %212 {strides = array<i32>} : memref<32x384xf32, #tpu.memory_space<vmem>>, vector<2x128xf32>,
    %c10_202 = arith.constant 10 : index
    %c0_203 = arith.constant 0 : index
    %215 = vector.load %arg15[%c10_202, %c0_203] : memref<32x384xf32, #tpu.memory_space<vmem>>, vector<16x128xf32>
    tpu.vector_store %arg15[%c10_202, %c0_203], %211 {strides = array<i32>} : memref<32x384xf32, #tpu.memory_space<vmem>>, vector<16x128xf32>,
    %c8_204 = arith.constant 8 : index
    %c128_205 = arith.constant 128 : index
    %216 = vector.load %arg15[%c8_204, %c128_205] : memref<32x384xf32, #tpu.memory_space<vmem>>, vector<16x128xf32>
    tpu.vector_store %arg15[%c8_204, %c128_205], %211 {strides = array<i32>} : memref<32x384xf32, #tpu.memory_space<vmem>>, vector<16x128xf32>,
    %c6_206 = arith.constant 6 : index
    %c256_207 = arith.constant 256 : index
    %217 = vector.load %arg15[%c6_206, %c256_207] : memref<32x384xf32, #tpu.memory_space<vmem>>, vector<16x128xf32>
    tpu.vector_store %arg15[%c6_206, %c256_207], %211 {strides = array<i32>} : memref<32x384xf32, #tpu.memory_space<vmem>>, vector<16x128xf32>,
    %c8_208 = arith.constant 8 : index
    %c0_209 = arith.constant 0 : index
    %218 = vector.load %arg15[%c8_208, %c0_209] : memref<32x384xf32, #tpu.memory_space<vmem>>, vector<16x384xf32>
    %c1_210 = arith.constant 1 : index
    %c0_211 = arith.constant 0 : index
    %c0_212 = arith.constant 0 : index
    %219 = vector.load %arg2[%c1_210, %c0_211, %c0_212] : memref<6x384x128xf32, #tpu.memory_space<vmem>>, vector<1x384x128xf32>
    %220 = vector.shape_cast %219 : vector<1x384x128xf32> to vector<384x128xf32>
    %cst_213 = arith.constant dense<0.000000e+00> : vector<16x128xf32>
    %221 = tpu.matmul %218, %220, %cst_213 {dimension_numbers = #tpu.dot_dimension_numbers<[1], [0], [0], [1], [0, 0, 1, 1], [], []>} : vector<16x384xf32>, vector<384x128xf32>, vector<16x128xf32> -> vector<16x128xf32>
    %c1_214 = arith.constant 1 : index
    %c0_215 = arith.constant 0 : index
    %c0_216 = arith.constant 0 : index
    %222 = vector.load %arg3[%c1_214, %c0_215, %c0_216] : memref<6x1x128xf32, #tpu.memory_space<vmem>>, vector<1x1x128xf32>
    %223 = vector.shape_cast %222 : vector<1x1x128xf32> to vector<1x128xf32>
    %224 = vector.broadcast %223 : vector<1x128xf32> to vector<16x128xf32>
    %225 = arith.addf %221, %224 : vector<16x128xf32>
    %cst_217 = arith.constant dense<0.000000e+00> : vector<8x128xf32>
    %226 = tpu.matmul %10, %225, %cst_217 {dimension_numbers = #tpu.dot_dimension_numbers<[1], [0], [0], [1], [0, 0, 1, 1], [], []>} : vector<8x16xf32>, vector<16x128xf32>, vector<8x128xf32> -> vector<8x128xf32>
    %c1_218 = arith.constant 1 : index
    %c0_219 = arith.constant 0 : index
    %c0_220 = arith.constant 0 : index
    %227 = vector.load %arg4[%c1_218, %c0_219, %c0_220] : memref<6x1x128xf32, #tpu.memory_space<vmem>>, vector<1x1x128xf32>
    %228 = vector.shape_cast %227 : vector<1x1x128xf32> to vector<1x128xf32>
    %229 = vector.broadcast %228 : vector<1x128xf32> to vector<8x128xf32>
    %230 = arith.mulf %226, %229 : vector<8x128xf32>
    %c1_221 = arith.constant 1 : index
    %c0_222 = arith.constant 0 : index
    %c0_223 = arith.constant 0 : index
    %231 = vector.load %arg5[%c1_221, %c0_222, %c0_223] : memref<6x1x128xf32, #tpu.memory_space<vmem>>, vector<1x1x128xf32>
    %232 = vector.shape_cast %231 : vector<1x1x128xf32> to vector<1x128xf32>
    %233 = vector.broadcast %232 : vector<1x128xf32> to vector<8x128xf32>
    %234 = arith.addf %230, %233 : vector<8x128xf32>
    %cst_224 = arith.constant 0.000000e+00 : f32
    %235 = vector.broadcast %cst_224 : f32 to vector<8x128xf32>
    %236 = arith.maximumf %234, %235 : vector<8x128xf32>
    %cst_225 = arith.constant 0.000000e+00 : f32
    %237 = vector.broadcast %cst_225 : f32 to vector<2x128xf32>
    %c8_226 = arith.constant 8 : index
    %c0_227 = arith.constant 0 : index
    %238 = vector.load %arg15[%c8_226, %c0_227] : memref<32x384xf32, #tpu.memory_space<vmem>>, vector<2x128xf32>
    tpu.vector_store %arg15[%c8_226, %c0_227], %237 {strides = array<i32>} : memref<32x384xf32, #tpu.memory_space<vmem>>, vector<2x128xf32>,
    %c14_228 = arith.constant 14 : index
    %c256_229 = arith.constant 256 : index
    %239 = vector.load %arg15[%c14_228, %c256_229] : memref<32x384xf32, #tpu.memory_space<vmem>>, vector<2x128xf32>
    tpu.vector_store %arg15[%c14_228, %c256_229], %237 {strides = array<i32>} : memref<32x384xf32, #tpu.memory_space<vmem>>, vector<2x128xf32>,
    %c10_230 = arith.constant 10 : index
    %c0_231 = arith.constant 0 : index
    %240 = vector.load %arg15[%c10_230, %c0_231] : memref<32x384xf32, #tpu.memory_space<vmem>>, vector<8x128xf32>
    tpu.vector_store %arg15[%c10_230, %c0_231], %236 {strides = array<i32>} : memref<32x384xf32, #tpu.memory_space<vmem>>, vector<8x128xf32>,
    %c8_232 = arith.constant 8 : index
    %c128_233 = arith.constant 128 : index
    %241 = vector.load %arg15[%c8_232, %c128_233] : memref<32x384xf32, #tpu.memory_space<vmem>>, vector<8x128xf32>
    tpu.vector_store %arg15[%c8_232, %c128_233], %236 {strides = array<i32>} : memref<32x384xf32, #tpu.memory_space<vmem>>, vector<8x128xf32>,
    %c6_234 = arith.constant 6 : index
    %c256_235 = arith.constant 256 : index
    %242 = vector.load %arg15[%c6_234, %c256_235] : memref<32x384xf32, #tpu.memory_space<vmem>>, vector<8x128xf32>
    tpu.vector_store %arg15[%c6_234, %c256_235], %236 {strides = array<i32>} : memref<32x384xf32, #tpu.memory_space<vmem>>, vector<8x128xf32>,
    %c8_236 = arith.constant 8 : index
    %c0_237 = arith.constant 0 : index
    %243 = vector.load %arg15[%c8_236, %c0_237] : memref<32x384xf32, #tpu.memory_space<vmem>>, vector<8x384xf32>
    %c2_238 = arith.constant 2 : index
    %c0_239 = arith.constant 0 : index
    %c0_240 = arith.constant 0 : index
    %244 = vector.load %arg2[%c2_238, %c0_239, %c0_240] : memref<6x384x128xf32, #tpu.memory_space<vmem>>, vector<1x384x128xf32>
    %245 = vector.shape_cast %244 : vector<1x384x128xf32> to vector<384x128xf32>
    %cst_241 = arith.constant dense<0.000000e+00> : vector<8x128xf32>
    %246 = tpu.matmul %243, %245, %cst_241 {dimension_numbers = #tpu.dot_dimension_numbers<[1], [0], [0], [1], [0, 0, 1, 1], [], []>} : vector<8x384xf32>, vector<384x128xf32>, vector<8x128xf32> -> vector<8x128xf32>
    %c2_242 = arith.constant 2 : index
    %c0_243 = arith.constant 0 : index
    %c0_244 = arith.constant 0 : index
    %247 = vector.load %arg3[%c2_242, %c0_243, %c0_244] : memref<6x1x128xf32, #tpu.memory_space<vmem>>, vector<1x1x128xf32>
    %248 = vector.shape_cast %247 : vector<1x1x128xf32> to vector<1x128xf32>
    %249 = vector.broadcast %248 : vector<1x128xf32> to vector<8x128xf32>
    %250 = arith.addf %246, %249 : vector<8x128xf32>
    %c2_245 = arith.constant 2 : index
    %c0_246 = arith.constant 0 : index
    %c0_247 = arith.constant 0 : index
    %251 = vector.load %arg4[%c2_245, %c0_246, %c0_247] : memref<6x1x128xf32, #tpu.memory_space<vmem>>, vector<1x1x128xf32>
    %252 = vector.shape_cast %251 : vector<1x1x128xf32> to vector<1x128xf32>
    %253 = vector.broadcast %252 : vector<1x128xf32> to vector<8x128xf32>
    %254 = arith.mulf %250, %253 : vector<8x128xf32>
    %c2_248 = arith.constant 2 : index
    %c0_249 = arith.constant 0 : index
    %c0_250 = arith.constant 0 : index
    %255 = vector.load %arg5[%c2_248, %c0_249, %c0_250] : memref<6x1x128xf32, #tpu.memory_space<vmem>>, vector<1x1x128xf32>
    %256 = vector.shape_cast %255 : vector<1x1x128xf32> to vector<1x128xf32>
    %257 = vector.broadcast %256 : vector<1x128xf32> to vector<8x128xf32>
    %258 = arith.addf %254, %257 : vector<8x128xf32>
    %cst_251 = arith.constant 0.000000e+00 : f32
    %259 = vector.broadcast %cst_251 : f32 to vector<8x128xf32>
    %260 = arith.maximumf %258, %259 : vector<8x128xf32>
    %cst_252 = arith.constant 0.000000e+00 : f32
    %261 = vector.broadcast %cst_252 : f32 to vector<2x128xf32>
    %c8_253 = arith.constant 8 : index
    %c0_254 = arith.constant 0 : index
    %262 = vector.load %arg15[%c8_253, %c0_254] : memref<32x384xf32, #tpu.memory_space<vmem>>, vector<2x128xf32>
    tpu.vector_store %arg15[%c8_253, %c0_254], %261 {strides = array<i32>} : memref<32x384xf32, #tpu.memory_space<vmem>>, vector<2x128xf32>,
    %c14_255 = arith.constant 14 : index
    %c256_256 = arith.constant 256 : index
    %263 = vector.load %arg15[%c14_255, %c256_256] : memref<32x384xf32, #tpu.memory_space<vmem>>, vector<2x128xf32>
    tpu.vector_store %arg15[%c14_255, %c256_256], %261 {strides = array<i32>} : memref<32x384xf32, #tpu.memory_space<vmem>>, vector<2x128xf32>,
    %c10_257 = arith.constant 10 : index
    %c0_258 = arith.constant 0 : index
    %264 = vector.load %arg15[%c10_257, %c0_258] : memref<32x384xf32, #tpu.memory_space<vmem>>, vector<8x128xf32>
    tpu.vector_store %arg15[%c10_257, %c0_258], %260 {strides = array<i32>} : memref<32x384xf32, #tpu.memory_space<vmem>>, vector<8x128xf32>,
    %c8_259 = arith.constant 8 : index
    %c128_260 = arith.constant 128 : index
    %265 = vector.load %arg15[%c8_259, %c128_260] : memref<32x384xf32, #tpu.memory_space<vmem>>, vector<8x128xf32>
    tpu.vector_store %arg15[%c8_259, %c128_260], %260 {strides = array<i32>} : memref<32x384xf32, #tpu.memory_space<vmem>>, vector<8x128xf32>,
    %c6_261 = arith.constant 6 : index
    %c256_262 = arith.constant 256 : index
    %266 = vector.load %arg15[%c6_261, %c256_262] : memref<32x384xf32, #tpu.memory_space<vmem>>, vector<8x128xf32>
    tpu.vector_store %arg15[%c6_261, %c256_262], %260 {strides = array<i32>} : memref<32x384xf32, #tpu.memory_space<vmem>>, vector<8x128xf32>,
    %c8_263 = arith.constant 8 : index
    %c0_264 = arith.constant 0 : index
    %267 = vector.load %arg15[%c8_263, %c0_264] : memref<32x384xf32, #tpu.memory_space<vmem>>, vector<8x384xf32>
    %c3_265 = arith.constant 3 : index
    %c0_266 = arith.constant 0 : index
    %c0_267 = arith.constant 0 : index
    %268 = vector.load %arg2[%c3_265, %c0_266, %c0_267] : memref<6x384x128xf32, #tpu.memory_space<vmem>>, vector<1x384x128xf32>
    %269 = vector.shape_cast %268 : vector<1x384x128xf32> to vector<384x128xf32>
    %cst_268 = arith.constant dense<0.000000e+00> : vector<8x128xf32>
    %270 = tpu.matmul %267, %269, %cst_268 {dimension_numbers = #tpu.dot_dimension_numbers<[1], [0], [0], [1], [0, 0, 1, 1], [], []>} : vector<8x384xf32>, vector<384x128xf32>, vector<8x128xf32> -> vector<8x128xf32>
    %c3_269 = arith.constant 3 : index
    %c0_270 = arith.constant 0 : index
    %c0_271 = arith.constant 0 : index
    %271 = vector.load %arg3[%c3_269, %c0_270, %c0_271] : memref<6x1x128xf32, #tpu.memory_space<vmem>>, vector<1x1x128xf32>
    %272 = vector.shape_cast %271 : vector<1x1x128xf32> to vector<1x128xf32>
    %273 = vector.broadcast %272 : vector<1x128xf32> to vector<8x128xf32>
    %274 = arith.addf %270, %273 : vector<8x128xf32>
    %cst_272 = arith.constant dense<0.000000e+00> : vector<4x128xf32>
    %275 = tpu.matmul %21, %274, %cst_272 {dimension_numbers = #tpu.dot_dimension_numbers<[1], [0], [0], [1], [0, 0, 1, 1], [], []>} : vector<4x8xf32>, vector<8x128xf32>, vector<4x128xf32> -> vector<4x128xf32>
    %c3_273 = arith.constant 3 : index
    %c0_274 = arith.constant 0 : index
    %c0_275 = arith.constant 0 : index
    %276 = vector.load %arg4[%c3_273, %c0_274, %c0_275] : memref<6x1x128xf32, #tpu.memory_space<vmem>>, vector<1x1x128xf32>
    %277 = vector.shape_cast %276 : vector<1x1x128xf32> to vector<1x128xf32>
    %278 = vector.broadcast %277 : vector<1x128xf32> to vector<4x128xf32>
    %279 = arith.mulf %275, %278 : vector<4x128xf32>
    %c3_276 = arith.constant 3 : index
    %c0_277 = arith.constant 0 : index
    %c0_278 = arith.constant 0 : index
    %280 = vector.load %arg5[%c3_276, %c0_277, %c0_278] : memref<6x1x128xf32, #tpu.memory_space<vmem>>, vector<1x1x128xf32>
    %281 = vector.shape_cast %280 : vector<1x1x128xf32> to vector<1x128xf32>
    %282 = vector.broadcast %281 : vector<1x128xf32> to vector<4x128xf32>
    %283 = arith.addf %279, %282 : vector<4x128xf32>
    %cst_279 = arith.constant 0.000000e+00 : f32
    %284 = vector.broadcast %cst_279 : f32 to vector<4x128xf32>
    %285 = arith.maximumf %283, %284 : vector<4x128xf32>
    %cst_280 = arith.constant 0.000000e+00 : f32
    %286 = vector.broadcast %cst_280 : f32 to vector<4x128xf32>
    %c8_281 = arith.constant 8 : index
    %c0_282 = arith.constant 0 : index
    %287 = vector.load %arg15[%c8_281, %c0_282] : memref<32x384xf32, #tpu.memory_space<vmem>>, vector<4x128xf32>
    tpu.vector_store %arg15[%c8_281, %c0_282], %286 {strides = array<i32>} : memref<32x384xf32, #tpu.memory_space<vmem>>, vector<4x128xf32>,
    %c8_283 = arith.constant 8 : index
    %c256_284 = arith.constant 256 : index
    %288 = vector.load %arg15[%c8_283, %c256_284] : memref<32x384xf32, #tpu.memory_space<vmem>>, vector<4x128xf32>
    tpu.vector_store %arg15[%c8_283, %c256_284], %286 {strides = array<i32>} : memref<32x384xf32, #tpu.memory_space<vmem>>, vector<4x128xf32>,
    %c12_285 = arith.constant 12 : index
    %c0_286 = arith.constant 0 : index
    %289 = vector.load %arg15[%c12_285, %c0_286] : memref<32x384xf32, #tpu.memory_space<vmem>>, vector<4x128xf32>
    tpu.vector_store %arg15[%c12_285, %c0_286], %285 {strides = array<i32>} : memref<32x384xf32, #tpu.memory_space<vmem>>, vector<4x128xf32>,
    %c8_287 = arith.constant 8 : index
    %c128_288 = arith.constant 128 : index
    %290 = vector.load %arg15[%c8_287, %c128_288] : memref<32x384xf32, #tpu.memory_space<vmem>>, vector<4x128xf32>
    tpu.vector_store %arg15[%c8_287, %c128_288], %285 {strides = array<i32>} : memref<32x384xf32, #tpu.memory_space<vmem>>, vector<4x128xf32>,
    %c4_289 = arith.constant 4 : index
    %c256_290 = arith.constant 256 : index
    %291 = vector.load %arg15[%c4_289, %c256_290] : memref<32x384xf32, #tpu.memory_space<vmem>>, vector<4x128xf32>
    tpu.vector_store %arg15[%c4_289, %c256_290], %285 {strides = array<i32>} : memref<32x384xf32, #tpu.memory_space<vmem>>, vector<4x128xf32>,
    %c8_291 = arith.constant 8 : index
    %c0_292 = arith.constant 0 : index
    %292 = vector.load %arg15[%c8_291, %c0_292] : memref<32x384xf32, #tpu.memory_space<vmem>>, vector<4x384xf32>
    %c4_293 = arith.constant 4 : index
    %c0_294 = arith.constant 0 : index
    %c0_295 = arith.constant 0 : index
    %293 = vector.load %arg2[%c4_293, %c0_294, %c0_295] : memref<6x384x128xf32, #tpu.memory_space<vmem>>, vector<1x384x128xf32>
    %294 = vector.shape_cast %293 : vector<1x384x128xf32> to vector<384x128xf32>
    %cst_296 = arith.constant dense<0.000000e+00> : vector<4x128xf32>
    %295 = tpu.matmul %292, %294, %cst_296 {dimension_numbers = #tpu.dot_dimension_numbers<[1], [0], [0], [1], [0, 0, 1, 1], [], []>} : vector<4x384xf32>, vector<384x128xf32>, vector<4x128xf32> -> vector<4x128xf32>
    %c4_297 = arith.constant 4 : index
    %c0_298 = arith.constant 0 : index
    %c0_299 = arith.constant 0 : index
    %296 = vector.load %arg3[%c4_297, %c0_298, %c0_299] : memref<6x1x128xf32, #tpu.memory_space<vmem>>, vector<1x1x128xf32>
    %297 = vector.shape_cast %296 : vector<1x1x128xf32> to vector<1x128xf32>
    %298 = vector.broadcast %297 : vector<1x128xf32> to vector<4x128xf32>
    %299 = arith.addf %295, %298 : vector<4x128xf32>
    %c4_300 = arith.constant 4 : index
    %c0_301 = arith.constant 0 : index
    %c0_302 = arith.constant 0 : index
    %300 = vector.load %arg4[%c4_300, %c0_301, %c0_302] : memref<6x1x128xf32, #tpu.memory_space<vmem>>, vector<1x1x128xf32>
    %301 = vector.shape_cast %300 : vector<1x1x128xf32> to vector<1x128xf32>
    %302 = vector.broadcast %301 : vector<1x128xf32> to vector<4x128xf32>
    %303 = arith.mulf %299, %302 : vector<4x128xf32>
    %c4_303 = arith.constant 4 : index
    %c0_304 = arith.constant 0 : index
    %c0_305 = arith.constant 0 : index
    %304 = vector.load %arg5[%c4_303, %c0_304, %c0_305] : memref<6x1x128xf32, #tpu.memory_space<vmem>>, vector<1x1x128xf32>
    %305 = vector.shape_cast %304 : vector<1x1x128xf32> to vector<1x128xf32>
    %306 = vector.broadcast %305 : vector<1x128xf32> to vector<4x128xf32>
    %307 = arith.addf %303, %306 : vector<4x128xf32>
    %cst_306 = arith.constant 0.000000e+00 : f32
    %308 = vector.broadcast %cst_306 : f32 to vector<4x128xf32>
    %309 = arith.maximumf %307, %308 : vector<4x128xf32>
    %cst_307 = arith.constant 0.000000e+00 : f32
    %310 = vector.broadcast %cst_307 : f32 to vector<4x128xf32>
    %c8_308 = arith.constant 8 : index
    %c0_309 = arith.constant 0 : index
    %311 = vector.load %arg15[%c8_308, %c0_309] : memref<32x384xf32, #tpu.memory_space<vmem>>, vector<4x128xf32>
    tpu.vector_store %arg15[%c8_308, %c0_309], %310 {strides = array<i32>} : memref<32x384xf32, #tpu.memory_space<vmem>>, vector<4x128xf32>,
    %c8_310 = arith.constant 8 : index
    %c256_311 = arith.constant 256 : index
    %312 = vector.load %arg15[%c8_310, %c256_311] : memref<32x384xf32, #tpu.memory_space<vmem>>, vector<4x128xf32>
    tpu.vector_store %arg15[%c8_310, %c256_311], %310 {strides = array<i32>} : memref<32x384xf32, #tpu.memory_space<vmem>>, vector<4x128xf32>,
    %c12_312 = arith.constant 12 : index
    %c0_313 = arith.constant 0 : index
    %313 = vector.load %arg15[%c12_312, %c0_313] : memref<32x384xf32, #tpu.memory_space<vmem>>, vector<4x128xf32>
    tpu.vector_store %arg15[%c12_312, %c0_313], %309 {strides = array<i32>} : memref<32x384xf32, #tpu.memory_space<vmem>>, vector<4x128xf32>,
    %c8_314 = arith.constant 8 : index
    %c128_315 = arith.constant 128 : index
    %314 = vector.load %arg15[%c8_314, %c128_315] : memref<32x384xf32, #tpu.memory_space<vmem>>, vector<4x128xf32>
    tpu.vector_store %arg15[%c8_314, %c128_315], %309 {strides = array<i32>} : memref<32x384xf32, #tpu.memory_space<vmem>>, vector<4x128xf32>,
    %c4_316 = arith.constant 4 : index
    %c256_317 = arith.constant 256 : index
    %315 = vector.load %arg15[%c4_316, %c256_317] : memref<32x384xf32, #tpu.memory_space<vmem>>, vector<4x128xf32>
    tpu.vector_store %arg15[%c4_316, %c256_317], %309 {strides = array<i32>} : memref<32x384xf32, #tpu.memory_space<vmem>>, vector<4x128xf32>,
    %c8_318 = arith.constant 8 : index
    %c0_319 = arith.constant 0 : index
    %316 = vector.load %arg15[%c8_318, %c0_319] : memref<32x384xf32, #tpu.memory_space<vmem>>, vector<4x384xf32>
    %c5_320 = arith.constant 5 : index
    %c0_321 = arith.constant 0 : index
    %c0_322 = arith.constant 0 : index
    %317 = vector.load %arg2[%c5_320, %c0_321, %c0_322] : memref<6x384x128xf32, #tpu.memory_space<vmem>>, vector<1x384x128xf32>
    %318 = vector.shape_cast %317 : vector<1x384x128xf32> to vector<384x128xf32>
    %cst_323 = arith.constant dense<0.000000e+00> : vector<4x128xf32>
    %319 = tpu.matmul %316, %318, %cst_323 {dimension_numbers = #tpu.dot_dimension_numbers<[1], [0], [0], [1], [0, 0, 1, 1], [], []>} : vector<4x384xf32>, vector<384x128xf32>, vector<4x128xf32> -> vector<4x128xf32>
    %c5_324 = arith.constant 5 : index
    %c0_325 = arith.constant 0 : index
    %c0_326 = arith.constant 0 : index
    %320 = vector.load %arg3[%c5_324, %c0_325, %c0_326] : memref<6x1x128xf32, #tpu.memory_space<vmem>>, vector<1x1x128xf32>
    %321 = vector.shape_cast %320 : vector<1x1x128xf32> to vector<1x128xf32>
    %322 = vector.broadcast %321 : vector<1x128xf32> to vector<4x128xf32>
    %323 = arith.addf %319, %322 : vector<4x128xf32>
    %cst_327 = arith.constant dense<0.000000e+00> : vector<2x128xf32>
    %324 = tpu.matmul %32, %323, %cst_327 {dimension_numbers = #tpu.dot_dimension_numbers<[1], [0], [0], [1], [0, 0, 1, 1], [], []>} : vector<2x4xf32>, vector<4x128xf32>, vector<2x128xf32> -> vector<2x128xf32>
    %c5_328 = arith.constant 5 : index
    %c0_329 = arith.constant 0 : index
    %c0_330 = arith.constant 0 : index
    %325 = vector.load %arg4[%c5_328, %c0_329, %c0_330] : memref<6x1x128xf32, #tpu.memory_space<vmem>>, vector<1x1x128xf32>
    %326 = vector.shape_cast %325 : vector<1x1x128xf32> to vector<1x128xf32>
    %327 = vector.broadcast %326 : vector<1x128xf32> to vector<2x128xf32>
    %328 = arith.mulf %324, %327 : vector<2x128xf32>
    %c5_331 = arith.constant 5 : index
    %c0_332 = arith.constant 0 : index
    %c0_333 = arith.constant 0 : index
    %329 = vector.load %arg5[%c5_331, %c0_332, %c0_333] : memref<6x1x128xf32, #tpu.memory_space<vmem>>, vector<1x1x128xf32>
    %330 = vector.shape_cast %329 : vector<1x1x128xf32> to vector<1x128xf32>
    %331 = vector.broadcast %330 : vector<1x128xf32> to vector<2x128xf32>
    %332 = arith.addf %328, %331 : vector<2x128xf32>
    %cst_334 = arith.constant 0.000000e+00 : f32
    %333 = vector.broadcast %cst_334 : f32 to vector<2x128xf32>
    %334 = arith.maximumf %332, %333 : vector<2x128xf32>
    %335 = vector.extract_strided_slice %334 {offsets = [0, 0], sizes = [1, 128], strides = [1, 1]} : vector<2x128xf32> to vector<1x128xf32>
    %c1_335 = arith.constant 1 : index
    %c0_336 = arith.constant 0 : index
    %336 = vector.load %arg16[%c1_335, %c0_336] : memref<4x128xf32, #tpu.memory_space<vmem>>, vector<1x128xf32>
    tpu.vector_store %arg16[%c1_335, %c0_336], %335 {strides = array<i32>} : memref<4x128xf32, #tpu.memory_space<vmem>>, vector<1x128xf32>,
    %337 = vector.extract_strided_slice %334 {offsets = [1, 0], sizes = [1, 128], strides = [1, 1]} : vector<2x128xf32> to vector<1x128xf32>
    %c3_337 = arith.constant 3 : index
    %c0_338 = arith.constant 0 : index
    %338 = vector.load %arg16[%c3_337, %c0_338] : memref<4x128xf32, #tpu.memory_space<vmem>>, vector<1x128xf32>
    tpu.vector_store %arg16[%c3_337, %c0_338], %337 {strides = array<i32>} : memref<4x128xf32, #tpu.memory_space<vmem>>, vector<1x128xf32>,
    %c0_339 = arith.constant 0 : index
    %c0_340 = arith.constant 0 : index
    %339 = vector.load %arg16[%c0_339, %c0_340] : memref<4x128xf32, #tpu.memory_space<vmem>>, vector<2x128xf32>
    %c0_341 = arith.constant 0 : index
    %c0_342 = arith.constant 0 : index
    %c0_343 = arith.constant 0 : index
    %340 = vector.load %arg6[%c0_341, %c0_342, %c0_343] : memref<2x128x256xf32, #tpu.memory_space<vmem>>, vector<1x128x256xf32>
    %341 = vector.shape_cast %340 : vector<1x128x256xf32> to vector<128x256xf32>
    %cst_344 = arith.constant dense<0.000000e+00> : vector<2x256xf32>
    %342 = tpu.matmul %339, %341, %cst_344 {dimension_numbers = #tpu.dot_dimension_numbers<[1], [0], [0], [1], [0, 0, 1, 1], [], []>} : vector<2x128xf32>, vector<128x256xf32>, vector<2x256xf32> -> vector<2x256xf32>
    %c2_345 = arith.constant 2 : index
    %c0_346 = arith.constant 0 : index
    %343 = vector.load %arg16[%c2_345, %c0_346] : memref<4x128xf32, #tpu.memory_space<vmem>>, vector<2x128xf32>
    %c1_347 = arith.constant 1 : index
    %c0_348 = arith.constant 0 : index
    %c0_349 = arith.constant 0 : index
    %344 = vector.load %arg6[%c1_347, %c0_348, %c0_349] : memref<2x128x256xf32, #tpu.memory_space<vmem>>, vector<1x128x256xf32>
    %345 = vector.shape_cast %344 : vector<1x128x256xf32> to vector<128x256xf32>
    %cst_350 = arith.constant dense<0.000000e+00> : vector<2x256xf32>
    %346 = tpu.matmul %343, %345, %cst_350 {dimension_numbers = #tpu.dot_dimension_numbers<[1], [0], [0], [1], [0, 0, 1, 1], [], []>} : vector<2x128xf32>, vector<128x256xf32>, vector<2x256xf32> -> vector<2x256xf32>
    %347 = arith.addf %342, %346 : vector<2x256xf32>
    %c0_351 = arith.constant 0 : index
    %c0_352 = arith.constant 0 : index
    %348 = vector.load %arg7[%c0_351, %c0_352] : memref<1x256xf32, #tpu.memory_space<vmem>>, vector<1x256xf32>
    %349 = vector.broadcast %348 : vector<1x256xf32> to vector<2x256xf32>
    %350 = arith.mulf %347, %349 : vector<2x256xf32>
    %c0_353 = arith.constant 0 : index
    %c0_354 = arith.constant 0 : index
    %351 = vector.load %arg8[%c0_353, %c0_354] : memref<1x256xf32, #tpu.memory_space<vmem>>, vector<1x256xf32>
    %352 = vector.broadcast %351 : vector<1x256xf32> to vector<2x256xf32>
    %353 = arith.addf %350, %352 : vector<2x256xf32>
    %cst_355 = arith.constant 0.000000e+00 : f32
    %354 = vector.broadcast %cst_355 : f32 to vector<2x256xf32>
    %355 = arith.maximumf %353, %354 : vector<2x256xf32>
    %c0_356 = arith.constant 0 : index
    %c0_357 = arith.constant 0 : index
    %356 = vector.load %arg9[%c0_356, %c0_357] : memref<256x128xf32, #tpu.memory_space<vmem>>, vector<256x128xf32>
    %cst_358 = arith.constant dense<0.000000e+00> : vector<2x128xf32>
    %357 = tpu.matmul %355, %356, %cst_358 {dimension_numbers = #tpu.dot_dimension_numbers<[1], [0], [0], [1], [0, 0, 1, 1], [], []>} : vector<2x256xf32>, vector<256x128xf32>, vector<2x128xf32> -> vector<2x128xf32>
    %c0_359 = arith.constant 0 : index
    %c0_360 = arith.constant 0 : index
    %358 = vector.load %arg10[%c0_359, %c0_360] : memref<1x128xf32, #tpu.memory_space<vmem>>, vector<1x128xf32>
    %359 = vector.broadcast %358 : vector<1x128xf32> to vector<2x128xf32>
    %360 = arith.mulf %357, %359 : vector<2x128xf32>
    %c0_361 = arith.constant 0 : index
    %c0_362 = arith.constant 0 : index
    %361 = vector.load %arg11[%c0_361, %c0_362] : memref<1x128xf32, #tpu.memory_space<vmem>>, vector<1x128xf32>
    %362 = vector.broadcast %361 : vector<1x128xf32> to vector<2x128xf32>
    %363 = arith.addf %360, %362 : vector<2x128xf32>
    %cst_363 = arith.constant 0.000000e+00 : f32
    %364 = vector.broadcast %cst_363 : f32 to vector<2x128xf32>
    %365 = arith.maximumf %363, %364 : vector<2x128xf32>
    %c0_364 = arith.constant 0 : index
    %c0_365 = arith.constant 0 : index
    %366 = vector.load %arg12[%c0_364, %c0_365] : memref<128x128xf32, #tpu.memory_space<vmem>>, vector<128x128xf32>
    %cst_366 = arith.constant dense<0.000000e+00> : vector<2x128xf32>
    %367 = tpu.matmul %365, %366, %cst_366 {dimension_numbers = #tpu.dot_dimension_numbers<[1], [0], [0], [1], [0, 0, 1, 1], [], []>} : vector<2x128xf32>, vector<128x128xf32>, vector<2x128xf32> -> vector<2x128xf32>
    %c0_367 = arith.constant 0 : index
    %c0_368 = arith.constant 0 : index
    %368 = vector.load %arg13[%c0_367, %c0_368] : memref<1x128xf32, #tpu.memory_space<vmem>>, vector<1x128xf32>
    %369 = vector.broadcast %368 : vector<1x128xf32> to vector<2x128xf32>
    %370 = arith.addf %367, %369 : vector<2x128xf32>
    %c0_369 = arith.constant 0 : index
    %c0_370 = arith.constant 0 : index
    %371 = vector.load %arg14[%c0_369, %c0_370] : memref<2x128xf32, #tpu.memory_space<vmem>>, vector<2x128xf32>
    tpu.vector_store %arg14[%c0_369, %c0_370], %370 {strides = array<i32>} : memref<2x128xf32, #tpu.memory_space<vmem>>, vector<2x128xf32>,
    return
  }
  func.func @transform_0(%arg0: i32) -> (i32, i32, i32) {
    %c0_i32 = arith.constant 0 : i32
    %c0_i32_0 = arith.constant 0 : i32
    %c0_i32_1 = arith.constant 0 : i32
    return %arg0, %c0_i32, %c0_i32_0 : i32, i32, i32
  }
  func.func @transform_1(%arg0: i32) -> (i32, i32, i32) {
    %c0_i32 = arith.constant 0 : i32
    %c0_i32_0 = arith.constant 0 : i32
    %c0_i32_1 = arith.constant 0 : i32
    %c0_i32_2 = arith.constant 0 : i32
    return %c0_i32, %c0_i32_0, %c0_i32_1 : i32, i32, i32
  }
  func.func @transform_2(%arg0: i32) -> (i32, i32, i32) {
    %c0_i32 = arith.constant 0 : i32
    %c0_i32_0 = arith.constant 0 : i32
    %c0_i32_1 = arith.constant 0 : i32
    %c0_i32_2 = arith.constant 0 : i32
    return %c0_i32, %c0_i32_0, %c0_i32_1 : i32, i32, i32
  }
  func.func @transform_3(%arg0: i32) -> (i32, i32, i32) {
    %c0_i32 = arith.constant 0 : i32
    %c0_i32_0 = arith.constant 0 : i32
    %c0_i32_1 = arith.constant 0 : i32
    %c0_i32_2 = arith.constant 0 : i32
    return %c0_i32, %c0_i32_0, %c0_i32_1 : i32, i32, i32
  }
  func.func @transform_4(%arg0: i32) -> (i32, i32, i32) {
    %c0_i32 = arith.constant 0 : i32
    %c0_i32_0 = arith.constant 0 : i32
    %c0_i32_1 = arith.constant 0 : i32
    %c0_i32_2 = arith.constant 0 : i32
    return %c0_i32, %c0_i32_0, %c0_i32_1 : i32, i32, i32
  }
  func.func @transform_5(%arg0: i32) -> (i32, i32, i32) {
    %c0_i32 = arith.constant 0 : i32
    %c0_i32_0 = arith.constant 0 : i32
    %c0_i32_1 = arith.constant 0 : i32
    %c0_i32_2 = arith.constant 0 : i32
    return %c0_i32, %c0_i32_0, %c0_i32_1 : i32, i32, i32
  }
  func.func @transform_6(%arg0: i32) -> (i32, i32) {
    %c0_i32 = arith.constant 0 : i32
    %c0_i32_0 = arith.constant 0 : i32
    %c0_i32_1 = arith.constant 0 : i32
    return %c0_i32, %c0_i32_0 : i32, i32
  }
  func.func @transform_7(%arg0: i32) -> (i32, i32) {
    %c0_i32 = arith.constant 0 : i32
    %c0_i32_0 = arith.constant 0 : i32
    %c0_i32_1 = arith.constant 0 : i32
    return %c0_i32, %c0_i32_0 : i32, i32
  }
  func.func @transform_8(%arg0: i32) -> (i32, i32) {
    %c0_i32 = arith.constant 0 : i32
    %c0_i32_0 = arith.constant 0 : i32
    %c0_i32_1 = arith.constant 0 : i32
    return %c0_i32, %c0_i32_0 : i32, i32
  }
  func.func @transform_9(%arg0: i32) -> (i32, i32) {
    %c0_i32 = arith.constant 0 : i32
    %c0_i32_0 = arith.constant 0 : i32
    %c0_i32_1 = arith.constant 0 : i32
    return %c0_i32, %c0_i32_0 : i32, i32
  }
  func.func @transform_10(%arg0: i32) -> (i32, i32) {
    %c0_i32 = arith.constant 0 : i32
    %c0_i32_0 = arith.constant 0 : i32
    %c0_i32_1 = arith.constant 0 : i32
    return %c0_i32, %c0_i32_0 : i32, i32
  }
  func.func @transform_11(%arg0: i32) -> (i32, i32) {
    %c0_i32 = arith.constant 0 : i32
    %c0_i32_0 = arith.constant 0 : i32
    %c0_i32_1 = arith.constant 0 : i32
    return %c0_i32, %c0_i32_0 : i32, i32
  }
  func.func @transform_12(%arg0: i32) -> (i32, i32) {
    %c0_i32 = arith.constant 0 : i32
    %c0_i32_0 = arith.constant 0 : i32
    %c0_i32_1 = arith.constant 0 : i32
    return %c0_i32, %c0_i32_0 : i32, i32
  }
  func.func @transform_13(%arg0: i32) -> (i32, i32) {
    %c0_i32 = arith.constant 0 : i32
    %c0_i32_0 = arith.constant 0 : i32
    return %arg0, %c0_i32 : i32, i32
  }
}

</mosaic_0001>

<bundles_post_ra>
// kernel: tcn_forward.1
= control target key start
LH: loop header
LB: loop body
LE: loop exit
PB: predicated region body
PF: predicated region fallthrough
CT: control target
= control target key end

     0   :  { %v5616_v5 = vmov 0.0   ;;  %s8178_s0 = inlined_call_operand.vmem [shape: f32[2,16,128], index: 0, kind: input, shape index: {}]   ;;  %s8179_s1 = inlined_call_operand.vmem [shape: f32[6,384,128], index: 1, kind: input, shape index: {}]   ;;  %s8180_s2 = inlined_call_operand.vmem [shape: f32[6,1,128], index: 2, kind: input, shape index: {}]   ;;  %s8181_s3 = inlined_call_operand.vmem [shape: f32[6,1,128], index: 3, kind: input, shape index: {}]   ;;  %s8182_s4 = inlined_call_operand.vmem [shape: f32[6,1,128], index: 4, kind: input, shape index: {}]   ;;  %s8183_s5 = inlined_call_operand.vmem [shape: f32[2,128,256], index: 5, kind: input, shape index: {}]   ;;  %s8184_s6 = inlined_call_operand.vmem [shape: f32[1,256], index: 6, kind: input, shape index: {}]   ;;  %s8185_s7 = inlined_call_operand.vmem [shape: f32[1,256], index: 7, kind: input, shape index: {}]   ;;  %s8186_s8 = inlined_call_operand.vmem [shape: f32[256,128], index: 8, kind: input, shape index: {}]   ;;  %s8187_s9 = inlined_call_operand.vmem [shape: f32[1,128], index: 9, kind: input, shape index: {}]   ;;  %s8188_s10 = inlined_call_operand.vmem [shape: f32[1,128], index: 10, kind: input, shape index: {}]   ;;  %s8189_s11 = inlined_call_operand.vmem [shape: f32[128,128], index: 11, kind: input, shape index: {}]   ;;  %s8190_s12 = inlined_call_operand.vmem [shape: f32[1,128], index: 12, kind: input, shape index: {}]   ;;  %s8191_s13 = inlined_call_operand.hbm [shape: f32[2,128], index: 13, kind: output, shape index: {}]  }
   0x1   :  { %v121_v0 = vld [vmem:[%s8179_s1 + $0xf8] sm:$0xff]  ;;  %v120_v2 = vld [vmem:[%s8179_s1 + $0xf0] sm:$0xff]  ;;  %58 = vst [vmem:[#allocation2 + $0x10] sm:$0x3] %v5616_v5  ;;  %59 = vst [vmem:[#allocation2 + $0x18] sm:$0xc0] %v5616_v5 }
   0x2   :  { %v105_v1 = vld [vmem:[%s8179_s1 + $0x78] sm:$0xff]  ;;  %4396 = vmatprep.subr.mxu0 %v121_v0  ;;  %v104_v3 = vld [vmem:[%s8179_s1 + $0x70] sm:$0xff]  ;;  %v119_v6 = vld [vmem:[%s8179_s1 + $0xe8] sm:$0xff] }
   0x3   :  { %v137_v4 = vld [vmem:[%s8179_s1 + $0x178] sm:$0xff]  ;;  %4397 = vmatpush3.msra.mxu0 %v105_v1  ;;  %v136_v7 = vld [vmem:[%s8179_s1 + $0x170] sm:$0xff]  ;;  %v103_v8 = vld [vmem:[%s8179_s1 + $0x68] sm:$0xff] }
   0x4   :  { %5102 = vmatprep.subr.mxu1 %v137_v4  ;;  %4398 = vmatprep.subr.mxu0 %v120_v2  ;;  %v135_v9 = vld [vmem:[%s8179_s1 + $0x168] sm:$0xff]  ;;  %v118_v10 = vld [vmem:[%s8179_s1 + $0xe0] sm:$0xff]  ;;  %v117_v13 = vld [vmem:[%s8179_s1 + $0xd8] sm:$0xff] }
   0x5   :  { %5103 = vmatpush3.msra.mxu1 %v137_v4  ;;  %4399 = vmatpush3.msra.mxu0 %v104_v3  ;;  %v102_v11 = vld [vmem:[%s8179_s1 + $0x60] sm:$0xff]  ;;  %v101_v14 = vld [vmem:[%s8179_s1 + $0x58] sm:$0xff]  ;;  %v116_v16 = vld [vmem:[%s8179_s1 + $0xd0] sm:$0xff] }
   0x6   :  { %5104 = vmatprep.subr.mxu1 %v136_v7  ;;  %4400 = vmatprep.subr.mxu0 %v119_v6  ;;  %v134_v12 = vld [vmem:[%s8179_s1 + $0x160] sm:$0xff]  ;;  %v133_v15 = vld [vmem:[%s8179_s1 + $0x158] sm:$0xff]  ;;  %v100_v17 = vld [vmem:[%s8179_s1 + $0x50] sm:$0xff] }
   0x7   :  { %5105 = vmatpush3.msra.mxu1 %v136_v7  ;;  %4401 = vmatpush3.msra.mxu0 %v103_v8  ;;  %v132_v18 = vld [vmem:[%s8179_s1 + $0x150] sm:$0xff]  ;;  %v115_v19 = vld [vmem:[%s8179_s1 + $0xc8] sm:$0xff]  ;;  %v114_v22 = vld [vmem:[%s8179_s1 + $0xc0] sm:$0xff] }
   0x8   :  { %5106 = vmatprep.subr.mxu1 %v135_v9  ;;  %4402 = vmatprep.subr.mxu0 %v118_v10  ;;  %v99_v20 = vld [vmem:[%s8179_s1 + $0x48] sm:$0xff]  ;;  %v98_v23 = vld [vmem:[%s8179_s1 + $0x40] sm:$0xff]  ;;  %v113_v25 = vld [vmem:[%s8179_s1 + $0xb8] sm:$0xff] }
   0x9   :  { %5107 = vmatpush3.msra.mxu1 %v135_v9  ;;  %4403 = vmatpush3.msra.mxu0 %v102_v11  ;;  %v131_v21 = vld [vmem:[%s8179_s1 + $0x148] sm:$0xff]  ;;  %v130_v24 = vld [vmem:[%s8179_s1 + $0x140] sm:$0xff]  ;;  %v97_v26 = vld [vmem:[%s8179_s1 + $0x38] sm:$0xff] }
   0xa   :  { %5108 = vmatprep.subr.mxu1 %v134_v12  ;;  %4404 = vmatprep.subr.mxu0 %v117_v13  ;;  %v129_v27 = vld [vmem:[%s8179_s1 + $0x138] sm:$0xff]  ;;  %v5775_v28 = vld [vmem:[%s8178_s0] sm:$0xff]  ;;  %v112_v29 = vld [vmem:[%s8179_s1 + $0xb0] sm:$0xff] }
   0xb   :  { %5109 = vmatpush3.msra.mxu1 %v134_v12  ;;  %4405 = vmatpush3.msra.mxu0 %v101_v14  ;;  %v63_v30 = vrot.slane %v5775_v28, 6  ;;  %v75_v31 = vrot.slane %v5775_v28, 2  ;;  %v5785_v32 = vld [vmem:[%s8178_s0 + $0x8] sm:$0xff]  ;;  %v96_v33 = vld [vmem:[%s8179_s1 + $0x30] sm:$0xff] }
   0xc   :  { %5110 = vmatprep.subr.mxu1 %v133_v15  ;;  %4406 = vmatprep.subr.mxu0 %v116_v16  ;;  %v128_v34 = vld [vmem:[%s8179_s1 + $0x130] sm:$0xff]  ;;  %v76_v35 = vrot.slane %v5785_v32, 2  ;;  %v64_v36 = vrot.slane %v5785_v32, 6  ;;  %v111_v37 = vld [vmem:[%s8179_s1 + $0xa8] sm:$0xff] }
   0xd   :  { %5111 = vmatpush3.msra.mxu1 %v133_v15  ;;  %4407 = vmatpush3.msra.mxu0 %v100_v17  ;;  %69 = vst [vmem:[#allocation2 + $0x10] sm:$0xfc] %v63_v30  ;;  %v95_v38 = vld [vmem:[%s8179_s1 + $0x28] sm:$0xff] }
   0xe   :  { %5112 = vmatprep.subr.mxu1 %v132_v18  ;;  %4408 = vmatprep.subr.mxu0 %v115_v19  ;;  %v127_v39 = vld [vmem:[%s8179_s1 + $0x128] sm:$0xff]  ;;  %83 = vst [vmem:[#allocation2 + $0x18] sm:$0x3f] %v76_v35 }
   0xf   :  { %5113 = vmatpush3.msra.mxu1 %v132_v18  ;;  %4409 = vmatpush3.msra.mxu0 %v99_v20 }
  0x10   :  { %5114 = vmatprep.subr.mxu1 %v131_v21  ;;  %4410 = vmatprep.subr.mxu0 %v114_v22 }
  0x11   :  { %5115 = vmatpush3.msra.mxu1 %v131_v21  ;;  %4411 = vmatpush3.msra.mxu0 %v98_v23 }
  0x12   :  { %5116 = vmatprep.subr.mxu1 %v130_v24  ;;  %4412 = vmatprep.subr.mxu0 %v113_v25 }
  0x13   :  { %5117 = vmatpush3.msra.mxu1 %v130_v24  ;;  %4413 = vmatpush3.msra.mxu0 %v97_v26 }
  0x14   :  { %5118 = vmatprep.subr.mxu1 %v129_v27  ;;  %4414 = vmatprep.subr.mxu0 %v112_v29 }
  0x15   :  { %5119 = vmatpush3.msra.mxu1 %v129_v27 }
  0x16   :  { %18 = vsyncpa [#allocation5], 0  ;;  %4415 = vmatpush3.msra.mxu0 %v96_v33  ;;  %5120 = vmatprep.subr.mxu1 %v128_v34  ;;  %v110_v40 = vld [vmem:[%s8179_s1 + $0xa0] sm:$0xff]  ;;  %v109_v43 = vld [vmem:[%s8179_s1 + $0x98] sm:$0xff]  ;;  %vm74_vm0 = vcmask 1045504   ;;  %vm62_vm1 = vcmask 1041408  }
  0x17   :  { %4416 = vmatprep.subr.mxu0 %v111_v37  ;;  %5121 = vmatpush3.msra.mxu1 %v128_v34  ;;  %v94_v41 = vld [vmem:[%s8179_s1 + $0x20] sm:$0xff]  ;;  %v93_v44 = vld [vmem:[%s8179_s1 + $0x18] sm:$0xff]  ;;  %v108_v46 = vld [vmem:[%s8179_s1 + $0x90] sm:$0xff]  ;;  %v77_v57 = vsel %vm74_vm0, %v75_v31, %v76_v35  ;;  %v65_v60 = vsel %vm62_vm1, %v63_v30, %v64_v36  ;;  %vm5617_vm2 = vmmov 0   ;;  %vm552_vm4 = vcmask 130048  }
  0x18   :  { %v126_v42 = vld [vmem:[%s8179_s1 + $0x120] sm:$0xff]  ;;  %4417 = vmatpush3.msra.mxu0 %v95_v38  ;;  %5122 = vmatprep.subr.mxu1 %v127_v39  ;;  %v125_v45 = vld [vmem:[%s8179_s1 + $0x118] sm:$0xff]  ;;  %v92_v47 = vld [vmem:[%s8179_s1 + $0x10] sm:$0xff]  ;;  %vm1088_vm5 = vcmask 64512   ;;  %vm1618_vm6 = vcmask 1043456   ;;  %vm1615_vm7 = vcmask 31744  }
  0x19   :  { %4418 = vmatprep.subr.mxu0 %v110_v40  ;;  %5123 = vmatpush3.msra.mxu1 %v127_v39  ;;  %v124_v48 = vld [vmem:[%s8179_s1 + $0x110] sm:$0xff]  ;;  %v107_v50 = vld [vmem:[%s8179_s1 + $0x88] sm:$0xff]  ;;  %v89_v51 = vld [vmem:[#allocation2 + $0x18] sm:$0xff] }
  0x1a   :  { %4419 = vmatpush3.msra.mxu0 %v94_v41  ;;  %5124 = vmatprep.subr.mxu1 %v126_v42  ;;  %v84_v49 = vld [vmem:[#allocation2 + $0x10] sm:$0xff]  ;;  %v91_v52 = vld [vmem:[%s8179_s1 + $0x8] sm:$0xff]  ;;  %316 = vst [vmem:[#allocation2 + $0x18] sm:$0xc0] %v5616_v5  ;;  %v106_v53 = vld [vmem:[%s8179_s1 + $0x80] sm:$0xff] }
  0x1b   :  { %4420 = vmatprep.subr.mxu0 %v109_v43  ;;  %5125 = vmatpush3.msra.mxu1 %v126_v42  ;;  %315 = vst [vmem:[#allocation2 + $0x10] sm:$0x3] %v5616_v5  ;;  %v123_v54 = vld [vmem:[%s8179_s1 + $0x108] sm:$0xff]  ;;  %v90_v55 = vld [vmem:[%s8179_s1] sm:$0xff]  ;;  %v3839_v58 = vld [vmem:[%s8179_s1 + $0x278] sm:$0xff] }
  0x1c   :  { %4421 = vmatpush3.msra.mxu0 %v93_v44  ;;  %5126 = vmatprep.subr.mxu1 %v125_v45  ;;  %v122_v56 = vld [vmem:[%s8179_s1 + $0x100] sm:$0xff]  ;;  %v3855_v59 = vld [vmem:[%s8179_s1 + $0x2f8] sm:$0xff]  ;;  %v3838_v62 = vld [vmem:[%s8179_s1 + $0x270] sm:$0xff] }
  0x1d   :  { %4422 = vmatprep.subr.mxu0 %v108_v46  ;;  %5127 = vmatpush3.msra.mxu1 %v125_v45  ;;  %v3823_v61 = vld [vmem:[%s8179_s1 + $0x1f8] sm:$0xff]  ;;  %v3822_v63 = vld [vmem:[%s8179_s1 + $0x1f0] sm:$0xff]  ;;  %v3837_v0 = vld [vmem:[%s8179_s1 + $0x268] sm:$0xff] }
  0x1e   :  { %4423 = vmatpush3.msra.mxu0 %v92_v47  ;;  %5128 = vmatprep.subr.mxu1 %v124_v48  ;;  %v3821_v1 = vld [vmem:[%s8179_s1 + $0x1e8] sm:$0xff]  ;;  %v3836_v2 = vld [vmem:[%s8179_s1 + $0x260] sm:$0xff]  ;;  %v3854_v3 = vld [vmem:[%s8179_s1 + $0x2f0] sm:$0xff] }
  0x1f   :  { %4424 = vmatprep.subr.mxu0 %v107_v50  ;;  %5129 = vmatpush3.msra.mxu1 %v124_v48  ;;  %v3820_v4 = vld [vmem:[%s8179_s1 + $0x1e0] sm:$0xff]  ;;  %v3835_v6 = vld [vmem:[%s8179_s1 + $0x258] sm:$0xff]  ;;  %v3853_v7 = vld [vmem:[%s8179_s1 + $0x2e8] sm:$0xff] }
  0x20   :  { %4425 = vmatpush3.msra.mxu0 %v91_v52  ;;  %209 = vmatprep.mubr.f32.mxu0 %v5775_v28  ;;  %v3819_v8 = vld [vmem:[%s8179_s1 + $0x1d8] sm:$0xff]  ;;  %v3834_v9 = vld [vmem:[%s8179_s1 + $0x250] sm:$0xff]  ;;  %v3852_v10 = vld [vmem:[%s8179_s1 + $0x2e0] sm:$0xff] }
  0x21   :  { %4426 = vmatprep.subr.mxu0 %v106_v53  ;;  %5130 = vmatprep.subr.mxu1 %v123_v54  ;;  %v3818_v11 = vld [vmem:[%s8179_s1 + $0x1d0] sm:$0xff]  ;;  %v3833_v12 = vld [vmem:[%s8179_s1 + $0x248] sm:$0xff]  ;;  %v3851_v13 = vld [vmem:[%s8179_s1 + $0x2d8] sm:$0xff] }
  0x22   :  { %4427 = vmatpush3.msra.mxu0 %v90_v55  ;;  %5131 = vmatpush3.msra.mxu1 %v123_v54  ;;  %v3817_v14 = vld [vmem:[%s8179_s1 + $0x1c8] sm:$0xff]  ;;  %v3832_v15 = vld [vmem:[%s8179_s1 + $0x240] sm:$0xff]  ;;  %v3850_v16 = vld [vmem:[%s8179_s1 + $0x2d0] sm:$0xff] }
  0x23   :  { %210 = vmatmul.mubr.f32.vlgmr.msra.gmra.mxu0 %v84_v49  ;;  %5132 = vmatprep.subr.mxu1 %v122_v56  ;;  %v3816_v17 = vld [vmem:[%s8179_s1 + $0x1c0] sm:$0xff]  ;;  %v3831_v18 = vld [vmem:[%s8179_s1 + $0x238] sm:$0xff]  ;;  %v3849_v19 = vld [vmem:[%s8179_s1 + $0x2c8] sm:$0xff] }
  0x24   :  { %5133 = vmatpush3.msra.mxu1 %v122_v56  ;;  %5134 = vmatprep.mubr.f32.mxu1 %v77_v57  ;;  %v3815_v20 = vld [vmem:[%s8179_s1 + $0x1b8] sm:$0xff]  ;;  %v3830_v21 = vld [vmem:[%s8179_s1 + $0x230] sm:$0xff]  ;;  %v3848_v22 = vld [vmem:[%s8179_s1 + $0x2c0] sm:$0xff] }
  0x25   :  { %214 = vmatprep.mubr.f32.mxu0 %v5785_v32  ;;  %5135 = vmatmul.mubr.f32.vlgmr.msra.gmra.mxu1 %v89_v51  ;;  %v3814_v23 = vld [vmem:[%s8179_s1 + $0x1b0] sm:$0xff]  ;;  %v3829_v24 = vld [vmem:[%s8179_s1 + $0x228] sm:$0xff]  ;;  %v3847_v25 = vld [vmem:[%s8179_s1 + $0x2b8] sm:$0xff] }
  0x26   :  { %4452 = vmatprep.subr.mxu0 %v3839_v58  ;;  %5137 = vmatprep.subr.mxu1 %v3855_v59  ;;  %v3813_v26 = vld [vmem:[%s8179_s1 + $0x1a8] sm:$0xff]  ;;  %v3828_v27 = vld [vmem:[%s8179_s1 + $0x220] sm:$0xff]  ;;  %v3846_v28 = vld [vmem:[%s8179_s1 + $0x2b0] sm:$0xff] }
  0x27   :  { %215 = vmatmul.mubr.f32.gmra.mxu0 %v65_v60  ;;  %5138 = vmatpush3.msra.mxu1 %v3855_v59  ;;  %v3812_v29 = vld [vmem:[%s8179_s1 + $0x1a0] sm:$0xff]  ;;  %v3827_v30 = vld [vmem:[%s8179_s1 + $0x218] sm:$0xff]  ;;  %v3845_v31 = vld [vmem:[%s8179_s1 + $0x2a8] sm:$0xff] }
  0x28   :  { %4453 = vmatpush3.msra.mxu0 %v3823_v61  ;;  %5139 = vmatprep.subr.mxu1 %v3854_v3  ;;  %v3811_v32 = vld [vmem:[%s8179_s1 + $0x198] sm:$0xff]  ;;  %v3826_v33 = vld [vmem:[%s8179_s1 + $0x210] sm:$0xff]  ;;  %v3844_v34 = vld [vmem:[%s8179_s1 + $0x2a0] sm:$0xff] }
  0x29   :  { %4454 = vmatprep.subr.mxu0 %v3838_v62  ;;  %5140 = vmatpush3.msra.mxu1 %v3854_v3  ;;  %v3810_v35 = vld [vmem:[%s8179_s1 + $0x190] sm:$0xff]  ;;  %v3825_v36 = vld [vmem:[%s8179_s1 + $0x208] sm:$0xff]  ;;  %v3843_v37 = vld [vmem:[%s8179_s1 + $0x298] sm:$0xff] }
  0x2a   :  { %4455 = vmatpush3.msra.mxu0 %v3822_v63  ;;  %5141 = vmatprep.subr.mxu1 %v3853_v7  ;;  %v3809_v38 = vld [vmem:[%s8179_s1 + $0x188] sm:$0xff]  ;;  %v3824_v39 = vld [vmem:[%s8179_s1 + $0x200] sm:$0xff]  ;;  %v3842_v40 = vld [vmem:[%s8179_s1 + $0x290] sm:$0xff] }
  0x2b   :  { %4456 = vmatprep.subr.mxu0 %v3837_v0  ;;  %5142 = vmatpush3.msra.mxu1 %v3853_v7  ;;  %v3808_v41 = vld [vmem:[%s8179_s1 + $0x180] sm:$0xff]  ;;  %v3841_v42 = vld [vmem:[%s8179_s1 + $0x288] sm:$0xff]  ;;  %v6007_v43 = vld [vmem:[%s8178_s0 + $0x18] sm:$0xff] }
  0x2c   :  { %4457 = vmatpush3.msra.mxu0 %v3821_v1  ;;  %5143 = vmatprep.subr.mxu1 %v3852_v10  ;;  %v3840_v44 = vld [vmem:[%s8179_s1 + $0x280] sm:$0xff]  ;;  %1730 = vst [vmem:[#allocation2 + $0x20] sm:$0xff] %v6007_v43  ;;  %v1721_v7 = vrot.slane %v6007_v43, 6 }
  0x2d   :  { %4458 = vmatprep.subr.mxu0 %v3836_v2  ;;  %5144 = vmatpush3.msra.mxu1 %v3852_v10  ;;  %v3805_v48 = vld [vmem:[%s8180_s2] ss:$0 sm:$0xff] }
  0x2e   :  { %4459 = vmatpush3.msra.mxu0 %v3820_v4  ;;  %5145 = vmatprep.subr.mxu1 %v3851_v13  ;;  %v3806_v53 = vld [vmem:[%s8181_s3] ss:$0 sm:$0xff] }
  0x2f   :  { %4460 = vmatprep.subr.mxu0 %v3835_v6  ;;  %5146 = vmatpush3.msra.mxu1 %v3851_v13  ;;  %v3807_v57 = vld [vmem:[%s8182_s4] ss:$0 sm:$0xff]  ;;  %v3894_v13 = vld [vmem:[%s8179_s1 + $0x3f8] sm:$0xff] }
  0x30   :  { %4461 = vmatpush3.msra.mxu0 %v3819_v8  ;;  %5147 = vmatprep.subr.mxu1 %v3850_v16 }
  0x31   :  { %4462 = vmatprep.subr.mxu0 %v3834_v9  ;;  %5148 = vmatpush3.msra.mxu1 %v3850_v16  ;;  %v3877_v16 = vld [vmem:[%s8179_s1 + $0x370] sm:$0xff] }
  0x32   :  { %4463 = vmatpush3.msra.mxu0 %v3818_v11  ;;  %5149 = vmatprep.subr.mxu1 %v3849_v19  ;;  %v1732_v11 = vrot.slane %v6007_v43, 2  ;;  %v1790_v43 = vld [vmem:[%s8179_s1 + $0x160] sm:$0xff] }
  0x33   :  { %4464 = vmatprep.subr.mxu0 %v3833_v12  ;;  %5150 = vmatpush3.msra.mxu1 %v3849_v19  ;;  %v3891_v19 = vld [vmem:[%s8179_s1 + $0x3e0] sm:$0xff] }
  0x34   :  { %4465 = vmatpush3.msra.mxu0 %v3817_v14  ;;  %5151 = vmatprep.subr.mxu1 %v3848_v22  ;;  %v3878_v14 = vld [vmem:[%s8179_s1 + $0x378] sm:$0xff] }
  0x35   :  { %4466 = vmatprep.subr.mxu0 %v3832_v15  ;;  %5152 = vmatpush3.msra.mxu1 %v3848_v22  ;;  %v3893_v15 = vld [vmem:[%s8179_s1 + $0x3f0] sm:$0xff]  ;;  %v3874_v22 = vld [vmem:[%s8179_s1 + $0x358] sm:$0xff] }
  0x36   :  { %4467 = vmatpush3.msra.mxu0 %v3816_v17  ;;  %5153 = vmatprep.subr.mxu1 %v3847_v25  ;;  %v3892_v17 = vld [vmem:[%s8179_s1 + $0x3e8] sm:$0xff] }
  0x37   :  { %4468 = vmatprep.subr.mxu0 %v3831_v18  ;;  %5154 = vmatpush3.msra.mxu1 %v3847_v25  ;;  %v3876_v18 = vld [vmem:[%s8179_s1 + $0x368] sm:$0xff] }
  0x38   :  { %4469 = vmatpush3.msra.mxu0 %v3815_v20  ;;  %5155 = vmatprep.subr.mxu1 %v3846_v28  ;;  %v3875_v20 = vld [vmem:[%s8179_s1 + $0x360] sm:$0xff]  ;;  %v3888_v25 = vld [vmem:[%s8179_s1 + $0x3c8] sm:$0xff] }
  0x39   :  { %4470 = vmatprep.subr.mxu0 %v3830_v21  ;;  %5156 = vmatpush3.msra.mxu1 %v3846_v28  ;;  %v3890_v21 = vld [vmem:[%s8179_s1 + $0x3d8] sm:$0xff]  ;;  %v45_v28 = vlaneseq }
  0x3a   :  { %4471 = vmatpush3.msra.mxu0 %v3814_v23  ;;  %5157 = vmatprep.subr.mxu1 %v3845_v31  ;;  %v3889_v23 = vld [vmem:[%s8179_s1 + $0x3d0] sm:$0xff] }
  0x3b   :  { %4472 = vmatprep.subr.mxu0 %v3829_v24  ;;  %5158 = vmatpush3.msra.mxu1 %v3845_v31  ;;  %v3873_v24 = vld [vmem:[%s8179_s1 + $0x350] sm:$0xff] }
  0x3c   :  { %4473 = vmatpush3.msra.mxu0 %v3813_v26  ;;  %5159 = vmatprep.subr.mxu1 %v3844_v34  ;;  %v3872_v26 = vld [vmem:[%s8179_s1 + $0x348] sm:$0xff] }
  0x3d   :  { %4474 = vmatprep.subr.mxu0 %v3828_v27  ;;  %5160 = vmatpush3.msra.mxu1 %v3844_v34  ;;  %v3887_v27 = vld [vmem:[%s8179_s1 + $0x3c0] sm:$0xff] }
  0x3e   :  { %4475 = vmatpush3.msra.mxu0 %v3812_v29  ;;  %5161 = vmatprep.subr.mxu1 %v3843_v37  ;;  %v6079_v29 = vshrl.u32 %v45_v28, 7 }
  0x3f   :  { %4476 = vmatprep.subr.mxu0 %v3827_v30  ;;  %5162 = vmatpush3.msra.mxu1 %v3843_v37  ;;  %v48_v30 = vand.u32 127, %v45_v28 }
  0x40   :  { %4477 = vmatpush3.msra.mxu0 %v3811_v32  ;;  %5163 = vmatprep.subr.mxu1 %v3842_v40  ;;  %v49_v31 = vmul.u32 2, %v6079_v29 }
  0x41   :  { %4478 = vmatprep.subr.mxu0 %v3826_v33  ;;  %5164 = vmatpush3.msra.mxu1 %v3842_v40 }
  0x42   :  { %4479 = vmatpush3.msra.mxu0 %v3810_v35  ;;  %5165 = vmatprep.subr.mxu1 %v3841_v42  ;;  %v50_v32 = vsub.s32 %v48_v30, %v49_v31 }
  0x43   :  { %4480 = vmatprep.subr.mxu0 %v3825_v36  ;;  %5166 = vmatpush3.msra.mxu1 %v3841_v42 }
  0x44   :  { %4481 = vmatpush3.msra.mxu0 %v3809_v38  ;;  %5167 = vmatprep.subr.mxu1 %v3840_v44  ;;  %v52_v35 = vsub.s32 0, %v50_v32 }
  0x45   :  { %4482 = vmatprep.subr.mxu0 %v3824_v39  ;;  %5168 = vmatpush3.msra.mxu1 %v3840_v44  ;;  %v3857_v39 = vld [vmem:[%s8180_s2 + $0x1] ss:$0 sm:$0xff] }
  0x46   :  { %4483 = vmatpush3.msra.mxu0 %v3808_v41  ;;  %5172 = vmatprep.subr.mxu1 %v5616_v5  ;;  %v3804_v41 = vmin.u32 %v52_v35, %v50_v32 }
  0x47   :  { %4511 = vmatprep.subr.mxu0 %v3894_v13  ;;  %v3881_v13 = vld [vmem:[%s8179_s1 + $0x390] sm:$0xff] }
  0x48   :  { %vm54_vm3 = vcmp.le.s32.totalorder %v3804_v41, 1  ;;  %v3930_v41 = vld [vmem:[%s8179_s1 + $0x4e8] sm:$0xff] }
  0xe3   :  { %v4428_v45 = vpop.f32.mrf.mxu0 }
  0xe5   :  { %v4429_v46 = vpop.f32.mrf.mxu0  ;;  %v5136_v47 = vpop.f32.mrf.mxu1 }
  0xe6   :  { %v4430_v49 = vadd.f32 %v4429_v46, %v4428_v45 }
  0xe7   :  { %v4431_v50 = vpop.f32.mrf.mxu0  ;;  %v286_v52 = vpop.f32.mrf.mxu1 }
  0xe8   :  { %v212_v51 = vadd.f32 %v4430_v49, %v3805_v48  ;;  %v6086_v49 = vsel %vm54_vm3, 0.33333334, %v5616_v5 }
  0xe9   :  { %v4432_v54 = vpop.f32.mrf.mxu0 }
  0xea   :  { %v287_v55 = vadd.f32 %v286_v52, %v212_v51  ;;  %v4433_v56 = vadd.f32 %v4432_v54, %v4431_v50  ;;  %v3910_v50 = vld [vmem:[%s8179_s1 + $0x478] sm:$0xff]  ;;  %v3909_v51 = vld [vmem:[%s8179_s1 + $0x470] sm:$0xff]  ;;  %v3908_v52 = vld [vmem:[%s8179_s1 + $0x468] sm:$0xff] }
  0xeb   :  { %v3906_v54 = vld [vmem:[%s8179_s1 + $0x458] sm:$0xff] }
  0xec   :  { %v302_v58 = vmul.f32 %v3806_v53, %v287_v55  ;;  %v217_v59 = vadd.f32 %v4433_v56, %v3805_v48  ;;  %v3905_v55 = vld [vmem:[%s8179_s1 + $0x450] sm:$0xff]  ;;  %v3904_v56 = vld [vmem:[%s8179_s1 + $0x448] sm:$0xff] }
  0xee   :  { %v311_v60 = vadd.f32 %v3807_v57, %v302_v58  ;;  %v292_v61 = vadd.f32 %v5136_v47, %v217_v59  ;;  %v3903_v58 = vld [vmem:[%s8179_s1 + $0x440] sm:$0xff]  ;;  %v3886_v59 = vld [vmem:[%s8179_s1 + $0x3b8] sm:$0xff] }
  0xf0   :  { %v313_v62 = vmax.f32 %v311_v60, 0.0  ;;  %v303_v63 = vmul.f32 %v3806_v53, %v292_v61  ;;  %v3907_v53 = vld [vmem:[%s8179_s1 + $0x460] sm:$0xff]  ;;  %v3870_v60 = vld [vmem:[%s8179_s1 + $0x338] sm:$0xff] }
  0xf1   :  { %v3902_v61 = vld [vmem:[%s8179_s1 + $0x438] sm:$0xff] }
  0xf2   :  { %v319_v0 = vrot.slane %v313_v62, 6  ;;  %v330_v1 = vrot.slane %v313_v62, 2  ;;  %v312_v2 = vadd.f32 %v3807_v57, %v303_v63  ;;  %466 = vmatprep.mubr.f32.mxu0 %v313_v62  ;;  %v3871_v57 = vld [vmem:[%s8179_s1 + $0x340] sm:$0xff]  ;;  %v3885_v62 = vld [vmem:[%s8179_s1 + $0x3b0] sm:$0xff] }
  0xf3   :  { %v3869_v63 = vld [vmem:[%s8179_s1 + $0x330] sm:$0xff] }
  0xf4   :  { %325 = vst [vmem:[#allocation2 + $0x10] sm:$0xfc] %v319_v0  ;;  %v314_v3 = vmax.f32 %v312_v2, 0.0  ;;  %v3868_v2 = vld [vmem:[%s8179_s1 + $0x328] sm:$0xff] }
  0xf6   :  { %v331_v4 = vrot.slane %v314_v3, 2  ;;  %v320_v6 = vrot.slane %v314_v3, 6 }
  0xf8   :  { %v332_v8 = vsel %vm74_vm0, %v330_v1, %v331_v4  ;;  %338 = vst [vmem:[#allocation2 + $0x18] sm:$0x3f] %v331_v4  ;;  %v321_v9 = vsel %vm62_vm1, %v319_v0, %v320_v6  ;;  %v3901_v0 = vld [vmem:[%s8179_s1 + $0x430] sm:$0xff]  ;;  %v3884_v1 = vld [vmem:[%s8179_s1 + $0x3a8] sm:$0xff]  ;;  %v3883_v4 = vld [vmem:[%s8179_s1 + $0x3a0] sm:$0xff] }
  0xf9   :  { %337 = vst [vmem:[#allocation2 + $0x28] sm:$0xff] %v332_v8  ;;  %5169 = vmatprep.mubr.f32.mxu1 %v332_v8  ;;  %v3867_v6 = vld [vmem:[%s8179_s1 + $0x320] sm:$0xff] }
  0xfa   :  { %646 = vst [vmem:[#allocation2 + $0x28] sm:$0xc0] %v5616_v5  ;;  %v3899_v8 = vld [vmem:[%s8179_s1 + $0x420] sm:$0xff] }
  0xfb   :  { %v339_v10 = vld [vmem:[#allocation2 + $0x10] sm:$0xff] }
  0xfc   :  { %645 = vst [vmem:[#allocation2 + $0x10] sm:$0x3] %v5616_v5  ;;  %467 = vmatmul.mubr.f32.vlgmr.msra.gmra.mxu0 %v339_v10  ;;  %v3866_v10 = vld [vmem:[%s8179_s1 + $0x318] sm:$0xff] }
  0xfd   :  { %471 = vmatprep.mubr.f32.mxu0 %v314_v3  ;;  %4512 = vmatpush3.msra.mxu0 %v3878_v14  ;;  %v3900_v3 = vld [vmem:[%s8179_s1 + $0x428] sm:$0xff]  ;;  %v3865_v14 = vld [vmem:[%s8179_s1 + $0x310] sm:$0xff] }
  0xfe   :  { %4513 = vmatprep.subr.mxu0 %v3893_v15  ;;  %v3897_v15 = vld [vmem:[%s8179_s1 + $0x410] sm:$0xff] }
  0xff   :  { %v344_v12 = vld [vmem:[#allocation2 + $0x18] sm:$0xff]  ;;  %4514 = vmatpush3.msra.mxu0 %v3877_v16  ;;  %v3880_v16 = vld [vmem:[%s8179_s1 + $0x388] sm:$0xff] }
 0x100   :  { %472 = vmatmul.mubr.f32.gmra.mxu0 %v321_v9  ;;  %5170 = vmatmul.mubr.f32.vlgmr.msra.gmra.mxu1 %v344_v12  ;;  %1717 = vst [vmem:[#allocation2 + $0x18] sm:$0xc0] %v5616_v5  ;;  %1739 = vst [vmem:[#allocation2 + $0x18] sm:$0x3f] %v1732_v11  ;;  %v3882_v9 = vld [vmem:[%s8179_s1 + $0x398] sm:$0xff] }
 0x101   :  { %5176 = vmatprep.mubr.msk.f32.mxu1 %vm5617_vm2, %v5616_v5  ;;  %4515 = vmatprep.subr.mxu0 %v3892_v17  ;;  %v3898_v12 = vld [vmem:[%s8179_s1 + $0x418] sm:$0xff]  ;;  %v3864_v17 = vld [vmem:[%s8179_s1 + $0x308] sm:$0xff] }
 0x102   :  { %4516 = vmatpush3.msra.mxu0 %v3876_v18  ;;  %v3896_v18 = vld [vmem:[%s8179_s1 + $0x408] sm:$0xff] }
 0x103   :  { %4517 = vmatprep.subr.mxu0 %v3891_v19  ;;  %v3879_v19 = vld [vmem:[%s8179_s1 + $0x380] sm:$0xff] }
 0x104   :  { %4518 = vmatpush3.msra.mxu0 %v3875_v20  ;;  %v3863_v20 = vld [vmem:[%s8179_s1 + $0x300] sm:$0xff] }
 0x105   :  { %4519 = vmatprep.subr.mxu0 %v3890_v21  ;;  %v3895_v21 = vld [vmem:[%s8179_s1 + $0x400] sm:$0xff] }
 0x106   :  { %4520 = vmatpush3.msra.mxu0 %v3874_v22  ;;  %v3948_v22 = vld [vmem:[%s8179_s1 + $0x578] sm:$0xff] }
 0x107   :  { %4521 = vmatprep.subr.mxu0 %v3889_v23  ;;  %v3860_v23 = vld [vmem:[%s8181_s3 + $0x1] ss:$0 sm:$0xff] }
 0x108   :  { %4522 = vmatpush3.msra.mxu0 %v3873_v24 }
 0x109   :  { %4523 = vmatprep.subr.mxu0 %v3888_v25  ;;  %v3862_v25 = vld [vmem:[%s8182_s4 + $0x1] ss:$0 sm:$0xff] }
 0x10a   :  { %4524 = vmatpush3.msra.mxu0 %v3872_v26 }
 0x10b   :  { %4525 = vmatprep.subr.mxu0 %v3887_v27 }
 0x10c   :  { %4526 = vmatpush3.msra.mxu0 %v3871_v57  ;;  %v3941_v57 = vld [vmem:[%s8179_s1 + $0x540] sm:$0xff] }
 0x10d   :  { %4527 = vmatprep.subr.mxu0 %v3886_v59  ;;  %v3957_v59 = vld [vmem:[%s8179_s1 + $0x5c0] sm:$0xff] }
 0x10e   :  { %4528 = vmatpush3.msra.mxu0 %v3870_v60  ;;  %v3940_v60 = vld [vmem:[%s8179_s1 + $0x538] sm:$0xff] }
 0x10f   :  { %4529 = vmatprep.subr.mxu0 %v3885_v62  ;;  %v3956_v62 = vld [vmem:[%s8179_s1 + $0x5b8] sm:$0xff] }
 0x110   :  { %4530 = vmatpush3.msra.mxu0 %v3869_v63  ;;  %v3939_v63 = vld [vmem:[%s8179_s1 + $0x530] sm:$0xff] }
 0x111   :  { %4531 = vmatprep.subr.mxu0 %v3884_v1  ;;  %v3955_v1 = vld [vmem:[%s8179_s1 + $0x5b0] sm:$0xff] }
 0x112   :  { %4532 = vmatpush3.msra.mxu0 %v3868_v2  ;;  %v3938_v2 = vld [vmem:[%s8179_s1 + $0x528] sm:$0xff] }
 0x113   :  { %4533 = vmatprep.subr.mxu0 %v3883_v4  ;;  %v3954_v4 = vld [vmem:[%s8179_s1 + $0x5a8] sm:$0xff] }
 0x114   :  { %4534 = vmatpush3.msra.mxu0 %v3867_v6  ;;  %v3937_v6 = vld [vmem:[%s8179_s1 + $0x520] sm:$0xff] }
 0x115   :  { %4535 = vmatprep.subr.mxu0 %v3882_v9  ;;  %v3953_v9 = vld [vmem:[%s8179_s1 + $0x5a0] sm:$0xff] }
 0x116   :  { %4536 = vmatpush3.msra.mxu0 %v3866_v10  ;;  %v3936_v10 = vld [vmem:[%s8179_s1 + $0x518] sm:$0xff] }
 0x117   :  { %4537 = vmatprep.subr.mxu0 %v3881_v13  ;;  %v3952_v13 = vld [vmem:[%s8179_s1 + $0x598] sm:$0xff] }
 0x118   :  { %4538 = vmatpush3.msra.mxu0 %v3865_v14  ;;  %v3935_v14 = vld [vmem:[%s8179_s1 + $0x510] sm:$0xff] }
 0x119   :  { %4539 = vmatprep.subr.mxu0 %v3880_v16  ;;  %v3951_v16 = vld [vmem:[%s8179_s1 + $0x590] sm:$0xff] }
 0x11a   :  { %4540 = vmatpush3.msra.mxu0 %v3864_v17  ;;  %v3934_v17 = vld [vmem:[%s8179_s1 + $0x508] sm:$0xff] }
 0x11b   :  { %4541 = vmatprep.subr.mxu0 %v3879_v19  ;;  %v3950_v19 = vld [vmem:[%s8179_s1 + $0x588] sm:$0xff] }
 0x11c   :  { %4542 = vmatpush3.msra.mxu0 %v3863_v20  ;;  %v3933_v20 = vld [vmem:[%s8179_s1 + $0x500] sm:$0xff] }
 0x11d   :  { %4563 = vmatprep.subr.mxu0 %v3948_v22  ;;  %v3949_v22 = vld [vmem:[%s8179_s1 + $0x580] sm:$0xff] }
 0x1bc   :  { %v4484_v33 = vpop.f32.mrf.mxu0 }
 0x1be   :  { %v4485_v34 = vpop.f32.mrf.mxu0 }
 0x1bf   :  { %v4486_v37 = vadd.f32 %v4485_v34, %v4484_v33  ;;  %v3932_v33 = vld [vmem:[%s8179_s1 + $0x4f8] sm:$0xff] }
 0x1c0   :  { %v4487_v36 = vpop.f32.mrf.mxu0  ;;  %v5171_v38 = vpop.f32.mrf.mxu1  ;;  %v3964_v34 = vld [vmem:[%s8179_s1 + $0x5f8] sm:$0xff] }
 0x1c1   :  { %v469_v45 = vadd.f32 %v4486_v37, %v3857_v39  ;;  %v3947_v37 = vld [vmem:[%s8179_s1 + $0x570] sm:$0xff] }
 0x1c2   :  { %v4488_v40 = vpop.f32.mrf.mxu0  ;;  %v543_v46 = vpop.f32.mrf.mxu1 }
 0x1c3   :  { %v4489_v42 = vadd.f32 %v4488_v40, %v4487_v36  ;;  %v544_v48 = vadd.f32 %v543_v46, %v469_v45  ;;  %v3946_v40 = vld [vmem:[%s8179_s1 + $0x568] sm:$0xff]  ;;  %v3929_v45 = vld [vmem:[%s8179_s1 + $0x4e0] sm:$0xff] }
 0x1c4   :  { %v3961_v46 = vld [vmem:[%s8179_s1 + $0x5e0] sm:$0xff] }
 0x1c5   :  { %v474_v44 = vadd.f32 %v4489_v42, %v3857_v39  ;;  %v3963_v39 = vld [vmem:[%s8179_s1 + $0x5f0] sm:$0xff]  ;;  %v3962_v42 = vld [vmem:[%s8179_s1 + $0x5e8] sm:$0xff] }
 0x1c7   :  { %v549_v47 = vadd.f32 %v5171_v38, %v474_v44  ;;  %v3931_v38 = vld [vmem:[%s8179_s1 + $0x4f0] sm:$0xff]  ;;  %v3945_v44 = vld [vmem:[%s8179_s1 + $0x560] sm:$0xff] }
 0x1c9   :  { %5173 = vmatpush3.msra.mxu1 %v549_v47  ;;  %v3944_v47 = vld [vmem:[%s8179_s1 + $0x558] sm:$0xff] }
 0x1ca   :  { %5174 = vmatprep.subr.mxu1 %v5616_v5 }
 0x1cb   :  { %5175 = vmatpush3.msra.mxu1 %v544_v48  ;;  %v3928_v48 = vld [vmem:[%s8179_s1 + $0x4d8] sm:$0xff] }
 0x1cc   :  { %5177 = vmatmul.mubr.msk.f32.vlgmr.msra.gmra.mxu1 %vm552_vm4, %v6086_v49  ;;  %5179 = vmatprep.subr.mxu1 %v5616_v5 }
 0x1cd   :  { %5180 = vmatpush3.msra.mxu1 %v3910_v50  ;;  %5211 = vmatprep.mubr.msk.f32.mxu1 %vm5617_vm2, %v5616_v5  ;;  %v3960_v50 = vld [vmem:[%s8179_s1 + $0x5d8] sm:$0xff] }
 0x1ce   :  { %5181 = vmatprep.subr.mxu1 %v5616_v5 }
 0x1cf   :  { %5182 = vmatpush3.msra.mxu1 %v3909_v51  ;;  %v3943_v51 = vld [vmem:[%s8179_s1 + $0x550] sm:$0xff] }
 0x1d0   :  { %5183 = vmatprep.subr.mxu1 %v5616_v5 }
 0x1d1   :  { %5184 = vmatpush3.msra.mxu1 %v3908_v52  ;;  %v3927_v52 = vld [vmem:[%s8179_s1 + $0x4d0] sm:$0xff] }
 0x1d2   :  { %5185 = vmatprep.subr.mxu1 %v5616_v5 }
 0x1d3   :  { %5186 = vmatpush3.msra.mxu1 %v3907_v53  ;;  %v3959_v53 = vld [vmem:[%s8179_s1 + $0x5d0] sm:$0xff] }
 0x1d4   :  { %5187 = vmatprep.subr.mxu1 %v5616_v5 }
 0x1d5   :  { %5188 = vmatpush3.msra.mxu1 %v3906_v54  ;;  %v3942_v54 = vld [vmem:[%s8179_s1 + $0x548] sm:$0xff] }
 0x1d6   :  { %5189 = vmatprep.subr.mxu1 %v5616_v5 }
 0x1d7   :  { %5190 = vmatpush3.msra.mxu1 %v3905_v55  ;;  %v3926_v55 = vld [vmem:[%s8179_s1 + $0x4c8] sm:$0xff] }
 0x1d8   :  { %5191 = vmatprep.subr.mxu1 %v5616_v5 }
 0x1d9   :  { %5192 = vmatpush3.msra.mxu1 %v3904_v56  ;;  %v3958_v56 = vld [vmem:[%s8179_s1 + $0x5c8] sm:$0xff] }
 0x1da   :  { %5193 = vmatprep.subr.mxu1 %v5616_v5 }
 0x1db   :  { %5194 = vmatpush3.msra.mxu1 %v3903_v58  ;;  %v3925_v58 = vld [vmem:[%s8179_s1 + $0x4c0] sm:$0xff] }
 0x1dc   :  { %5195 = vmatprep.subr.mxu1 %v5616_v5 }
 0x1dd   :  { %5196 = vmatpush3.msra.mxu1 %v3902_v61  ;;  %v3924_v61 = vld [vmem:[%s8179_s1 + $0x4b8] sm:$0xff] }
 0x1de   :  { %5197 = vmatprep.subr.mxu1 %v5616_v5 }
 0x1df   :  { %5198 = vmatpush3.msra.mxu1 %v3901_v0  ;;  %v3923_v0 = vld [vmem:[%s8179_s1 + $0x4b0] sm:$0xff] }
 0x1e0   :  { %5199 = vmatprep.subr.mxu1 %v5616_v5 }
 0x1e1   :  { %5200 = vmatpush3.msra.mxu1 %v3900_v3  ;;  %v3922_v3 = vld [vmem:[%s8179_s1 + $0x4a8] sm:$0xff] }
 0x1e2   :  { %5201 = vmatprep.subr.mxu1 %v5616_v5 }
 0x1e3   :  { %5202 = vmatpush3.msra.mxu1 %v3899_v8  ;;  %v3921_v8 = vld [vmem:[%s8179_s1 + $0x4a0] sm:$0xff] }
 0x1e4   :  { %5203 = vmatprep.subr.mxu1 %v5616_v5 }
 0x1e5   :  { %5204 = vmatpush3.msra.mxu1 %v3898_v12  ;;  %v3920_v12 = vld [vmem:[%s8179_s1 + $0x498] sm:$0xff] }
 0x1e6   :  { %5205 = vmatprep.subr.mxu1 %v5616_v5 }
 0x1e7   :  { %5206 = vmatpush3.msra.mxu1 %v3897_v15  ;;  %v3919_v15 = vld [vmem:[%s8179_s1 + $0x490] sm:$0xff] }
 0x1e8   :  { %5207 = vmatprep.subr.mxu1 %v5616_v5 }
 0x1e9   :  { %5208 = vmatpush3.msra.mxu1 %v3896_v18  ;;  %v3918_v18 = vld [vmem:[%s8179_s1 + $0x488] sm:$0xff] }
 0x1ea   :  { %5209 = vmatprep.subr.mxu1 %v5616_v5 }
 0x1eb   :  { %5210 = vmatpush3.msra.mxu1 %v3895_v21  ;;  %v3917_v21 = vld [vmem:[%s8179_s1 + $0x480] sm:$0xff] }
 0x1ec   :  { %5214 = vmatprep.subr.mxu1 %v5616_v5 }
 0x28c   :  { %v622_v24 = vpop.f32.mrf.mxu1 }
 0x28d   :  { %v634_v26 = vmul.f32 %v3860_v23, %v622_v24 }
 0x28e   :  { %v5178_v27 = vpop.f32.mrf.mxu1 }
 0x28f   :  { %v643_v28 = vadd.f32 %v3862_v25, %v634_v26  ;;  %v3912_v25 = vld [vmem:[%s8180_s2 + $0x2] ss:$0 sm:$0xff] }
 0x291   :  { %v644_v30 = vmax.f32 %v643_v28, 0.0 }
 0x293   :  { %v648_v31 = vrot.slane %v644_v30, 6  ;;  %v653_v32 = vrot.slane %v644_v30, 2  ;;  %781 = vmatprep.mubr.f32.mxu0 %v644_v30 }
 0x295   :  { %650 = vst [vmem:[#allocation2 + $0x10] sm:$0xfc] %v648_v31  ;;  %656 = vst [vmem:[#allocation2 + $0x28] sm:$0x3f] %v653_v32  ;;  %v3914_v31 = vld [vmem:[%s8181_s3 + $0x2] ss:$0 sm:$0xff] }
 0x29c   :  { %v657_v35 = vld [vmem:[#allocation2 + $0x10] sm:$0xff]  ;;  %v659_v36 = vld [vmem:[#allocation2 + $0x28] sm:$0xff] }
 0x29d   :  { %876 = vst [vmem:[#allocation2 + $0x10] sm:$0x3] %v5616_v5  ;;  %782 = vmatmul.mubr.f32.vlgmr.msra.gmra.mxu0 %v657_v35  ;;  %5212 = vmatmul.mubr.f32.vlgmr.msra.gmra.mxu1 %v659_v36  ;;  %877 = vst [vmem:[#allocation2 + $0x28] sm:$0xc0] %v5616_v5 }
 0x29e   :  { %4564 = vmatpush3.msra.mxu0 %v3932_v33  ;;  %5215 = vmatpush3.msra.mxu1 %v3964_v34  ;;  %v3916_v33 = vld [vmem:[%s8182_s4 + $0x2] ss:$0 sm:$0xff] }
 0x29f   :  { %4565 = vmatprep.subr.mxu0 %v3947_v37  ;;  %5216 = vmatprep.subr.mxu1 %v5616_v5 }
 0x2a0   :  { %4566 = vmatpush3.msra.mxu0 %v3931_v38  ;;  %5217 = vmatpush3.msra.mxu1 %v3963_v39 }
 0x2a1   :  { %4567 = vmatprep.subr.mxu0 %v3946_v40  ;;  %5218 = vmatprep.subr.mxu1 %v5616_v5 }
 0x2a2   :  { %4568 = vmatpush3.msra.mxu0 %v3930_v41  ;;  %5219 = vmatpush3.msra.mxu1 %v3962_v42  ;;  %v4019_v41 = vld [vmem:[%s8179_s1 + $0x778] sm:$0xff]  ;;  %v4018_v42 = vld [vmem:[%s8179_s1 + $0x770] sm:$0xff] }
 0x2a3   :  { %4569 = vmatprep.subr.mxu0 %v3945_v44  ;;  %5220 = vmatprep.subr.mxu1 %v5616_v5  ;;  %v4017_v44 = vld [vmem:[%s8179_s1 + $0x768] sm:$0xff] }
 0x2a4   :  { %5246 = vmatprep.mubr.msk.f32.mxu1 %vm5617_vm2, %v5616_v5  ;;  %4570 = vmatpush3.msra.mxu0 %v3929_v45  ;;  %v4016_v45 = vld [vmem:[%s8179_s1 + $0x760] sm:$0xff] }
 0x2a5   :  { %5221 = vmatpush3.msra.mxu1 %v3961_v46  ;;  %4571 = vmatprep.subr.mxu0 %v3944_v47  ;;  %v4015_v46 = vld [vmem:[%s8179_s1 + $0x758] sm:$0xff]  ;;  %v4014_v47 = vld [vmem:[%s8179_s1 + $0x750] sm:$0xff] }
 0x2a6   :  { %5222 = vmatprep.subr.mxu1 %v5616_v5  ;;  %4572 = vmatpush3.msra.mxu0 %v3928_v48 }
 0x2a7   :  { %5223 = vmatpush3.msra.mxu1 %v3960_v50  ;;  %4573 = vmatprep.subr.mxu0 %v3943_v51  ;;  %v3966_v51 = vld [vmem:[%s8180_s2 + $0x3] ss:$0 sm:$0xff] }
 0x2a8   :  { %5224 = vmatprep.subr.mxu1 %v5616_v5  ;;  %4574 = vmatpush3.msra.mxu0 %v3927_v52 }
 0x2a9   :  { %5225 = vmatpush3.msra.mxu1 %v3959_v53  ;;  %4575 = vmatprep.subr.mxu0 %v3942_v54 }
 0x2aa   :  { %5226 = vmatprep.subr.mxu1 %v5616_v5  ;;  %4576 = vmatpush3.msra.mxu0 %v3926_v55 }
 0x2ab   :  { %5227 = vmatpush3.msra.mxu1 %v3958_v56  ;;  %4577 = vmatprep.subr.mxu0 %v3941_v57  ;;  %v4003_v57 = vld [vmem:[%s8179_s1 + $0x6f8] sm:$0xff] }
 0x2ac   :  { %5228 = vmatprep.subr.mxu1 %v5616_v5  ;;  %4578 = vmatpush3.msra.mxu0 %v3925_v58  ;;  %v3987_v58 = vld [vmem:[%s8179_s1 + $0x678] sm:$0xff] }
 0x2ad   :  { %5229 = vmatpush3.msra.mxu1 %v3957_v59  ;;  %4579 = vmatprep.subr.mxu0 %v3940_v60  ;;  %v4002_v59 = vld [vmem:[%s8179_s1 + $0x6f0] sm:$0xff] }
 0x2ae   :  { %5230 = vmatprep.subr.mxu1 %v5616_v5  ;;  %4580 = vmatpush3.msra.mxu0 %v3924_v61  ;;  %v3986_v60 = vld [vmem:[%s8179_s1 + $0x670] sm:$0xff]  ;;  %v4001_v61 = vld [vmem:[%s8179_s1 + $0x6e8] sm:$0xff] }
 0x2af   :  { %5231 = vmatpush3.msra.mxu1 %v3956_v62  ;;  %4581 = vmatprep.subr.mxu0 %v3939_v63  ;;  %v3985_v62 = vld [vmem:[%s8179_s1 + $0x668] sm:$0xff]  ;;  %v4000_v63 = vld [vmem:[%s8179_s1 + $0x6e0] sm:$0xff] }
 0x2b0   :  { %5232 = vmatprep.subr.mxu1 %v5616_v5  ;;  %4582 = vmatpush3.msra.mxu0 %v3923_v0  ;;  %v3984_v0 = vld [vmem:[%s8179_s1 + $0x660] sm:$0xff] }
 0x2b1   :  { %5233 = vmatpush3.msra.mxu1 %v3955_v1  ;;  %4583 = vmatprep.subr.mxu0 %v3938_v2  ;;  %v3999_v1 = vld [vmem:[%s8179_s1 + $0x6d8] sm:$0xff] }
 0x2b2   :  { %5234 = vmatprep.subr.mxu1 %v5616_v5  ;;  %4584 = vmatpush3.msra.mxu0 %v3922_v3  ;;  %v3983_v2 = vld [vmem:[%s8179_s1 + $0x658] sm:$0xff]  ;;  %v3998_v3 = vld [vmem:[%s8179_s1 + $0x6d0] sm:$0xff] }
 0x2b3   :  { %5235 = vmatpush3.msra.mxu1 %v3954_v4  ;;  %4585 = vmatprep.subr.mxu0 %v3937_v6  ;;  %v3982_v4 = vld [vmem:[%s8179_s1 + $0x650] sm:$0xff]  ;;  %v3997_v6 = vld [vmem:[%s8179_s1 + $0x6c8] sm:$0xff] }
 0x2b4   :  { %5236 = vmatprep.subr.mxu1 %v5616_v5  ;;  %4586 = vmatpush3.msra.mxu0 %v3921_v8  ;;  %v3981_v8 = vld [vmem:[%s8179_s1 + $0x648] sm:$0xff] }
 0x2b5   :  { %5237 = vmatpush3.msra.mxu1 %v3953_v9  ;;  %4587 = vmatprep.subr.mxu0 %v3936_v10  ;;  %v3996_v9 = vld [vmem:[%s8179_s1 + $0x6c0] sm:$0xff] }
 0x2b6   :  { %5238 = vmatprep.subr.mxu1 %v5616_v5  ;;  %4588 = vmatpush3.msra.mxu0 %v3920_v12  ;;  %v3980_v10 = vld [vmem:[%s8179_s1 + $0x640] sm:$0xff]  ;;  %v3995_v12 = vld [vmem:[%s8179_s1 + $0x6b8] sm:$0xff] }
 0x2b7   :  { %5239 = vmatpush3.msra.mxu1 %v3952_v13  ;;  %4589 = vmatprep.subr.mxu0 %v3935_v14  ;;  %v3979_v13 = vld [vmem:[%s8179_s1 + $0x638] sm:$0xff]  ;;  %v4013_v14 = vld [vmem:[%s8179_s1 + $0x748] sm:$0xff] }
 0x2b8   :  { %5240 = vmatprep.subr.mxu1 %v5616_v5  ;;  %4590 = vmatpush3.msra.mxu0 %v3919_v15  ;;  %v3994_v15 = vld [vmem:[%s8179_s1 + $0x6b0] sm:$0xff] }
 0x2b9   :  { %5241 = vmatpush3.msra.mxu1 %v3951_v16  ;;  %4591 = vmatprep.subr.mxu0 %v3934_v17  ;;  %v3978_v16 = vld [vmem:[%s8179_s1 + $0x630] sm:$0xff]  ;;  %v4012_v17 = vld [vmem:[%s8179_s1 + $0x740] sm:$0xff] }
 0x2ba   :  { %5242 = vmatprep.subr.mxu1 %v5616_v5  ;;  %4592 = vmatpush3.msra.mxu0 %v3918_v18  ;;  %v3993_v18 = vld [vmem:[%s8179_s1 + $0x6a8] sm:$0xff] }
 0x2bb   :  { %5243 = vmatpush3.msra.mxu1 %v3950_v19  ;;  %4593 = vmatprep.subr.mxu0 %v3933_v20  ;;  %v3977_v19 = vld [vmem:[%s8179_s1 + $0x628] sm:$0xff]  ;;  %v4011_v20 = vld [vmem:[%s8179_s1 + $0x738] sm:$0xff] }
 0x2bc   :  { %5244 = vmatprep.subr.mxu1 %v5616_v5  ;;  %4594 = vmatpush3.msra.mxu0 %v3917_v21  ;;  %v3992_v21 = vld [vmem:[%s8179_s1 + $0x6a0] sm:$0xff] }
 0x2bd   :  { %5245 = vmatpush3.msra.mxu1 %v3949_v22  ;;  %5249 = vmatprep.subr.mxu0 %v5616_v5  ;;  %v3976_v22 = vld [vmem:[%s8179_s1 + $0x620] sm:$0xff] }
 0x2be   :  { %5254 = vmatprep.subr.mxu1 %v5616_v5 }
 0x35d   :  { %v4543_v23 = vpop.f32.mrf.mxu0  ;;  %v853_v24 = vpop.f32.mrf.mxu1 }
 0x35f   :  { %v4544_v26 = vpop.f32.mrf.mxu0  ;;  %v5213_v27 = vpop.f32.mrf.mxu1 }
 0x360   :  { %v4545_v28 = vadd.f32 %v4544_v26, %v4543_v23  ;;  %v4010_v23 = vld [vmem:[%s8179_s1 + $0x730] sm:$0xff]  ;;  %v4009_v26 = vld [vmem:[%s8179_s1 + $0x728] sm:$0xff] }
 0x361   :  { %v3990_v27 = vld [vmem:[%s8179_s1 + $0x690] sm:$0xff] }
 0x362   :  { %v784_v30 = vadd.f32 %v4545_v28, %v3912_v25  ;;  %v3975_v25 = vld [vmem:[%s8179_s1 + $0x618] sm:$0xff]  ;;  %v3974_v28 = vld [vmem:[%s8179_s1 + $0x610] sm:$0xff] }
 0x364   :  { %v854_v32 = vadd.f32 %v853_v24, %v784_v30  ;;  %v3991_v24 = vld [vmem:[%s8179_s1 + $0x698] sm:$0xff]  ;;  %v4008_v30 = vld [vmem:[%s8179_s1 + $0x720] sm:$0xff] }
 0x366   :  { %v865_v34 = vmul.f32 %v3914_v31, %v854_v32  ;;  %v3989_v31 = vld [vmem:[%s8179_s1 + $0x688] sm:$0xff] }
 0x367   :  { %v3973_v32 = vld [vmem:[%s8179_s1 + $0x608] sm:$0xff] }
 0x368   :  { %v874_v35 = vadd.f32 %v3916_v33, %v865_v34  ;;  %v4007_v33 = vld [vmem:[%s8179_s1 + $0x718] sm:$0xff]  ;;  %v3988_v34 = vld [vmem:[%s8179_s1 + $0x680] sm:$0xff] }
 0x36a   :  { %v875_v36 = vmax.f32 %v874_v35, 0.0  ;;  %v3972_v35 = vld [vmem:[%s8179_s1 + $0x600] sm:$0xff] }
 0x36c   :  { %v879_v37 = vrot.slane %v875_v36, 6  ;;  %883 = vst [vmem:[#allocation2 + $0x40] sm:$0xff] %v875_v36  ;;  %v884_v38 = vrot.slane %v875_v36, 2  ;;  %1012 = vmatprep.mubr.f32.mxu0 %v875_v36  ;;  %v4006_v36 = vld [vmem:[%s8179_s1 + $0x710] sm:$0xff] }
 0x36e   :  { %881 = vst [vmem:[#allocation2 + $0x10] sm:$0xfc] %v879_v37  ;;  %887 = vst [vmem:[#allocation2 + $0x28] sm:$0x3f] %v884_v38  ;;  %v4005_v38 = vld [vmem:[%s8179_s1 + $0x708] sm:$0xff] }
 0x375   :  { %v888_v39 = vld [vmem:[#allocation2 + $0x10] sm:$0xff]  ;;  %v890_v40 = vld [vmem:[#allocation2 + $0x28] sm:$0xff] }
 0x376   :  { %1180 = vst [vmem:[#allocation2 + $0x10] sm:$0xf] %v5616_v5  ;;  %1013 = vmatmul.mubr.f32.vlgmr.msra.gmra.mxu0 %v888_v39  ;;  %5247 = vmatmul.mubr.f32.vlgmr.msra.gmra.mxu1 %v890_v40  ;;  %1181 = vst [vmem:[#allocation2 + $0x28] sm:$0xf] %v5616_v5  ;;  %v4004_v39 = vld [vmem:[%s8179_s1 + $0x700] sm:$0xff] }
 0x377   :  { %5251 = vmatprep.mubr.msk.f32.mxu0 %vm5617_vm2, %v5616_v5  ;;  %5286 = vmatprep.mubr.msk.f32.mxu1 %vm5617_vm2, %v5616_v5 }
 0x378   :  { %5255 = vmatpush3.msra.mxu1 %v4019_v41  ;;  %v4057_v41 = vld [vmem:[%s8179_s1 + $0x878] sm:$0xff] }
 0x379   :  { %5256 = vmatprep.subr.mxu1 %v5616_v5 }
 0x37a   :  { %5257 = vmatpush3.msra.mxu1 %v4018_v42  ;;  %v4073_v42 = vld [vmem:[%s8179_s1 + $0x8f8] sm:$0xff] }
 0x37b   :  { %5258 = vmatprep.subr.mxu1 %v5616_v5 }
 0x37c   :  { %5259 = vmatpush3.msra.mxu1 %v4017_v44  ;;  %v4072_v44 = vld [vmem:[%s8179_s1 + $0x8f0] sm:$0xff] }
 0x37d   :  { %5260 = vmatprep.subr.mxu1 %v5616_v5  ;;  %v1188_v37 = vld [vmem:[#allocation2 + $0x10] sm:$0xf]  ;;  %v1190_v40 = vld [vmem:[#allocation2 + $0x28] sm:$0xf] }
 0x37e   :  { %5261 = vmatpush3.msra.mxu1 %v4016_v45  ;;  %1407 = vst [vmem:[#allocation2 + $0x10] sm:$0xf] %v5616_v5  ;;  %1408 = vst [vmem:[#allocation2 + $0x28] sm:$0xf] %v5616_v5  ;;  %v3969_v45 = vld [vmem:[%s8181_s3 + $0x3] ss:$0 sm:$0xff] }
 0x37f   :  { %5262 = vmatprep.subr.mxu1 %v5616_v5 }
 0x380   :  { %5263 = vmatpush3.msra.mxu1 %v4015_v46 }
 0x381   :  { %5264 = vmatprep.subr.mxu1 %v5616_v5 }
 0x382   :  { %5265 = vmatpush3.msra.mxu1 %v4014_v47  ;;  %v3971_v47 = vld [vmem:[%s8182_s4 + $0x3] ss:$0 sm:$0xff] }
 0x383   :  { %5266 = vmatprep.subr.mxu1 %v5616_v5 }
 0x384   :  { %5267 = vmatpush3.msra.mxu1 %v4013_v14  ;;  %v4068_v14 = vld [vmem:[%s8179_s1 + $0x8d0] sm:$0xff] }
 0x385   :  { %5268 = vmatprep.subr.mxu1 %v5616_v5 }
 0x386   :  { %5269 = vmatpush3.msra.mxu1 %v4012_v17  ;;  %v4067_v17 = vld [vmem:[%s8179_s1 + $0x8c8] sm:$0xff] }
 0x387   :  { %5270 = vmatprep.subr.mxu1 %v5616_v5 }
 0x388   :  { %5271 = vmatpush3.msra.mxu1 %v4011_v20  ;;  %v4066_v20 = vld [vmem:[%s8179_s1 + $0x8c0] sm:$0xff] }
 0x389   :  { %5272 = vmatprep.subr.mxu1 %v5616_v5 }
 0x38a   :  { %5273 = vmatpush3.msra.mxu1 %v4010_v23  ;;  %v4065_v23 = vld [vmem:[%s8179_s1 + $0x8b8] sm:$0xff] }
 0x38b   :  { %5274 = vmatprep.subr.mxu1 %v5616_v5 }
 0x38c   :  { %5275 = vmatpush3.msra.mxu1 %v4009_v26  ;;  %v4064_v26 = vld [vmem:[%s8179_s1 + $0x8b0] sm:$0xff] }
 0x38d   :  { %5276 = vmatprep.subr.mxu1 %v5616_v5 }
 0x38e   :  { %5277 = vmatpush3.msra.mxu1 %v4008_v30  ;;  %v4063_v30 = vld [vmem:[%s8179_s1 + $0x8a8] sm:$0xff] }
 0x38f   :  { %5278 = vmatprep.subr.mxu1 %v5616_v5 }
 0x390   :  { %5279 = vmatpush3.msra.mxu1 %v4007_v33  ;;  %v4062_v33 = vld [vmem:[%s8179_s1 + $0x8a0] sm:$0xff] }
 0x391   :  { %5280 = vmatprep.subr.mxu1 %v5616_v5 }
 0x392   :  { %5281 = vmatpush3.msra.mxu1 %v4006_v36  ;;  %v4061_v36 = vld [vmem:[%s8179_s1 + $0x898] sm:$0xff] }
 0x393   :  { %5282 = vmatprep.subr.mxu1 %v5616_v5 }
 0x394   :  { %5283 = vmatpush3.msra.mxu1 %v4005_v38  ;;  %v4026_v38 = vld [vmem:[%s8179_s1 + $0x780] sm:$0xff] }
 0x395   :  { %5284 = vmatprep.subr.mxu1 %v5616_v5 }
 0x396   :  { %5285 = vmatpush3.msra.mxu1 %v4004_v39  ;;  %v4060_v39 = vld [vmem:[%s8179_s1 + $0x890] sm:$0xff] }
 0x397   :  { %5287 = vmatmul.mubr.f32.vlgmr.msra.gmra.mxu1 %v1190_v40  ;;  %5289 = vmatprep.subr.mxu1 %v5616_v5  ;;  %v1415_v40 = vld [vmem:[#allocation2 + $0x10] sm:$0xf] }
 0x398   :  { %5321 = vmatprep.mubr.msk.f32.mxu1 %vm5617_vm2, %v5616_v5  ;;  %5290 = vmatpush3.msra.mxu1 %v4073_v42  ;;  %1716 = vst [vmem:[#allocation2 + $0x10] sm:$0x3] %v5616_v5  ;;  %v4058_v42 = vld [vmem:[%s8179_s1 + $0x880] sm:$0xff] }
 0x399   :  { %5291 = vmatprep.subr.mxu1 %v5616_v5 }
 0x39a   :  { %5292 = vmatpush3.msra.mxu1 %v4072_v44  ;;  %v1417_v44 = vld [vmem:[#allocation2 + $0x28] sm:$0xf] }
 0x39b   :  { %5293 = vmatprep.subr.mxu1 %v5616_v5 }
 0x436   :  { %v4595_v48 = vpop.f32.mrf.mxu0  ;;  %v1084_v50 = vpop.f32.mrf.mxu1 }
 0x438   :  { %v4596_v52 = vpop.f32.mrf.mxu0  ;;  %v5248_v53 = vpop.f32.mrf.mxu1 }
 0x439   :  { %v4597_v54 = vadd.f32 %v4596_v52, %v4595_v48 }
 0x43b   :  { %v1015_v55 = vadd.f32 %v4597_v54, %v3966_v51 }
 0x43d   :  { %v1085_v56 = vadd.f32 %v1084_v50, %v1015_v55  ;;  %v4041_v55 = vld [vmem:[%s8179_s1 + $0x7f8] sm:$0xff] }
 0x43f   :  { %5250 = vmatpush3.msra.mxu0 %v1085_v56  ;;  %v4056_v56 = vld [vmem:[%s8179_s1 + $0x870] sm:$0xff] }
 0x440   :  { %5252 = vmatmul.mubr.msk.f32.vlgmr.msra.gmra.mxu0 %vm1088_vm5, %v6086_v49  ;;  %4617 = vmatprep.subr.mxu0 %v4003_v57  ;;  %v4040_v57 = vld [vmem:[%s8179_s1 + $0x7f0] sm:$0xff] }
 0x441   :  { %4618 = vmatpush3.msra.mxu0 %v3987_v58  ;;  %v4055_v58 = vld [vmem:[%s8179_s1 + $0x868] sm:$0xff] }
 0x442   :  { %4619 = vmatprep.subr.mxu0 %v4002_v59  ;;  %v4039_v59 = vld [vmem:[%s8179_s1 + $0x7e8] sm:$0xff] }
 0x443   :  { %4620 = vmatpush3.msra.mxu0 %v3986_v60  ;;  %v4054_v60 = vld [vmem:[%s8179_s1 + $0x860] sm:$0xff] }
 0x444   :  { %4621 = vmatprep.subr.mxu0 %v4001_v61  ;;  %v4038_v61 = vld [vmem:[%s8179_s1 + $0x7e0] sm:$0xff] }
 0x445   :  { %4622 = vmatpush3.msra.mxu0 %v3985_v62  ;;  %v4053_v62 = vld [vmem:[%s8179_s1 + $0x858] sm:$0xff] }
 0x446   :  { %4623 = vmatprep.subr.mxu0 %v4000_v63  ;;  %v4037_v63 = vld [vmem:[%s8179_s1 + $0x7d8] sm:$0xff] }
 0x447   :  { %4624 = vmatpush3.msra.mxu0 %v3984_v0  ;;  %v4071_v0 = vld [vmem:[%s8179_s1 + $0x8e8] sm:$0xff] }
 0x448   :  { %4625 = vmatprep.subr.mxu0 %v3999_v1  ;;  %5294 = vmatpush3.msra.mxu1 %v4071_v0  ;;  %v4052_v1 = vld [vmem:[%s8179_s1 + $0x850] sm:$0xff] }
 0x449   :  { %4626 = vmatpush3.msra.mxu0 %v3983_v2  ;;  %5295 = vmatprep.subr.mxu1 %v5616_v5  ;;  %v4036_v2 = vld [vmem:[%s8179_s1 + $0x7d0] sm:$0xff] }
 0x44a   :  { %4627 = vmatprep.subr.mxu0 %v3998_v3  ;;  %v4070_v3 = vld [vmem:[%s8179_s1 + $0x8e0] sm:$0xff]  ;;  %v1776_v0 = vld [vmem:[%s8179_s1 + $0xf0] sm:$0xff] }
 0x44b   :  { %4628 = vmatpush3.msra.mxu0 %v3982_v4  ;;  %5296 = vmatpush3.msra.mxu1 %v4070_v3  ;;  %v4051_v4 = vld [vmem:[%s8179_s1 + $0x848] sm:$0xff] }
 0x44c   :  { %4629 = vmatprep.subr.mxu0 %v3997_v6  ;;  %5297 = vmatprep.subr.mxu1 %v5616_v5 }
 0x44d   :  { %4630 = vmatpush3.msra.mxu0 %v3981_v8  ;;  %v4035_v8 = vld [vmem:[%s8179_s1 + $0x7c8] sm:$0xff] }
 0x44e   :  { %4631 = vmatprep.subr.mxu0 %v3996_v9  ;;  %v4069_v9 = vld [vmem:[%s8179_s1 + $0x8d8] sm:$0xff] }
 0x44f   :  { %4632 = vmatpush3.msra.mxu0 %v3980_v10  ;;  %5298 = vmatpush3.msra.mxu1 %v4069_v9  ;;  %v4050_v10 = vld [vmem:[%s8179_s1 + $0x840] sm:$0xff] }
 0x450   :  { %4633 = vmatprep.subr.mxu0 %v3995_v12  ;;  %5299 = vmatprep.subr.mxu1 %v5616_v5  ;;  %v1758_v9 = vld [vmem:[%s8179_s1 + $0x60] sm:$0xff] }
 0x451   :  { %4634 = vmatpush3.msra.mxu0 %v3979_v13  ;;  %v4034_v13 = vld [vmem:[%s8179_s1 + $0x7c0] sm:$0xff]  ;;  %5300 = vmatpush3.msra.mxu1 %v4068_v14  ;;  %v1756_v14 = vld [vmem:[%s8179_s1 + $0x50] sm:$0xff] }
 0x452   :  { %4635 = vmatprep.subr.mxu0 %v3994_v15  ;;  %v4049_v15 = vld [vmem:[%s8179_s1 + $0x838] sm:$0xff]  ;;  %5301 = vmatprep.subr.mxu1 %v5616_v5 }
 0x453   :  { %4636 = vmatpush3.msra.mxu0 %v3978_v16  ;;  %v4033_v16 = vld [vmem:[%s8179_s1 + $0x7b8] sm:$0xff]  ;;  %5302 = vmatpush3.msra.mxu1 %v4067_v17  ;;  %v1770_v17 = vld [vmem:[%s8179_s1 + $0xc0] sm:$0xff] }
 0x454   :  { %4637 = vmatprep.subr.mxu0 %v3993_v18  ;;  %v4048_v18 = vld [vmem:[%s8179_s1 + $0x830] sm:$0xff]  ;;  %5303 = vmatprep.subr.mxu1 %v5616_v5 }
 0x455   :  { %4638 = vmatpush3.msra.mxu0 %v3977_v19  ;;  %v4032_v19 = vld [vmem:[%s8179_s1 + $0x7b0] sm:$0xff]  ;;  %5304 = vmatpush3.msra.mxu1 %v4066_v20  ;;  %v1753_v20 = vld [vmem:[%s8179_s1 + $0x38] sm:$0xff] }
 0x456   :  { %4639 = vmatprep.subr.mxu0 %v3992_v21  ;;  %v4047_v21 = vld [vmem:[%s8179_s1 + $0x828] sm:$0xff]  ;;  %5305 = vmatprep.subr.mxu1 %v5616_v5 }
 0x457   :  { %4640 = vmatpush3.msra.mxu0 %v3976_v22  ;;  %v6624_v6 = vpop.f32.mrf.mxu1  ;;  %v4031_v22 = vld [vmem:[%s8179_s1 + $0x7a8] sm:$0xff]  ;;  %5306 = vmatpush3.msra.mxu1 %v4065_v23 }
 0x458   :  { %4641 = vmatprep.subr.mxu0 %v3991_v24  ;;  %v4046_v24 = vld [vmem:[%s8179_s1 + $0x820] sm:$0xff]  ;;  %5307 = vmatprep.subr.mxu1 %v5616_v5  ;;  %v1767_v23 = vld [vmem:[%s8179_s1 + $0xa8] sm:$0xff] }
 0x459   :  { %4642 = vmatpush3.msra.mxu0 %v3975_v25  ;;  %v5288_v12 = vpop.f32.mrf.mxu1  ;;  %v4030_v25 = vld [vmem:[%s8179_s1 + $0x7a0] sm:$0xff]  ;;  %5308 = vmatpush3.msra.mxu1 %v4064_v26 }
 0x45a   :  { %4643 = vmatprep.subr.mxu0 %v3990_v27  ;;  %v4045_v27 = vld [vmem:[%s8179_s1 + $0x818] sm:$0xff]  ;;  %5309 = vmatprep.subr.mxu1 %v5616_v5  ;;  %v1750_v26 = vld [vmem:[%s8179_s1 + $0x20] sm:$0xff] }
 0x45b   :  { %4644 = vmatpush3.msra.mxu0 %v3974_v28  ;;  %v4029_v28 = vld [vmem:[%s8179_s1 + $0x798] sm:$0xff]  ;;  %5310 = vmatpush3.msra.mxu1 %v4063_v30  ;;  %v1764_v30 = vld [vmem:[%s8179_s1 + $0x90] sm:$0xff] }
 0x45c   :  { %4645 = vmatprep.subr.mxu0 %v3989_v31  ;;  %v4044_v31 = vld [vmem:[%s8179_s1 + $0x810] sm:$0xff]  ;;  %5311 = vmatprep.subr.mxu1 %v5616_v5  ;;  %v1757_v12 = vld [vmem:[%s8179_s1 + $0x58] sm:$0xff] }
 0x45d   :  { %4646 = vmatpush3.msra.mxu0 %v3973_v32  ;;  %v4028_v32 = vld [vmem:[%s8179_s1 + $0x790] sm:$0xff]  ;;  %5312 = vmatpush3.msra.mxu1 %v4062_v33  ;;  %v1747_v33 = vld [vmem:[%s8179_s1 + $0x8] sm:$0xff] }
 0x45e   :  { %4647 = vmatprep.subr.mxu0 %v3988_v34  ;;  %v4043_v34 = vld [vmem:[%s8179_s1 + $0x808] sm:$0xff]  ;;  %5313 = vmatprep.subr.mxu1 %v5616_v5 }
 0x45f   :  { %4648 = vmatpush3.msra.mxu0 %v3972_v35  ;;  %v4027_v35 = vld [vmem:[%s8179_s1 + $0x788] sm:$0xff]  ;;  %5314 = vmatpush3.msra.mxu1 %v4061_v36 }
 0x460   :  { %4669 = vmatprep.subr.mxu0 %v4057_v41  ;;  %5315 = vmatprep.subr.mxu1 %v5616_v5  ;;  %v4059_v41 = vld [vmem:[%s8179_s1 + $0x888] sm:$0xff] }
 0x461   :  { %5316 = vmatpush3.msra.mxu1 %v4060_v39  ;;  %v1745_v39 = vld [vmem:[#allocation2 + $0x18] sm:$0xff] }
 0x462   :  { %5317 = vmatprep.subr.mxu1 %v5616_v5  ;;  %1972 = vst [vmem:[#allocation2 + $0x18] sm:$0xc0] %v5616_v5 }
 0x463   :  { %5318 = vmatpush3.msra.mxu1 %v4059_v41 }
 0x464   :  { %5319 = vmatprep.subr.mxu1 %v5616_v5 }
 0x465   :  { %5320 = vmatpush3.msra.mxu1 %v4058_v42  ;;  %v4075_v42 = vld [vmem:[%s8180_s2 + $0x5] ss:$0 sm:$0xff] }
 0x466   :  { %5322 = vmatmul.mubr.f32.vlgmr.msra.gmra.mxu1 %v1417_v44 }
 0x500   :  { %v1157_v46 = vpop.f32.mrf.mxu0 }
 0x501   :  { %v1169_v48 = vmul.f32 %v3969_v45, %v1157_v46  ;;  %v6736_v45 = vld [vmem:[%s8178_s0 + $0x10] sm:$0xff] }
 0x502   :  { %v5253_v50 = vpop.f32.mrf.mxu0  ;;  %1865 = vmatprep.mubr.f32.mxu1 %v6736_v45 }
 0x503   :  { %v1178_v51 = vadd.f32 %v3971_v47, %v1169_v48  ;;  %v4021_v48 = vld [vmem:[%s8180_s2 + $0x4] ss:$0 sm:$0xff] }
 0x505   :  { %v1179_v52 = vmax.f32 %v1178_v51, 0.0 }
 0x507   :  { %v1183_v53 = vrot.slane %v1179_v52, 4  ;;  %1186 = vst [vmem:[#allocation2 + $0x40] sm:$0xf] %v1179_v52  ;;  %v4023_v52 = vld [vmem:[%s8181_s3 + $0x4] ss:$0 sm:$0xff] }
 0x509   :  { %1185 = vst [vmem:[#allocation2 + $0x10] sm:$0xf0] %v1183_v53 }
 0x50e   :  { %v1189_v54 = vld [vmem:[#allocation2 + $0x40] sm:$0xf] }
 0x50f   :  { %1312 = vmatprep.mubr.f32.mxu0 %v1189_v54  ;;  %v4025_v54 = vld [vmem:[%s8182_s4 + $0x4] ss:$0 sm:$0xff] }
 0x510   :  { %1313 = vmatmul.mubr.f32.vlgmr.msra.gmra.mxu0 %v1188_v37  ;;  %v4042_v37 = vld [vmem:[%s8179_s1 + $0x800] sm:$0xff] }
 0x511   :  { %4670 = vmatpush3.msra.mxu0 %v4041_v55 }
 0x512   :  { %4671 = vmatprep.subr.mxu0 %v4056_v56 }
 0x513   :  { %4672 = vmatpush3.msra.mxu0 %v4040_v57 }
 0x514   :  { %4673 = vmatprep.subr.mxu0 %v4055_v58  ;;  %v1720_v58 = vrot.slane %v6736_v45, 6 }
 0x515   :  { %4674 = vmatpush3.msra.mxu0 %v4039_v59 }
 0x516   :  { %4675 = vmatprep.subr.mxu0 %v4054_v60  ;;  %v1731_v60 = vrot.slane %v6736_v45, 2  ;;  %v1788_v45 = vld [vmem:[%s8179_s1 + $0x150] sm:$0xff] }
 0x517   :  { %4676 = vmatpush3.msra.mxu0 %v4038_v61 }
 0x518   :  { %4677 = vmatprep.subr.mxu0 %v4053_v62  ;;  %v1777_v62 = vld [vmem:[%s8179_s1 + $0xf8] sm:$0xff] }
 0x519   :  { %4678 = vmatpush3.msra.mxu0 %v4037_v63  ;;  %4723 = vmatprep.subr.mxu1 %v1777_v62  ;;  %v1761_v63 = vld [vmem:[%s8179_s1 + $0x78] sm:$0xff] }
 0x51a   :  { %4679 = vmatprep.subr.mxu0 %v4052_v1  ;;  %4724 = vmatpush3.msra.mxu1 %v1761_v63  ;;  %v1760_v1 = vld [vmem:[%s8179_s1 + $0x70] sm:$0xff]  ;;  %v4118_v62 = vld [vmem:[%s8179_s1 + $0x278] sm:$0xff] }
 0x51b   :  { %4680 = vmatpush3.msra.mxu0 %v4036_v2  ;;  %4725 = vmatprep.subr.mxu1 %v1776_v0  ;;  %v1775_v2 = vld [vmem:[%s8179_s1 + $0xe8] sm:$0xff]  ;;  %v4102_v63 = vld [vmem:[%s8179_s1 + $0x1f8] sm:$0xff]  ;;  %v4117_v0 = vld [vmem:[%s8179_s1 + $0x270] sm:$0xff] }
 0x51c   :  { %4681 = vmatprep.subr.mxu0 %v4051_v4  ;;  %4726 = vmatpush3.msra.mxu1 %v1760_v1  ;;  %v1759_v4 = vld [vmem:[%s8179_s1 + $0x68] sm:$0xff]  ;;  %v4134_v1 = vld [vmem:[%s8179_s1 + $0x2f8] sm:$0xff] }
 0x51d   :  { %4682 = vmatpush3.msra.mxu0 %v4035_v8  ;;  %4727 = vmatprep.subr.mxu1 %v1775_v2  ;;  %v4101_v2 = vld [vmem:[%s8179_s1 + $0x1f0] sm:$0xff] }
 0x51e   :  { %4683 = vmatprep.subr.mxu0 %v4050_v10  ;;  %4728 = vmatpush3.msra.mxu1 %v1759_v4  ;;  %v1773_v10 = vld [vmem:[%s8179_s1 + $0xd8] sm:$0xff]  ;;  %v4133_v4 = vld [vmem:[%s8179_s1 + $0x2f0] sm:$0xff] }
 0x51f   :  { %4684 = vmatpush3.msra.mxu0 %v4034_v13  ;;  %v1772_v13 = vld [vmem:[%s8179_s1 + $0xd0] sm:$0xff] }
 0x520   :  { %4685 = vmatprep.subr.mxu0 %v4049_v15  ;;  %v1771_v15 = vld [vmem:[%s8179_s1 + $0xc8] sm:$0xff] }
 0x521   :  { %4686 = vmatpush3.msra.mxu0 %v4033_v16  ;;  %v1755_v16 = vld [vmem:[%s8179_s1 + $0x48] sm:$0xff] }
 0x522   :  { %4687 = vmatprep.subr.mxu0 %v4048_v18  ;;  %v1754_v18 = vld [vmem:[%s8179_s1 + $0x40] sm:$0xff] }
 0x523   :  { %4688 = vmatpush3.msra.mxu0 %v4032_v19  ;;  %v1769_v19 = vld [vmem:[%s8179_s1 + $0xb8] sm:$0xff] }
 0x524   :  { %4689 = vmatprep.subr.mxu0 %v4047_v21  ;;  %v1768_v21 = vld [vmem:[%s8179_s1 + $0xb0] sm:$0xff] }
 0x525   :  { %4690 = vmatpush3.msra.mxu0 %v4031_v22  ;;  %v1752_v22 = vld [vmem:[%s8179_s1 + $0x30] sm:$0xff] }
 0x526   :  { %4691 = vmatprep.subr.mxu0 %v4046_v24  ;;  %v6770_v3 = vpop.f32.mrf.mxu1  ;;  %v1751_v24 = vld [vmem:[%s8179_s1 + $0x28] sm:$0xff] }
 0x527   :  { %4692 = vmatpush3.msra.mxu0 %v4030_v25  ;;  %v1766_v25 = vld [vmem:[%s8179_s1 + $0xa0] sm:$0xff] }
 0x528   :  { %4693 = vmatprep.subr.mxu0 %v4045_v27  ;;  %v5323_v8 = vpop.f32.mrf.mxu1  ;;  %v1765_v27 = vld [vmem:[%s8179_s1 + $0x98] sm:$0xff] }
 0x529   :  { %4694 = vmatpush3.msra.mxu0 %v4029_v28  ;;  %v1749_v28 = vld [vmem:[%s8179_s1 + $0x18] sm:$0xff]  ;;  %v4132_v8 = vld [vmem:[%s8179_s1 + $0x2e8] sm:$0xff] }
 0x52a   :  { %4695 = vmatprep.subr.mxu0 %v4044_v31  ;;  %v1748_v31 = vld [vmem:[%s8179_s1 + $0x10] sm:$0xff] }
 0x52b   :  { %4696 = vmatpush3.msra.mxu0 %v4028_v32  ;;  %v1763_v32 = vld [vmem:[%s8179_s1 + $0x88] sm:$0xff] }
 0x52c   :  { %4697 = vmatprep.subr.mxu0 %v4043_v34  ;;  %v1762_v34 = vld [vmem:[%s8179_s1 + $0x80] sm:$0xff] }
 0x52d   :  { %4698 = vmatpush3.msra.mxu0 %v4027_v35  ;;  %v1746_v35 = vld [vmem:[%s8179_s1] sm:$0xff] }
 0x52e   :  { %4699 = vmatprep.subr.mxu0 %v4042_v37  ;;  %v1722_v37 = vsel %vm62_vm1, %v1720_v58, %v1721_v7  ;;  %v1793_v7 = vld [vmem:[%s8179_s1 + $0x178] sm:$0xff] }
 0x52f   :  { %4700 = vmatpush3.msra.mxu0 %v4026_v38  ;;  %v1744_v38 = vld [vmem:[#allocation2 + $0x20] sm:$0xff] }
 0x530   :  { %5324 = vmatprep.subr.mxu0 %v5616_v5 }
 0x5d0   :  { %v4649_v46 = vpop.f32.mrf.mxu0 }
 0x5d2   :  { %v4650_v47 = vpop.f32.mrf.mxu0 }
 0x5d3   :  { %v4651_v50 = vadd.f32 %v4650_v47, %v4649_v46 }
 0x5d5   :  { %v1315_v51 = vadd.f32 %v4651_v50, %v4021_v48  ;;  %v1733_v48 = vsel %vm74_vm0, %v1731_v60, %v1732_v11  ;;  %v1792_v50 = vld [vmem:[%s8179_s1 + $0x170] sm:$0xff]  ;;  %v1789_v11 = vld [vmem:[%s8179_s1 + $0x158] sm:$0xff]  ;;  %v1779_v60 = vld [vmem:[%s8179_s1 + $0x108] sm:$0xff] }
 0x5d7   :  { %v1385_v53 = vadd.f32 %v6624_v6, %v1315_v51  ;;  %v1774_v6 = vld [vmem:[%s8179_s1 + $0xe0] sm:$0xff]  ;;  %v1791_v51 = vld [vmem:[%s8179_s1 + $0x168] sm:$0xff] }
 0x5d8   :  { %4729 = vmatprep.subr.mxu1 %v1774_v6  ;;  %v4100_v6 = vld [vmem:[%s8179_s1 + $0x1e8] sm:$0xff] }
 0x5d9   :  { %v1396_v55 = vmul.f32 %v4023_v52, %v1385_v53  ;;  %4730 = vmatpush3.msra.mxu1 %v1758_v9  ;;  %v1787_v52 = vld [vmem:[%s8179_s1 + $0x148] sm:$0xff]  ;;  %v1786_v53 = vld [vmem:[%s8179_s1 + $0x140] sm:$0xff] }
 0x5da   :  { %4731 = vmatprep.subr.mxu1 %v1773_v10  ;;  %v4115_v9 = vld [vmem:[%s8179_s1 + $0x260] sm:$0xff] }
 0x5db   :  { %v1405_v56 = vadd.f32 %v4025_v54, %v1396_v55  ;;  %4732 = vmatpush3.msra.mxu1 %v1757_v12  ;;  %v1785_v54 = vld [vmem:[%s8179_s1 + $0x138] sm:$0xff]  ;;  %v1784_v55 = vld [vmem:[%s8179_s1 + $0x130] sm:$0xff]  ;;  %v4099_v10 = vld [vmem:[%s8179_s1 + $0x1e0] sm:$0xff] }
 0x5dc   :  { %4733 = vmatprep.subr.mxu1 %v1772_v13  ;;  %v4131_v12 = vld [vmem:[%s8179_s1 + $0x2e0] sm:$0xff]  ;;  %v4114_v13 = vld [vmem:[%s8179_s1 + $0x258] sm:$0xff] }
 0x5dd   :  { %v1406_v57 = vmax.f32 %v1405_v56, 0.0  ;;  %4734 = vmatpush3.msra.mxu1 %v1756_v14  ;;  %v1783_v56 = vld [vmem:[%s8179_s1 + $0x128] sm:$0xff]  ;;  %v4098_v14 = vld [vmem:[%s8179_s1 + $0x1d8] sm:$0xff] }
 0x5de   :  { %4735 = vmatprep.subr.mxu1 %v1771_v15  ;;  %v4130_v15 = vld [vmem:[%s8179_s1 + $0x2d8] sm:$0xff] }
 0x5df   :  { %v1410_v59 = vrot.slane %v1406_v57, 4  ;;  %1413 = vst [vmem:[#allocation2 + $0x40] sm:$0xf] %v1406_v57  ;;  %4736 = vmatpush3.msra.mxu1 %v1755_v16  ;;  %v1782_v57 = vld [vmem:[%s8179_s1 + $0x120] sm:$0xff]  ;;  %v4113_v16 = vld [vmem:[%s8179_s1 + $0x250] sm:$0xff] }
 0x5e0   :  { %4737 = vmatprep.subr.mxu1 %v1770_v17  ;;  %v4129_v17 = vld [vmem:[%s8179_s1 + $0x2d0] sm:$0xff] }
 0x5e1   :  { %1412 = vst [vmem:[#allocation2 + $0x10] sm:$0xf0] %v1410_v59  ;;  %4738 = vmatpush3.msra.mxu1 %v1754_v18  ;;  %v1780_v59 = vld [vmem:[%s8179_s1 + $0x110] sm:$0xff]  ;;  %v4128_v18 = vld [vmem:[%s8179_s1 + $0x2c8] sm:$0xff] }
 0x5e2   :  { %1726 = vst [vmem:[#allocation2 + $0x10] sm:$0xfc] %v1720_v58  ;;  %4739 = vmatprep.subr.mxu1 %v1769_v19  ;;  %v1781_v58 = vld [vmem:[%s8179_s1 + $0x118] sm:$0xff]  ;;  %v4097_v19 = vld [vmem:[%s8179_s1 + $0x1d0] sm:$0xff] }
 0x5e3   :  { %4740 = vmatpush3.msra.mxu1 %v1753_v20  ;;  %v4112_v20 = vld [vmem:[%s8179_s1 + $0x248] sm:$0xff] }
 0x5e4   :  { %4741 = vmatprep.subr.mxu1 %v1768_v21  ;;  %v4127_v21 = vld [vmem:[%s8179_s1 + $0x2c0] sm:$0xff] }
 0x5e5   :  { %4742 = vmatpush3.msra.mxu1 %v1752_v22  ;;  %v4096_v22 = vld [vmem:[%s8179_s1 + $0x1c8] sm:$0xff] }
 0x5e6   :  { %v1416_v61 = vld [vmem:[#allocation2 + $0x40] sm:$0xf]  ;;  %4743 = vmatprep.subr.mxu1 %v1767_v23 }
 0x5e7   :  { %1539 = vmatprep.mubr.f32.mxu0 %v1416_v61  ;;  %4744 = vmatpush3.msra.mxu1 %v1751_v24  ;;  %v1778_v61 = vld [vmem:[%s8179_s1 + $0x100] sm:$0xff]  ;;  %v4126_v24 = vld [vmem:[%s8179_s1 + $0x2b8] sm:$0xff] }
 0x5e8   :  { %1540 = vmatmul.mubr.f32.vlgmr.msra.gmra.mxu0 %v1415_v40  ;;  %4745 = vmatprep.subr.mxu1 %v1766_v25  ;;  %v4111_v23 = vld [vmem:[%s8179_s1 + $0x240] sm:$0xff] }
 0x5e9   :  { %5326 = vmatprep.mubr.msk.f32.mxu0 %vm5617_vm2, %v5616_v5  ;;  %4746 = vmatpush3.msra.mxu1 %v1750_v26  ;;  %v1740_v36 = vld [vmem:[#allocation2 + $0x10] sm:$0xff]  ;;  %v4095_v25 = vld [vmem:[%s8179_s1 + $0x1c0] sm:$0xff]  ;;  %v4110_v26 = vld [vmem:[%s8179_s1 + $0x238] sm:$0xff] }
 0x5ea   :  { %4747 = vmatprep.subr.mxu1 %v1765_v27  ;;  %1971 = vst [vmem:[#allocation2 + $0x10] sm:$0x3] %v5616_v5  ;;  %v4125_v27 = vld [vmem:[%s8179_s1 + $0x2b0] sm:$0xff] }
 0x5eb   :  { %4748 = vmatpush3.msra.mxu1 %v1749_v28  ;;  %v4094_v28 = vld [vmem:[%s8179_s1 + $0x1b8] sm:$0xff] }
 0x5ec   :  { %4749 = vmatprep.subr.mxu1 %v1764_v30  ;;  %v4109_v30 = vld [vmem:[%s8179_s1 + $0x230] sm:$0xff] }
 0x5ed   :  { %4750 = vmatpush3.msra.mxu1 %v1748_v31  ;;  %v4124_v31 = vld [vmem:[%s8179_s1 + $0x2a8] sm:$0xff] }
 0x5ee   :  { %4751 = vmatprep.subr.mxu1 %v1763_v32  ;;  %v4093_v32 = vld [vmem:[%s8179_s1 + $0x1b0] sm:$0xff] }
 0x5ef   :  { %4752 = vmatpush3.msra.mxu1 %v1747_v33  ;;  %v4108_v33 = vld [vmem:[%s8179_s1 + $0x228] sm:$0xff] }
 0x5f0   :  { %4753 = vmatprep.subr.mxu1 %v1762_v34  ;;  %v4123_v34 = vld [vmem:[%s8179_s1 + $0x2a0] sm:$0xff] }
 0x5f1   :  { %4754 = vmatpush3.msra.mxu1 %v1746_v35  ;;  %v4092_v35 = vld [vmem:[%s8179_s1 + $0x1a8] sm:$0xff] }
 0x5f2   :  { %1866 = vmatmul.mubr.f32.vlgmr.msra.gmra.mxu1 %v1740_v36  ;;  %4779 = vmatprep.subr.mxu1 %v4118_v62  ;;  %v4107_v36 = vld [vmem:[%s8179_s1 + $0x220] sm:$0xff] }
 0x5f3   :  { %1870 = vmatprep.mubr.f32.mxu1 %v1744_v38  ;;  %4780 = vmatpush3.msra.mxu1 %v4102_v63  ;;  %v4091_v38 = vld [vmem:[%s8179_s1 + $0x1a0] sm:$0xff] }
 0x5f4   :  { %4781 = vmatprep.subr.mxu1 %v4117_v0 }
 0x5f5   :  { %4782 = vmatpush3.msra.mxu1 %v4101_v2 }
 0x5f6   :  { %1871 = vmatmul.mubr.f32.gmra.mxu1 %v1722_v37  ;;  %v4122_v37 = vld [vmem:[%s8179_s1 + $0x298] sm:$0xff] }
 0x6a8   :  { %v4701_v40 = vpop.f32.mrf.mxu0 }
 0x6aa   :  { %v4702_v41 = vpop.f32.mrf.mxu0 }
 0x6ab   :  { %v4703_v44 = vadd.f32 %v4702_v41, %v4701_v40  ;;  %v4121_v40 = vld [vmem:[%s8179_s1 + $0x290] sm:$0xff]  ;;  %v4090_v41 = vld [vmem:[%s8179_s1 + $0x198] sm:$0xff] }
 0x6ad   :  { %v1542_v46 = vadd.f32 %v4703_v44, %v4075_v42  ;;  %v4105_v42 = vld [vmem:[%s8179_s1 + $0x210] sm:$0xff] }
 0x6ae   :  { %v4089_v44 = vld [vmem:[%s8179_s1 + $0x190] sm:$0xff] }
 0x6af   :  { %v1612_v47 = vadd.f32 %v6770_v3, %v1542_v46  ;;  %v4116_v3 = vld [vmem:[%s8179_s1 + $0x268] sm:$0xff] }
 0x6b0   :  { %4783 = vmatprep.subr.mxu1 %v4116_v3  ;;  %v4104_v46 = vld [vmem:[%s8179_s1 + $0x208] sm:$0xff] }
 0x6b1   :  { %5325 = vmatpush3.msk.msra.mxu0 %vm1618_vm6, %v1612_v47  ;;  %4784 = vmatpush3.msra.mxu1 %v4100_v6  ;;  %v4088_v47 = vld [vmem:[%s8179_s1 + $0x188] sm:$0xff] }
 0x6b2   :  { %5327 = vmatmul.mubr.msk.f32.vlgmr.msra.gmra.mxu0 %vm1615_vm7, %v6086_v49  ;;  %5329 = vmatprep.subr.mxu0 %v1793_v7 }
 0x6b3   :  { %5330 = vmatpush3.msra.mxu0 %v1793_v7  ;;  %5361 = vmatprep.mubr.f32.mxu0 %v1733_v48  ;;  %v4120_v7 = vld [vmem:[%s8179_s1 + $0x288] sm:$0xff]  ;;  %v4103_v48 = vld [vmem:[%s8179_s1 + $0x200] sm:$0xff] }
 0x6b4   :  { %5331 = vmatprep.subr.mxu0 %v1792_v50  ;;  %4785 = vmatprep.subr.mxu1 %v4115_v9 }
 0x6b5   :  { %5332 = vmatpush3.msra.mxu0 %v1792_v50  ;;  %4786 = vmatpush3.msra.mxu1 %v4099_v10  ;;  %v4119_v50 = vld [vmem:[%s8179_s1 + $0x280] sm:$0xff] }
 0x6b6   :  { %5333 = vmatprep.subr.mxu0 %v1791_v51  ;;  %4787 = vmatprep.subr.mxu1 %v4114_v13 }
 0x6b7   :  { %5334 = vmatpush3.msra.mxu0 %v1791_v51  ;;  %4788 = vmatpush3.msra.mxu1 %v4098_v14  ;;  %v4087_v51 = vld [vmem:[%s8179_s1 + $0x180] sm:$0xff] }
 0x6b8   :  { %5335 = vmatprep.subr.mxu0 %v1790_v43  ;;  %4789 = vmatprep.subr.mxu1 %v4113_v16 }
 0x6b9   :  { %5336 = vmatpush3.msra.mxu0 %v1790_v43  ;;  %4790 = vmatpush3.msra.mxu1 %v4097_v19  ;;  %v4079_v43 = vld [vmem:[%s8181_s3 + $0x5] ss:$0 sm:$0xff] }
 0x6ba   :  { %5337 = vmatprep.subr.mxu0 %v1789_v11  ;;  %4791 = vmatprep.subr.mxu1 %v4112_v20 }
 0x6bb   :  { %5338 = vmatpush3.msra.mxu0 %v1789_v11  ;;  %4792 = vmatpush3.msra.mxu1 %v4096_v22 }
 0x6bc   :  { %5339 = vmatprep.subr.mxu0 %v1788_v45  ;;  %4793 = vmatprep.subr.mxu1 %v4111_v23 }
 0x6bd   :  { %5340 = vmatpush3.msra.mxu0 %v1788_v45  ;;  %4794 = vmatpush3.msra.mxu1 %v4095_v25  ;;  %v4081_v45 = vld [vmem:[%s8182_s4 + $0x5] ss:$0 sm:$0xff]  ;;  %v4157_v25 = vld [vmem:[%s8179_s1 + $0x378] sm:$0xff] }
 0x6be   :  { %5341 = vmatprep.subr.mxu0 %v1787_v52  ;;  %4795 = vmatprep.subr.mxu1 %v4110_v26  ;;  %v4172_v26 = vld [vmem:[%s8179_s1 + $0x3f0] sm:$0xff] }
 0x6bf   :  { %5342 = vmatpush3.msra.mxu0 %v1787_v52  ;;  %4796 = vmatpush3.msra.mxu1 %v4094_v28  ;;  %v4171_v28 = vld [vmem:[%s8179_s1 + $0x3e8] sm:$0xff] }
 0x6c0   :  { %5343 = vmatprep.subr.mxu0 %v1786_v53  ;;  %4797 = vmatprep.subr.mxu1 %v4109_v30  ;;  %v4155_v30 = vld [vmem:[%s8179_s1 + $0x368] sm:$0xff] }
 0x6c1   :  { %5344 = vmatpush3.msra.mxu0 %v1786_v53  ;;  %4798 = vmatpush3.msra.mxu1 %v4093_v32  ;;  %v4154_v32 = vld [vmem:[%s8179_s1 + $0x360] sm:$0xff] }
 0x6c2   :  { %5345 = vmatprep.subr.mxu0 %v1785_v54  ;;  %4799 = vmatprep.subr.mxu1 %v4108_v33  ;;  %v4169_v33 = vld [vmem:[%s8179_s1 + $0x3d8] sm:$0xff] }
 0x6c3   :  { %5346 = vmatpush3.msra.mxu0 %v1785_v54  ;;  %4800 = vmatpush3.msra.mxu1 %v4092_v35  ;;  %v4168_v35 = vld [vmem:[%s8179_s1 + $0x3d0] sm:$0xff] }
 0x6c4   :  { %5347 = vmatprep.subr.mxu0 %v1784_v55  ;;  %4801 = vmatprep.subr.mxu1 %v4107_v36  ;;  %v4152_v36 = vld [vmem:[%s8179_s1 + $0x350] sm:$0xff] }
 0x6c5   :  { %5348 = vmatpush3.msra.mxu0 %v1784_v55  ;;  %4802 = vmatpush3.msra.mxu1 %v4091_v38  ;;  %v4151_v38 = vld [vmem:[%s8179_s1 + $0x348] sm:$0xff] }
 0x6c6   :  { %5349 = vmatprep.subr.mxu0 %v1783_v56 }
 0x6c7   :  { %5350 = vmatpush3.msra.mxu0 %v1783_v56  ;;  %v4755_v56 = vpop.f32.mrf.mxu1 }
 0x6c8   :  { %5351 = vmatprep.subr.mxu0 %v1782_v57 }
 0x6c9   :  { %5352 = vmatpush3.msra.mxu0 %v1782_v57  ;;  %v4756_v57 = vpop.f32.mrf.mxu1 }
 0x6ca   :  { %5353 = vmatprep.subr.mxu0 %v1781_v58  ;;  %v4757_v62 = vadd.f32 %v4756_v57, %v4755_v56  ;;  %v4185_v56 = vld [vmem:[%s8179_s1 + $0x458] sm:$0xff]  ;;  %v4184_v57 = vld [vmem:[%s8179_s1 + $0x450] sm:$0xff] }
 0x6cb   :  { %5354 = vmatpush3.msra.mxu0 %v1781_v58  ;;  %v4758_v58 = vpop.f32.mrf.mxu1 }
 0x6cc   :  { %5355 = vmatprep.subr.mxu0 %v1780_v59 }
 0x6cd   :  { %5356 = vmatpush3.msra.mxu0 %v1780_v59  ;;  %v4759_v59 = vpop.f32.mrf.mxu1 }
 0x6ce   :  { %5357 = vmatprep.subr.mxu0 %v1779_v60 }
 0x6cf   :  { %5358 = vmatpush3.msra.mxu0 %v1779_v60  ;;  %v4760_v60 = vadd.f32 %v4759_v59, %v4758_v58  ;;  %v4183_v58 = vld [vmem:[%s8179_s1 + $0x448] sm:$0xff]  ;;  %v4150_v59 = vld [vmem:[%s8179_s1 + $0x340] sm:$0xff] }
 0x6d0   :  { %5359 = vmatprep.subr.mxu0 %v1778_v61 }
 0x6d1   :  { %5360 = vmatpush3.msra.mxu0 %v1778_v61  ;;  %v4084_v61 = vld [vmem:[%s8180_s2] ss:$0 sm:$0xff] }
 0x6d2   :  { %5362 = vmatmul.mubr.f32.vlgmr.msra.gmra.mxu0 %v1745_v39  ;;  %5364 = vmatprep.subr.mxu0 %v4134_v1  ;;  %v4106_v39 = vld [vmem:[%s8179_s1 + $0x218] sm:$0xff]  ;;  %v1873_v63 = vadd.f32 %v4760_v60, %v4084_v61  ;;  %v1868_v3 = vadd.f32 %v4757_v62, %v4084_v61  ;;  %v4182_v60 = vld [vmem:[%s8179_s1 + $0x440] sm:$0xff] }
 0x6d3   :  { %5365 = vmatpush3.msra.mxu0 %v4134_v1  ;;  %4803 = vmatprep.subr.mxu1 %v4106_v39  ;;  %v4085_v1 = vld [vmem:[%s8181_s3] ss:$0 sm:$0xff]  ;;  %v4165_v61 = vld [vmem:[%s8179_s1 + $0x3b8] sm:$0xff] }
 0x6d4   :  { %5366 = vmatprep.subr.mxu0 %v4133_v4  ;;  %4804 = vmatpush3.msra.mxu1 %v4090_v41  ;;  %v4166_v39 = vld [vmem:[%s8179_s1 + $0x3c0] sm:$0xff]  ;;  %v4149_v62 = vld [vmem:[%s8179_s1 + $0x338] sm:$0xff] }
 0x6d5   :  { %5367 = vmatpush3.msra.mxu0 %v4133_v4  ;;  %4805 = vmatprep.subr.mxu1 %v4105_v42  ;;  %v4086_v4 = vld [vmem:[%s8182_s4] ss:$0 sm:$0xff] }
 0x6d6   :  { %5368 = vmatprep.subr.mxu0 %v4132_v8  ;;  %4806 = vmatpush3.msra.mxu1 %v4089_v44 }
 0x6d7   :  { %5369 = vmatpush3.msra.mxu0 %v4132_v8  ;;  %4807 = vmatprep.subr.mxu1 %v4104_v46  ;;  %v4136_v46 = vld [vmem:[%s8180_s2 + $0x1] ss:$0 sm:$0xff] }
 0x6d8   :  { %5370 = vmatprep.subr.mxu0 %v4131_v12  ;;  %4808 = vmatpush3.msra.mxu1 %v4088_v47 }
 0x6d9   :  { %5371 = vmatpush3.msra.mxu0 %v4131_v12  ;;  %4809 = vmatprep.subr.mxu1 %v4103_v48 }
 0x6da   :  { %5372 = vmatprep.subr.mxu0 %v4130_v15  ;;  %4810 = vmatpush3.msra.mxu1 %v4087_v51 }
 0x6db   :  { %5373 = vmatpush3.msra.mxu0 %v4130_v15 }
 0x6dc   :  { %5374 = vmatprep.subr.mxu0 %v4129_v17 }
 0x6dd   :  { %5375 = vmatpush3.msra.mxu0 %v4129_v17 }
 0x6de   :  { %5376 = vmatprep.subr.mxu0 %v4128_v18 }
 0x6df   :  { %5377 = vmatpush3.msra.mxu0 %v4128_v18 }
 0x6e0   :  { %5378 = vmatprep.subr.mxu0 %v4127_v21 }
 0x6e1   :  { %5379 = vmatpush3.msra.mxu0 %v4127_v21 }
 0x6e2   :  { %5380 = vmatprep.subr.mxu0 %v4126_v24 }
 0x6e3   :  { %5381 = vmatpush3.msra.mxu0 %v4126_v24  ;;  %v4173_v24 = vld [vmem:[%s8179_s1 + $0x3f8] sm:$0xff] }
 0x6e4   :  { %5382 = vmatprep.subr.mxu0 %v4125_v27  ;;  %4838 = vmatprep.subr.mxu1 %v4173_v24  ;;  %v4227_v24 = vld [vmem:[%s8179_s1 + $0x578] sm:$0xff] }
 0x6e5   :  { %5383 = vmatpush3.msra.mxu0 %v4125_v27  ;;  %v4156_v27 = vld [vmem:[%s8179_s1 + $0x370] sm:$0xff] }
 0x6e6   :  { %5384 = vmatprep.subr.mxu0 %v4124_v31 }
 0x6e7   :  { %5385 = vmatpush3.msra.mxu0 %v4124_v31  ;;  %v4170_v31 = vld [vmem:[%s8179_s1 + $0x3e0] sm:$0xff] }
 0x6e8   :  { %5386 = vmatprep.subr.mxu0 %v4123_v34 }
 0x6e9   :  { %5387 = vmatpush3.msra.mxu0 %v4123_v34  ;;  %v4153_v34 = vld [vmem:[%s8179_s1 + $0x358] sm:$0xff] }
 0x6ea   :  { %5388 = vmatprep.subr.mxu0 %v4122_v37 }
 0x6eb   :  { %5389 = vmatpush3.msra.mxu0 %v4122_v37  ;;  %v4167_v37 = vld [vmem:[%s8179_s1 + $0x3c8] sm:$0xff] }
 0x6ec   :  { %5390 = vmatprep.subr.mxu0 %v4121_v40 }
 0x6ed   :  { %5391 = vmatpush3.msra.mxu0 %v4121_v40 }
 0x6ee   :  { %5392 = vmatprep.subr.mxu0 %v4120_v7 }
 0x6ef   :  { %5393 = vmatpush3.msra.mxu0 %v4120_v7 }
 0x6f0   :  { %5394 = vmatprep.subr.mxu0 %v4119_v50 }
 0x6f1   :  { %5395 = vmatpush3.msra.mxu0 %v4119_v50 }
 0x6f2   :  { %5399 = vmatprep.subr.mxu0 %v5616_v5 }
 0x772   :  { %v1688_v11 = vpop.f32.mrf.mxu0 }
 0x773   :  { %v1700_v52 = vmul.f32 %v4079_v43, %v1688_v11 }
 0x774   :  { %v5328_v53 = vpop.f32.mrf.mxu0 }
 0x775   :  { %v1709_v54 = vadd.f32 %v4081_v45, %v1700_v52  ;;  %v4189_v52 = vld [vmem:[%s8179_s1 + $0x478] sm:$0xff]  ;;  %v4188_v53 = vld [vmem:[%s8179_s1 + $0x470] sm:$0xff] }
 0x777   :  { %v1710_v55 = vmax.f32 %v1709_v54, 0.0  ;;  %v4187_v54 = vld [vmem:[%s8179_s1 + $0x468] sm:$0xff] }
 0x779   :  { %1711 = vst [vmem:[#allocation3] sm:$0x1] %v1710_v55  ;;  %1712 = vst [vmem:[#allocation3 + $0x1] sm:$0x2] %v1710_v55  ;;  %v4186_v55 = vld [vmem:[%s8179_s1 + $0x460] sm:$0xff] }
 0x792   :  { %v5363_v0 = vpop.f32.mrf.mxu0 }
 0x793   :  { %v1948_v2 = vadd.f32 %v5363_v0, %v1873_v63  ;;  %v4181_v63 = vld [vmem:[%s8179_s1 + $0x438] sm:$0xff]  ;;  %v4164_v0 = vld [vmem:[%s8179_s1 + $0x3b0] sm:$0xff] }
 0x794   :  { %v1942_v6 = vpop.f32.mrf.mxu0 }
 0x795   :  { %v1959_v8 = vmul.f32 %v4085_v1, %v1948_v2  ;;  %v1943_v9 = vadd.f32 %v1942_v6, %v1868_v3  ;;  %v4180_v2 = vld [vmem:[%s8179_s1 + $0x430] sm:$0xff]  ;;  %v4163_v3 = vld [vmem:[%s8179_s1 + $0x3a8] sm:$0xff] }
 0x796   :  { %v4179_v6 = vld [vmem:[%s8179_s1 + $0x428] sm:$0xff] }
 0x797   :  { %v1968_v10 = vadd.f32 %v4086_v4, %v1959_v8  ;;  %v1958_v12 = vmul.f32 %v4085_v1, %v1943_v9  ;;  %v4148_v1 = vld [vmem:[%s8179_s1 + $0x330] sm:$0xff]  ;;  %v4162_v8 = vld [vmem:[%s8179_s1 + $0x3a0] sm:$0xff] }
 0x798   :  { %v4146_v9 = vld [vmem:[%s8179_s1 + $0x320] sm:$0xff] }
 0x799   :  { %v1970_v13 = vmax.f32 %v1968_v10, 0.0  ;;  %v1967_v14 = vadd.f32 %v4086_v4, %v1958_v12  ;;  %v4147_v4 = vld [vmem:[%s8179_s1 + $0x328] sm:$0xff]  ;;  %v4178_v10 = vld [vmem:[%s8179_s1 + $0x420] sm:$0xff]  ;;  %v4161_v12 = vld [vmem:[%s8179_s1 + $0x398] sm:$0xff] }
 0x79b   :  { %v1976_v15 = vrot.slane %v1970_v13, 6  ;;  %1985 = vst [vmem:[#allocation2 + $0x20] sm:$0xff] %v1970_v13  ;;  %v1987_v16 = vrot.slane %v1970_v13, 2  ;;  %v1969_v17 = vmax.f32 %v1967_v14, 0.0  ;;  %v4177_v14 = vld [vmem:[%s8179_s1 + $0x418] sm:$0xff] }
 0x79d   :  { %1994 = vst [vmem:[#allocation2 + $0x18] sm:$0x3f] %v1987_v16  ;;  %v1975_v18 = vrot.slane %v1969_v17, 6  ;;  %v1986_v19 = vrot.slane %v1969_v17, 2  ;;  %2120 = vmatprep.mubr.f32.mxu1 %v1969_v17  ;;  %v4176_v17 = vld [vmem:[%s8179_s1 + $0x410] sm:$0xff] }
 0x79f   :  { %v1977_v20 = vsel %vm62_vm1, %v1975_v18, %v1976_v15  ;;  %1981 = vst [vmem:[#allocation2 + $0x10] sm:$0xfc] %v1975_v18  ;;  %v1988_v21 = vsel %vm74_vm0, %v1986_v19, %v1987_v16  ;;  %v4160_v15 = vld [vmem:[%s8179_s1 + $0x390] sm:$0xff]  ;;  %v4159_v18 = vld [vmem:[%s8179_s1 + $0x388] sm:$0xff] }
 0x7a0   :  { %1993 = vst [vmem:[#allocation2 + $0x28] sm:$0xff] %v1988_v21  ;;  %5396 = vmatprep.mubr.f32.mxu0 %v1988_v21  ;;  %v4144_v16 = vld [vmem:[%s8179_s1 + $0x310] sm:$0xff]  ;;  %v4143_v19 = vld [vmem:[%s8179_s1 + $0x308] sm:$0xff]  ;;  %v4158_v21 = vld [vmem:[%s8179_s1 + $0x380] sm:$0xff] }
 0x7a1   :  { %2294 = vst [vmem:[#allocation2 + $0x28] sm:$0xc0] %v5616_v5 }
 0x7a4   :  { %v2000_v22 = vld [vmem:[#allocation2 + $0x18] sm:$0xff] }
 0x7a5   :  { %5397 = vmatmul.mubr.f32.vlgmr.msra.gmra.mxu0 %v2000_v22  ;;  %v4142_v22 = vld [vmem:[%s8179_s1 + $0x300] sm:$0xff] }
 0x7a6   :  { %v1995_v23 = vld [vmem:[#allocation2 + $0x10] sm:$0xff]  ;;  %5403 = vmatprep.mubr.msk.f32.mxu0 %vm5617_vm2, %v5616_v5 }
 0x7a7   :  { %2121 = vmatmul.mubr.f32.vlgmr.msra.gmra.mxu1 %v1995_v23  ;;  %2293 = vst [vmem:[#allocation2 + $0x10] sm:$0x3] %v5616_v5  ;;  %v4174_v23 = vld [vmem:[%s8179_s1 + $0x400] sm:$0xff] }
 0x7a8   :  { %2125 = vmatprep.mubr.f32.mxu1 %v1970_v13  ;;  %4839 = vmatpush3.msra.mxu1 %v4157_v25  ;;  %v4145_v13 = vld [vmem:[%s8179_s1 + $0x318] sm:$0xff]  ;;  %v4139_v25 = vld [vmem:[%s8181_s3 + $0x1] ss:$0 sm:$0xff] }
 0x7a9   :  { %4840 = vmatprep.subr.mxu1 %v4172_v26 }
 0x7aa   :  { %4841 = vmatpush3.msra.mxu1 %v4156_v27  ;;  %v4141_v27 = vld [vmem:[%s8182_s4 + $0x1] ss:$0 sm:$0xff] }
 0x7ab   :  { %2126 = vmatmul.mubr.f32.gmra.mxu1 %v1977_v20  ;;  %4842 = vmatprep.subr.mxu1 %v4171_v28  ;;  %v4175_v20 = vld [vmem:[%s8179_s1 + $0x408] sm:$0xff] }
 0x7ac   :  { %4843 = vmatpush3.msra.mxu1 %v4155_v30 }
 0x7ad   :  { %4844 = vmatprep.subr.mxu1 %v4170_v31 }
 0x7ae   :  { %4845 = vmatpush3.msra.mxu1 %v4154_v32 }
 0x7af   :  { %4846 = vmatprep.subr.mxu1 %v4169_v33 }
 0x7b0   :  { %4847 = vmatpush3.msra.mxu1 %v4153_v34 }
 0x7b1   :  { %4848 = vmatprep.subr.mxu1 %v4168_v35  ;;  %v4211_v35 = vld [vmem:[%s8179_s1 + $0x4f8] sm:$0xff] }
 0x7b2   :  { %4849 = vmatpush3.msra.mxu1 %v4152_v36  ;;  %v4243_v36 = vld [vmem:[%s8179_s1 + $0x5f8] sm:$0xff] }
 0x7b3   :  { %4850 = vmatprep.subr.mxu1 %v4167_v37 }
 0x7b4   :  { %4851 = vmatpush3.msra.mxu1 %v4151_v38 }
 0x7b5   :  { %4852 = vmatprep.subr.mxu1 %v4166_v39  ;;  %v4226_v39 = vld [vmem:[%s8179_s1 + $0x570] sm:$0xff] }
 0x7b6   :  { %4853 = vmatpush3.msra.mxu1 %v4150_v59  ;;  %v4219_v59 = vld [vmem:[%s8179_s1 + $0x538] sm:$0xff] }
 0x7b7   :  { %4854 = vmatprep.subr.mxu1 %v4165_v61  ;;  %v4235_v61 = vld [vmem:[%s8179_s1 + $0x5b8] sm:$0xff] }
 0x7b8   :  { %4855 = vmatpush3.msra.mxu1 %v4149_v62  ;;  %v4218_v62 = vld [vmem:[%s8179_s1 + $0x530] sm:$0xff] }
 0x7b9   :  { %4856 = vmatprep.subr.mxu1 %v4164_v0  ;;  %v4234_v0 = vld [vmem:[%s8179_s1 + $0x5b0] sm:$0xff] }
 0x7ba   :  { %4857 = vmatpush3.msra.mxu1 %v4148_v1  ;;  %v4217_v1 = vld [vmem:[%s8179_s1 + $0x528] sm:$0xff] }
 0x7bb   :  { %4858 = vmatprep.subr.mxu1 %v4163_v3  ;;  %v4233_v3 = vld [vmem:[%s8179_s1 + $0x5a8] sm:$0xff] }
 0x7bc   :  { %4859 = vmatpush3.msra.mxu1 %v4147_v4  ;;  %v4216_v4 = vld [vmem:[%s8179_s1 + $0x520] sm:$0xff] }
 0x7bd   :  { %4860 = vmatprep.subr.mxu1 %v4162_v8  ;;  %v4232_v8 = vld [vmem:[%s8179_s1 + $0x5a0] sm:$0xff] }
 0x7be   :  { %4861 = vmatpush3.msra.mxu1 %v4146_v9  ;;  %v4215_v9 = vld [vmem:[%s8179_s1 + $0x518] sm:$0xff] }
 0x7bf   :  { %4862 = vmatprep.subr.mxu1 %v4161_v12  ;;  %v4231_v12 = vld [vmem:[%s8179_s1 + $0x598] sm:$0xff] }
 0x7c0   :  { %4863 = vmatpush3.msra.mxu1 %v4145_v13  ;;  %v4214_v13 = vld [vmem:[%s8179_s1 + $0x510] sm:$0xff] }
 0x7c1   :  { %4864 = vmatprep.subr.mxu1 %v4160_v15  ;;  %v4230_v15 = vld [vmem:[%s8179_s1 + $0x590] sm:$0xff] }
 0x7c2   :  { %4865 = vmatpush3.msra.mxu1 %v4144_v16  ;;  %v4213_v16 = vld [vmem:[%s8179_s1 + $0x508] sm:$0xff] }
 0x7c3   :  { %4866 = vmatprep.subr.mxu1 %v4159_v18  ;;  %v4229_v18 = vld [vmem:[%s8179_s1 + $0x588] sm:$0xff] }
 0x7c4   :  { %4867 = vmatpush3.msra.mxu1 %v4143_v19  ;;  %v4212_v19 = vld [vmem:[%s8179_s1 + $0x500] sm:$0xff] }
 0x7c5   :  { %4868 = vmatprep.subr.mxu1 %v4158_v21  ;;  %v4228_v21 = vld [vmem:[%s8179_s1 + $0x580] sm:$0xff] }
 0x7c6   :  { %4869 = vmatpush3.msra.mxu1 %v4142_v22 }
 0x7c7   :  { %4890 = vmatprep.subr.mxu1 %v4227_v24  ;;  %v4191_v24 = vld [vmem:[%s8180_s2 + $0x2] ss:$0 sm:$0xff] }
 0x865   :  { %v5398_v48 = vpop.f32.mrf.mxu0 }
 0x867   :  { %v4811_v40 = vpop.f32.mrf.mxu1  ;;  %v2197_v11 = vpop.f32.mrf.mxu0 }
 0x869   :  { %v4812_v41 = vpop.f32.mrf.mxu1 }
 0x86a   :  { %v4813_v44 = vadd.f32 %v4812_v41, %v4811_v40  ;;  %v4210_v40 = vld [vmem:[%s8179_s1 + $0x4f0] sm:$0xff] }
 0x86b   :  { %v4814_v42 = vpop.f32.mrf.mxu1  ;;  %v4242_v41 = vld [vmem:[%s8179_s1 + $0x5f0] sm:$0xff] }
 0x86c   :  { %v2123_v50 = vadd.f32 %v4813_v44, %v4136_v46  ;;  %v4209_v44 = vld [vmem:[%s8179_s1 + $0x4e8] sm:$0xff] }
 0x86d   :  { %v4815_v47 = vpop.f32.mrf.mxu1 }
 0x86e   :  { %v4816_v7 = vadd.f32 %v4815_v47, %v4814_v42  ;;  %v2198_v45 = vadd.f32 %v2197_v11, %v2123_v50  ;;  %v4225_v42 = vld [vmem:[%s8179_s1 + $0x568] sm:$0xff]  ;;  %v4224_v47 = vld [vmem:[%s8179_s1 + $0x560] sm:$0xff]  ;;  %v4223_v50 = vld [vmem:[%s8179_s1 + $0x558] sm:$0xff] }
 0x86f   :  { %v4222_v11 = vld [vmem:[%s8179_s1 + $0x550] sm:$0xff] }
 0x870   :  { %v2128_v51 = vadd.f32 %v4816_v7, %v4136_v46  ;;  %v4241_v46 = vld [vmem:[%s8179_s1 + $0x5e8] sm:$0xff]  ;;  %v4208_v7 = vld [vmem:[%s8179_s1 + $0x4e0] sm:$0xff] }
 0x872   :  { %v2203_v43 = vadd.f32 %v5398_v48, %v2128_v51  ;;  %v4240_v48 = vld [vmem:[%s8179_s1 + $0x5e0] sm:$0xff]  ;;  %v4207_v51 = vld [vmem:[%s8179_s1 + $0x4d8] sm:$0xff] }
 0x874   :  { %5400 = vmatpush3.msra.mxu0 %v2203_v43  ;;  %v4239_v43 = vld [vmem:[%s8179_s1 + $0x5d8] sm:$0xff] }
 0x875   :  { %5401 = vmatprep.subr.mxu0 %v5616_v5 }
 0x876   :  { %5402 = vmatpush3.msra.mxu0 %v2198_v45  ;;  %v4206_v45 = vld [vmem:[%s8179_s1 + $0x4d0] sm:$0xff] }
 0x877   :  { %5404 = vmatmul.mubr.msk.f32.vlgmr.msra.gmra.mxu0 %vm552_vm4, %v6086_v49  ;;  %5406 = vmatprep.subr.mxu0 %v5616_v5 }
 0x878   :  { %5407 = vmatpush3.msra.mxu0 %v4189_v52  ;;  %5438 = vmatprep.mubr.msk.f32.mxu0 %vm5617_vm2, %v5616_v5  ;;  %v4238_v52 = vld [vmem:[%s8179_s1 + $0x5d0] sm:$0xff] }
 0x879   :  { %5408 = vmatprep.subr.mxu0 %v5616_v5 }
 0x87a   :  { %5409 = vmatpush3.msra.mxu0 %v4188_v53  ;;  %v4221_v53 = vld [vmem:[%s8179_s1 + $0x548] sm:$0xff] }
 0x87b   :  { %5410 = vmatprep.subr.mxu0 %v5616_v5 }
 0x87c   :  { %5411 = vmatpush3.msra.mxu0 %v4187_v54  ;;  %v4205_v54 = vld [vmem:[%s8179_s1 + $0x4c8] sm:$0xff] }
 0x87d   :  { %5412 = vmatprep.subr.mxu0 %v5616_v5 }
 0x87e   :  { %5413 = vmatpush3.msra.mxu0 %v4186_v55  ;;  %v4237_v55 = vld [vmem:[%s8179_s1 + $0x5c8] sm:$0xff] }
 0x87f   :  { %5414 = vmatprep.subr.mxu0 %v5616_v5 }
 0x880   :  { %5415 = vmatpush3.msra.mxu0 %v4185_v56  ;;  %v4220_v56 = vld [vmem:[%s8179_s1 + $0x540] sm:$0xff] }
 0x881   :  { %5416 = vmatprep.subr.mxu0 %v5616_v5 }
 0x882   :  { %5417 = vmatpush3.msra.mxu0 %v4184_v57  ;;  %v4204_v57 = vld [vmem:[%s8179_s1 + $0x4c0] sm:$0xff] }
 0x883   :  { %5418 = vmatprep.subr.mxu0 %v5616_v5 }
 0x884   :  { %5419 = vmatpush3.msra.mxu0 %v4183_v58  ;;  %v4236_v58 = vld [vmem:[%s8179_s1 + $0x5c0] sm:$0xff] }
 0x885   :  { %5420 = vmatprep.subr.mxu0 %v5616_v5 }
 0x886   :  { %5421 = vmatpush3.msra.mxu0 %v4182_v60  ;;  %v4203_v60 = vld [vmem:[%s8179_s1 + $0x4b8] sm:$0xff] }
 0x887   :  { %5422 = vmatprep.subr.mxu0 %v5616_v5 }
 0x888   :  { %5423 = vmatpush3.msra.mxu0 %v4181_v63  ;;  %v4202_v63 = vld [vmem:[%s8179_s1 + $0x4b0] sm:$0xff] }
 0x889   :  { %5424 = vmatprep.subr.mxu0 %v5616_v5 }
 0x88a   :  { %5425 = vmatpush3.msra.mxu0 %v4180_v2  ;;  %v4201_v2 = vld [vmem:[%s8179_s1 + $0x4a8] sm:$0xff] }
 0x88b   :  { %5426 = vmatprep.subr.mxu0 %v5616_v5 }
 0x88c   :  { %5427 = vmatpush3.msra.mxu0 %v4179_v6  ;;  %v4200_v6 = vld [vmem:[%s8179_s1 + $0x4a0] sm:$0xff] }
 0x88d   :  { %5428 = vmatprep.subr.mxu0 %v5616_v5 }
 0x88e   :  { %5429 = vmatpush3.msra.mxu0 %v4178_v10  ;;  %v4199_v10 = vld [vmem:[%s8179_s1 + $0x498] sm:$0xff] }
 0x88f   :  { %5430 = vmatprep.subr.mxu0 %v5616_v5 }
 0x890   :  { %5431 = vmatpush3.msra.mxu0 %v4177_v14  ;;  %v4198_v14 = vld [vmem:[%s8179_s1 + $0x490] sm:$0xff] }
 0x891   :  { %5432 = vmatprep.subr.mxu0 %v5616_v5 }
 0x892   :  { %5433 = vmatpush3.msra.mxu0 %v4176_v17  ;;  %v4197_v17 = vld [vmem:[%s8179_s1 + $0x488] sm:$0xff] }
 0x893   :  { %5434 = vmatprep.subr.mxu0 %v5616_v5 }
 0x894   :  { %5435 = vmatpush3.msra.mxu0 %v4175_v20  ;;  %v4196_v20 = vld [vmem:[%s8179_s1 + $0x480] sm:$0xff] }
 0x895   :  { %5436 = vmatprep.subr.mxu0 %v5616_v5 }
 0x896   :  { %5437 = vmatpush3.msra.mxu0 %v4174_v23 }
 0x897   :  { %5441 = vmatprep.subr.mxu0 %v5616_v5 }
 0x937   :  { %v2272_v26 = vpop.f32.mrf.mxu0 }
 0x938   :  { %v2283_v28 = vmul.f32 %v4139_v25, %v2272_v26 }
 0x939   :  { %v5405_v30 = vpop.f32.mrf.mxu0 }
 0x93a   :  { %v2291_v31 = vadd.f32 %v4141_v27, %v2283_v28  ;;  %v4193_v30 = vld [vmem:[%s8181_s3 + $0x2] ss:$0 sm:$0xff] }
 0x93c   :  { %v2292_v32 = vmax.f32 %v2291_v31, 0.0 }
 0x93e   :  { %v2296_v33 = vrot.slane %v2292_v32, 6  ;;  %v2301_v34 = vrot.slane %v2292_v32, 2  ;;  %2427 = vmatprep.mubr.f32.mxu1 %v2292_v32  ;;  %v4195_v32 = vld [vmem:[%s8182_s4 + $0x2] ss:$0 sm:$0xff] }
 0x940   :  { %2304 = vst [vmem:[#allocation2 + $0x28] sm:$0x3f] %v2301_v34  ;;  %2298 = vst [vmem:[#allocation2 + $0x10] sm:$0xfc] %v2296_v33 }
 0x947   :  { %v2305_v37 = vld [vmem:[#allocation2 + $0x10] sm:$0xff]  ;;  %v2307_v38 = vld [vmem:[#allocation2 + $0x28] sm:$0xff] }
 0x948   :  { %2428 = vmatmul.mubr.f32.vlgmr.msra.gmra.mxu1 %v2305_v37  ;;  %2520 = vst [vmem:[#allocation2 + $0x10] sm:$0x3] %v5616_v5  ;;  %5439 = vmatmul.mubr.f32.vlgmr.msra.gmra.mxu0 %v2307_v38  ;;  %2521 = vst [vmem:[#allocation2 + $0x28] sm:$0xc0] %v5616_v5 }
 0x949   :  { %4891 = vmatpush3.msra.mxu1 %v4211_v35  ;;  %5442 = vmatpush3.msra.mxu0 %v4243_v36 }
 0x94a   :  { %4892 = vmatprep.subr.mxu1 %v4226_v39  ;;  %5443 = vmatprep.subr.mxu0 %v5616_v5 }
 0x94b   :  { %4893 = vmatpush3.msra.mxu1 %v4210_v40  ;;  %5444 = vmatpush3.msra.mxu0 %v4242_v41  ;;  %v4298_v40 = vld [vmem:[%s8179_s1 + $0x778] sm:$0xff]  ;;  %v4297_v41 = vld [vmem:[%s8179_s1 + $0x770] sm:$0xff] }
 0x94c   :  { %4894 = vmatprep.subr.mxu1 %v4225_v42  ;;  %5445 = vmatprep.subr.mxu0 %v5616_v5  ;;  %v4296_v42 = vld [vmem:[%s8179_s1 + $0x768] sm:$0xff] }
 0x94d   :  { %4895 = vmatpush3.msra.mxu1 %v4209_v44  ;;  %5446 = vmatpush3.msra.mxu0 %v4241_v46  ;;  %v4295_v44 = vld [vmem:[%s8179_s1 + $0x760] sm:$0xff]  ;;  %v4294_v46 = vld [vmem:[%s8179_s1 + $0x758] sm:$0xff] }
 0x94e   :  { %4896 = vmatprep.subr.mxu1 %v4224_v47  ;;  %5447 = vmatprep.subr.mxu0 %v5616_v5  ;;  %v4293_v47 = vld [vmem:[%s8179_s1 + $0x750] sm:$0xff] }
 0x94f   :  { %5473 = vmatprep.mubr.msk.f32.mxu0 %vm5617_vm2, %v5616_v5  ;;  %4897 = vmatpush3.msra.mxu1 %v4208_v7 }
 0x950   :  { %5448 = vmatpush3.msra.mxu0 %v4240_v48  ;;  %4898 = vmatprep.subr.mxu1 %v4223_v50  ;;  %v4245_v50 = vld [vmem:[%s8180_s2 + $0x3] ss:$0 sm:$0xff] }
 0x951   :  { %5449 = vmatprep.subr.mxu0 %v5616_v5  ;;  %4899 = vmatpush3.msra.mxu1 %v4207_v51 }
 0x952   :  { %5450 = vmatpush3.msra.mxu0 %v4239_v43  ;;  %4900 = vmatprep.subr.mxu1 %v4222_v11 }
 0x953   :  { %5451 = vmatprep.subr.mxu0 %v5616_v5  ;;  %4901 = vmatpush3.msra.mxu1 %v4206_v45 }
 0x954   :  { %5452 = vmatpush3.msra.mxu0 %v4238_v52  ;;  %4902 = vmatprep.subr.mxu1 %v4221_v53  ;;  %v4282_v53 = vld [vmem:[%s8179_s1 + $0x6f8] sm:$0xff] }
 0x955   :  { %5453 = vmatprep.subr.mxu0 %v5616_v5  ;;  %4903 = vmatpush3.msra.mxu1 %v4205_v54  ;;  %v4266_v54 = vld [vmem:[%s8179_s1 + $0x678] sm:$0xff] }
 0x956   :  { %5454 = vmatpush3.msra.mxu0 %v4237_v55  ;;  %4904 = vmatprep.subr.mxu1 %v4220_v56  ;;  %v4281_v55 = vld [vmem:[%s8179_s1 + $0x6f0] sm:$0xff] }
 0x957   :  { %5455 = vmatprep.subr.mxu0 %v5616_v5  ;;  %4905 = vmatpush3.msra.mxu1 %v4204_v57  ;;  %v4265_v56 = vld [vmem:[%s8179_s1 + $0x670] sm:$0xff]  ;;  %v4280_v57 = vld [vmem:[%s8179_s1 + $0x6e8] sm:$0xff] }
 0x958   :  { %5456 = vmatpush3.msra.mxu0 %v4236_v58  ;;  %4906 = vmatprep.subr.mxu1 %v4219_v59  ;;  %v4264_v58 = vld [vmem:[%s8179_s1 + $0x668] sm:$0xff]  ;;  %v4279_v59 = vld [vmem:[%s8179_s1 + $0x6e0] sm:$0xff] }
 0x959   :  { %5457 = vmatprep.subr.mxu0 %v5616_v5  ;;  %4907 = vmatpush3.msra.mxu1 %v4203_v60  ;;  %v4263_v60 = vld [vmem:[%s8179_s1 + $0x660] sm:$0xff] }
 0x95a   :  { %5458 = vmatpush3.msra.mxu0 %v4235_v61  ;;  %4908 = vmatprep.subr.mxu1 %v4218_v62  ;;  %v4278_v61 = vld [vmem:[%s8179_s1 + $0x6d8] sm:$0xff] }
 0x95b   :  { %5459 = vmatprep.subr.mxu0 %v5616_v5  ;;  %4909 = vmatpush3.msra.mxu1 %v4202_v63  ;;  %v4262_v62 = vld [vmem:[%s8179_s1 + $0x658] sm:$0xff]  ;;  %v4277_v63 = vld [vmem:[%s8179_s1 + $0x6d0] sm:$0xff] }
 0x95c   :  { %5460 = vmatpush3.msra.mxu0 %v4234_v0  ;;  %4910 = vmatprep.subr.mxu1 %v4217_v1  ;;  %v4261_v0 = vld [vmem:[%s8179_s1 + $0x650] sm:$0xff]  ;;  %v4276_v1 = vld [vmem:[%s8179_s1 + $0x6c8] sm:$0xff] }
 0x95d   :  { %5461 = vmatprep.subr.mxu0 %v5616_v5  ;;  %4911 = vmatpush3.msra.mxu1 %v4201_v2  ;;  %v4260_v2 = vld [vmem:[%s8179_s1 + $0x648] sm:$0xff] }
 0x95e   :  { %5462 = vmatpush3.msra.mxu0 %v4233_v3  ;;  %4912 = vmatprep.subr.mxu1 %v4216_v4  ;;  %v4275_v3 = vld [vmem:[%s8179_s1 + $0x6c0] sm:$0xff] }
 0x95f   :  { %5463 = vmatprep.subr.mxu0 %v5616_v5  ;;  %4913 = vmatpush3.msra.mxu1 %v4200_v6  ;;  %v4259_v4 = vld [vmem:[%s8179_s1 + $0x640] sm:$0xff]  ;;  %v4274_v6 = vld [vmem:[%s8179_s1 + $0x6b8] sm:$0xff] }
 0x960   :  { %5464 = vmatpush3.msra.mxu0 %v4232_v8  ;;  %4914 = vmatprep.subr.mxu1 %v4215_v9  ;;  %v4258_v8 = vld [vmem:[%s8179_s1 + $0x638] sm:$0xff]  ;;  %v4292_v9 = vld [vmem:[%s8179_s1 + $0x748] sm:$0xff] }
 0x961   :  { %5465 = vmatprep.subr.mxu0 %v5616_v5  ;;  %4915 = vmatpush3.msra.mxu1 %v4199_v10  ;;  %v4273_v10 = vld [vmem:[%s8179_s1 + $0x6b0] sm:$0xff] }
 0x962   :  { %5466 = vmatpush3.msra.mxu0 %v4231_v12  ;;  %4916 = vmatprep.subr.mxu1 %v4214_v13  ;;  %v4257_v12 = vld [vmem:[%s8179_s1 + $0x630] sm:$0xff]  ;;  %v4291_v13 = vld [vmem:[%s8179_s1 + $0x740] sm:$0xff] }
 0x963   :  { %5467 = vmatprep.subr.mxu0 %v5616_v5  ;;  %4917 = vmatpush3.msra.mxu1 %v4198_v14  ;;  %v4272_v14 = vld [vmem:[%s8179_s1 + $0x6a8] sm:$0xff] }
 0x964   :  { %5468 = vmatpush3.msra.mxu0 %v4230_v15  ;;  %4918 = vmatprep.subr.mxu1 %v4213_v16  ;;  %v4256_v15 = vld [vmem:[%s8179_s1 + $0x628] sm:$0xff]  ;;  %v4290_v16 = vld [vmem:[%s8179_s1 + $0x738] sm:$0xff] }
 0x965   :  { %5469 = vmatprep.subr.mxu0 %v5616_v5  ;;  %4919 = vmatpush3.msra.mxu1 %v4197_v17  ;;  %v4271_v17 = vld [vmem:[%s8179_s1 + $0x6a0] sm:$0xff] }
 0x966   :  { %5470 = vmatpush3.msra.mxu0 %v4229_v18  ;;  %4920 = vmatprep.subr.mxu1 %v4212_v19  ;;  %v4255_v18 = vld [vmem:[%s8179_s1 + $0x620] sm:$0xff]  ;;  %v4289_v19 = vld [vmem:[%s8179_s1 + $0x730] sm:$0xff] }
 0x967   :  { %5471 = vmatprep.subr.mxu0 %v5616_v5  ;;  %4921 = vmatpush3.msra.mxu1 %v4196_v20  ;;  %v4270_v20 = vld [vmem:[%s8179_s1 + $0x698] sm:$0xff] }
 0x968   :  { %5472 = vmatpush3.msra.mxu0 %v4228_v21  ;;  %5476 = vmatprep.subr.mxu1 %v5616_v5  ;;  %v4254_v21 = vld [vmem:[%s8179_s1 + $0x618] sm:$0xff] }
 0x969   :  { %5481 = vmatprep.subr.mxu0 %v5616_v5 }
 0xa08   :  { %v4870_v22 = vpop.f32.mrf.mxu1  ;;  %v2499_v23 = vpop.f32.mrf.mxu0 }
 0xa0a   :  { %v4871_v25 = vpop.f32.mrf.mxu1  ;;  %v5440_v26 = vpop.f32.mrf.mxu0 }
 0xa0b   :  { %v4872_v27 = vadd.f32 %v4871_v25, %v4870_v22  ;;  %v4288_v22 = vld [vmem:[%s8179_s1 + $0x728] sm:$0xff]  ;;  %v4287_v25 = vld [vmem:[%s8179_s1 + $0x720] sm:$0xff] }
 0xa0c   :  { %v4268_v26 = vld [vmem:[%s8179_s1 + $0x688] sm:$0xff] }
 0xa0d   :  { %v2430_v28 = vadd.f32 %v4872_v27, %v4191_v24  ;;  %v4253_v24 = vld [vmem:[%s8179_s1 + $0x610] sm:$0xff]  ;;  %v4252_v27 = vld [vmem:[%s8179_s1 + $0x608] sm:$0xff] }
 0xa0f   :  { %v2500_v31 = vadd.f32 %v2499_v23, %v2430_v28  ;;  %v4269_v23 = vld [vmem:[%s8179_s1 + $0x690] sm:$0xff]  ;;  %v4286_v28 = vld [vmem:[%s8179_s1 + $0x718] sm:$0xff] }
 0xa11   :  { %v2510_v33 = vmul.f32 %v4193_v30, %v2500_v31  ;;  %v4267_v30 = vld [vmem:[%s8179_s1 + $0x680] sm:$0xff] }
 0xa12   :  { %v4251_v31 = vld [vmem:[%s8179_s1 + $0x600] sm:$0xff] }
 0xa13   :  { %v2518_v34 = vadd.f32 %v4195_v32, %v2510_v33  ;;  %v4285_v32 = vld [vmem:[%s8179_s1 + $0x710] sm:$0xff] }
 0xa15   :  { %v2519_v35 = vmax.f32 %v2518_v34, 0.0  ;;  %v4284_v34 = vld [vmem:[%s8179_s1 + $0x708] sm:$0xff] }
 0xa17   :  { %v2523_v36 = vrot.slane %v2519_v35, 6  ;;  %2527 = vst [vmem:[#allocation2 + $0x40] sm:$0xff] %v2519_v35  ;;  %v2528_v37 = vrot.slane %v2519_v35, 2  ;;  %2654 = vmatprep.mubr.f32.mxu1 %v2519_v35  ;;  %v4283_v35 = vld [vmem:[%s8179_s1 + $0x700] sm:$0xff] }
 0xa19   :  { %2525 = vst [vmem:[#allocation2 + $0x10] sm:$0xfc] %v2523_v36  ;;  %2531 = vst [vmem:[#allocation2 + $0x28] sm:$0x3f] %v2528_v37  ;;  %v4336_v37 = vld [vmem:[%s8179_s1 + $0x878] sm:$0xff] }
 0xa20   :  { %v2532_v38 = vld [vmem:[#allocation2 + $0x10] sm:$0xff]  ;;  %v2534_v39 = vld [vmem:[#allocation2 + $0x28] sm:$0xff] }
 0xa21   :  { %2655 = vmatmul.mubr.f32.vlgmr.msra.gmra.mxu1 %v2532_v38  ;;  %2817 = vst [vmem:[#allocation2 + $0x10] sm:$0xf] %v5616_v5  ;;  %5474 = vmatmul.mubr.f32.vlgmr.msra.gmra.mxu0 %v2534_v39  ;;  %2818 = vst [vmem:[#allocation2 + $0x28] sm:$0xf] %v5616_v5  ;;  %v4352_v38 = vld [vmem:[%s8179_s1 + $0x8f8] sm:$0xff]  ;;  %v4351_v39 = vld [vmem:[%s8179_s1 + $0x8f0] sm:$0xff] }
 0xa22   :  { %5478 = vmatprep.mubr.msk.f32.mxu1 %vm5617_vm2, %v5616_v5  ;;  %5513 = vmatprep.mubr.msk.f32.mxu0 %vm5617_vm2, %v5616_v5 }
 0xa23   :  { %5482 = vmatpush3.msra.mxu0 %v4298_v40  ;;  %v4248_v40 = vld [vmem:[%s8181_s3 + $0x3] ss:$0 sm:$0xff] }
 0xa24   :  { %5483 = vmatprep.subr.mxu0 %v5616_v5 }
 0xa25   :  { %5484 = vmatpush3.msra.mxu0 %v4297_v41 }
 0xa26   :  { %5485 = vmatprep.subr.mxu0 %v5616_v5 }
 0xa27   :  { %5486 = vmatpush3.msra.mxu0 %v4296_v42  ;;  %v4250_v42 = vld [vmem:[%s8182_s4 + $0x3] ss:$0 sm:$0xff] }
 0xa28   :  { %5487 = vmatprep.subr.mxu0 %v5616_v5  ;;  %v2825_v33 = vld [vmem:[#allocation2 + $0x10] sm:$0xf]  ;;  %v2827_v36 = vld [vmem:[#allocation2 + $0x28] sm:$0xf] }
 0xa29   :  { %5488 = vmatpush3.msra.mxu0 %v4295_v44  ;;  %3040 = vst [vmem:[#allocation2 + $0x10] sm:$0xf] %v5616_v5  ;;  %3041 = vst [vmem:[#allocation2 + $0x28] sm:$0xf] %v5616_v5 }
 0xa2a   :  { %5489 = vmatprep.subr.mxu0 %v5616_v5 }
 0xa2b   :  { %5490 = vmatpush3.msra.mxu0 %v4294_v46 }
 0xa2c   :  { %5491 = vmatprep.subr.mxu0 %v5616_v5 }
 0xa2d   :  { %5492 = vmatpush3.msra.mxu0 %v4293_v47 }
 0xa2e   :  { %5493 = vmatprep.subr.mxu0 %v5616_v5 }
 0xa2f   :  { %5494 = vmatpush3.msra.mxu0 %v4292_v9  ;;  %v4346_v9 = vld [vmem:[%s8179_s1 + $0x8c8] sm:$0xff] }
 0xa30   :  { %5495 = vmatprep.subr.mxu0 %v5616_v5 }
 0xa31   :  { %5496 = vmatpush3.msra.mxu0 %v4291_v13  ;;  %v4345_v13 = vld [vmem:[%s8179_s1 + $0x8c0] sm:$0xff] }
 0xa32   :  { %5497 = vmatprep.subr.mxu0 %v5616_v5 }
 0xa33   :  { %5498 = vmatpush3.msra.mxu0 %v4290_v16  ;;  %v4344_v16 = vld [vmem:[%s8179_s1 + $0x8b8] sm:$0xff] }
 0xa34   :  { %5499 = vmatprep.subr.mxu0 %v5616_v5 }
 0xa35   :  { %5500 = vmatpush3.msra.mxu0 %v4289_v19  ;;  %v4343_v19 = vld [vmem:[%s8179_s1 + $0x8b0] sm:$0xff] }
 0xa36   :  { %5501 = vmatprep.subr.mxu0 %v5616_v5 }
 0xa37   :  { %5502 = vmatpush3.msra.mxu0 %v4288_v22  ;;  %v4342_v22 = vld [vmem:[%s8179_s1 + $0x8a8] sm:$0xff] }
 0xa38   :  { %5503 = vmatprep.subr.mxu0 %v5616_v5 }
 0xa39   :  { %5504 = vmatpush3.msra.mxu0 %v4287_v25  ;;  %v4341_v25 = vld [vmem:[%s8179_s1 + $0x8a0] sm:$0xff] }
 0xa3a   :  { %5505 = vmatprep.subr.mxu0 %v5616_v5 }
 0xa3b   :  { %5506 = vmatpush3.msra.mxu0 %v4286_v28  ;;  %v4340_v28 = vld [vmem:[%s8179_s1 + $0x898] sm:$0xff] }
 0xa3c   :  { %5507 = vmatprep.subr.mxu0 %v5616_v5 }
 0xa3d   :  { %5508 = vmatpush3.msra.mxu0 %v4285_v32  ;;  %v4339_v32 = vld [vmem:[%s8179_s1 + $0x890] sm:$0xff] }
 0xa3e   :  { %5509 = vmatprep.subr.mxu0 %v5616_v5 }
 0xa3f   :  { %5510 = vmatpush3.msra.mxu0 %v4284_v34  ;;  %v4337_v34 = vld [vmem:[%s8179_s1 + $0x880] sm:$0xff] }
 0xa40   :  { %5511 = vmatprep.subr.mxu0 %v5616_v5 }
 0xa41   :  { %5512 = vmatpush3.msra.mxu0 %v4283_v35  ;;  %v3050_v35 = vld [vmem:[#allocation2 + $0x28] sm:$0xf] }
 0xa42   :  { %5514 = vmatmul.mubr.f32.vlgmr.msra.gmra.mxu0 %v2827_v36  ;;  %5516 = vmatprep.subr.mxu0 %v5616_v5 }
 0xa43   :  { %5548 = vmatprep.mubr.msk.f32.mxu0 %vm5617_vm2, %v5616_v5  ;;  %5517 = vmatpush3.msra.mxu0 %v4352_v38  ;;  %v4300_v38 = vld [vmem:[%s8180_s2 + $0x4] ss:$0 sm:$0xff] }
 0xa44   :  { %5518 = vmatprep.subr.mxu0 %v5616_v5 }
 0xa45   :  { %5519 = vmatpush3.msra.mxu0 %v4351_v39 }
 0xa46   :  { %5520 = vmatprep.subr.mxu0 %v5616_v5 }
 0xae1   :  { %v4922_v7 = vpop.f32.mrf.mxu1  ;;  %v2726_v48 = vpop.f32.mrf.mxu0 }
 0xae3   :  { %v4923_v51 = vpop.f32.mrf.mxu1  ;;  %v5475_v43 = vpop.f32.mrf.mxu0 }
 0xae4   :  { %v4924_v11 = vadd.f32 %v4923_v51, %v4922_v7  ;;  %v4320_v51 = vld [vmem:[%s8179_s1 + $0x7f8] sm:$0xff]  ;;  %v4335_v43 = vld [vmem:[%s8179_s1 + $0x870] sm:$0xff] }
 0xae6   :  { %v2657_v45 = vadd.f32 %v4924_v11, %v4245_v50  ;;  %v4319_v11 = vld [vmem:[%s8179_s1 + $0x7f0] sm:$0xff] }
 0xae8   :  { %v2727_v52 = vadd.f32 %v2726_v48, %v2657_v45  ;;  %v4334_v45 = vld [vmem:[%s8179_s1 + $0x868] sm:$0xff] }
 0xaea   :  { %5477 = vmatpush3.msra.mxu1 %v2727_v52  ;;  %v4318_v52 = vld [vmem:[%s8179_s1 + $0x7e8] sm:$0xff] }
 0xaeb   :  { %5479 = vmatmul.mubr.msk.f32.vlgmr.msra.gmra.mxu1 %vm1088_vm5, %v6086_v49  ;;  %4944 = vmatprep.subr.mxu1 %v4282_v53  ;;  %v4333_v53 = vld [vmem:[%s8179_s1 + $0x860] sm:$0xff] }
 0xaec   :  { %4945 = vmatpush3.msra.mxu1 %v4266_v54  ;;  %v4317_v54 = vld [vmem:[%s8179_s1 + $0x7e0] sm:$0xff] }
 0xaed   :  { %4946 = vmatprep.subr.mxu1 %v4281_v55  ;;  %v4332_v55 = vld [vmem:[%s8179_s1 + $0x858] sm:$0xff] }
 0xaee   :  { %4947 = vmatpush3.msra.mxu1 %v4265_v56  ;;  %v4316_v56 = vld [vmem:[%s8179_s1 + $0x7d8] sm:$0xff] }
 0xaef   :  { %4948 = vmatprep.subr.mxu1 %v4280_v57  ;;  %v4350_v57 = vld [vmem:[%s8179_s1 + $0x8e8] sm:$0xff] }
 0xaf0   :  { %4949 = vmatpush3.msra.mxu1 %v4264_v58  ;;  %5521 = vmatpush3.msra.mxu0 %v4350_v57  ;;  %v4331_v58 = vld [vmem:[%s8179_s1 + $0x850] sm:$0xff]  ;;  %v4386_v57 = vld [vmem:[%s8183_s5 + $0x1c8] sm:$0xff] }
 0xaf1   :  { %4950 = vmatprep.subr.mxu1 %v4279_v59  ;;  %5522 = vmatprep.subr.mxu0 %v5616_v5  ;;  %v4315_v59 = vld [vmem:[%s8179_s1 + $0x7d0] sm:$0xff] }
 0xaf2   :  { %4951 = vmatpush3.msra.mxu1 %v4263_v60  ;;  %v4349_v60 = vld [vmem:[%s8179_s1 + $0x8e0] sm:$0xff] }
 0xaf3   :  { %4952 = vmatprep.subr.mxu1 %v4278_v61  ;;  %5523 = vmatpush3.msra.mxu0 %v4349_v60  ;;  %v4330_v61 = vld [vmem:[%s8179_s1 + $0x848] sm:$0xff]  ;;  %v4383_v60 = vld [vmem:[%s8183_s5 + $0x1b0] sm:$0xff] }
 0xaf4   :  { %4953 = vmatpush3.msra.mxu1 %v4262_v62  ;;  %5524 = vmatprep.subr.mxu0 %v5616_v5 }
 0xaf5   :  { %4954 = vmatprep.subr.mxu1 %v4277_v63  ;;  %v4314_v63 = vld [vmem:[%s8179_s1 + $0x7c8] sm:$0xff] }
 0xaf6   :  { %4955 = vmatpush3.msra.mxu1 %v4261_v0  ;;  %v4348_v0 = vld [vmem:[%s8179_s1 + $0x8d8] sm:$0xff] }
 0xaf7   :  { %4956 = vmatprep.subr.mxu1 %v4276_v1  ;;  %5525 = vmatpush3.msra.mxu0 %v4348_v0  ;;  %v4329_v1 = vld [vmem:[%s8179_s1 + $0x840] sm:$0xff]  ;;  %v4379_v0 = vld [vmem:[%s8183_s5 + $0x190] sm:$0xff] }
 0xaf8   :  { %4957 = vmatpush3.msra.mxu1 %v4260_v2  ;;  %5526 = vmatprep.subr.mxu0 %v5616_v5 }
 0xaf9   :  { %4958 = vmatprep.subr.mxu1 %v4275_v3  ;;  %v4313_v3 = vld [vmem:[%s8179_s1 + $0x7c0] sm:$0xff] }
 0xafa   :  { %4959 = vmatpush3.msra.mxu1 %v4259_v4  ;;  %v4347_v4 = vld [vmem:[%s8179_s1 + $0x8d0] sm:$0xff] }
 0xafb   :  { %4960 = vmatprep.subr.mxu1 %v4274_v6  ;;  %5527 = vmatpush3.msra.mxu0 %v4347_v4  ;;  %v4328_v6 = vld [vmem:[%s8179_s1 + $0x838] sm:$0xff] }
 0xafc   :  { %4961 = vmatpush3.msra.mxu1 %v4258_v8  ;;  %5528 = vmatprep.subr.mxu0 %v5616_v5  ;;  %v4312_v8 = vld [vmem:[%s8179_s1 + $0x7b8] sm:$0xff] }
 0xafd   :  { %4962 = vmatprep.subr.mxu1 %v4273_v10  ;;  %5529 = vmatpush3.msra.mxu0 %v4346_v9  ;;  %v4327_v10 = vld [vmem:[%s8179_s1 + $0x830] sm:$0xff] }
 0xafe   :  { %4963 = vmatpush3.msra.mxu1 %v4257_v12  ;;  %5530 = vmatprep.subr.mxu0 %v5616_v5  ;;  %v4311_v12 = vld [vmem:[%s8179_s1 + $0x7b0] sm:$0xff] }
 0xaff   :  { %4964 = vmatprep.subr.mxu1 %v4272_v14  ;;  %5531 = vmatpush3.msra.mxu0 %v4345_v13  ;;  %v4326_v14 = vld [vmem:[%s8179_s1 + $0x828] sm:$0xff]  ;;  %v3370_v13 = vld [vmem:[%s8183_s5 + $0xf8] sm:$0xff] }
 0xb00   :  { %4965 = vmatpush3.msra.mxu1 %v4256_v15  ;;  %5532 = vmatprep.subr.mxu0 %v5616_v5  ;;  %v4310_v15 = vld [vmem:[%s8179_s1 + $0x7a8] sm:$0xff] }
 0xb01   :  { %4966 = vmatprep.subr.mxu1 %v4271_v17  ;;  %5533 = vmatpush3.msra.mxu0 %v4344_v16  ;;  %v4325_v17 = vld [vmem:[%s8179_s1 + $0x820] sm:$0xff] }
 0xb02   :  { %4967 = vmatpush3.msra.mxu1 %v4255_v18  ;;  %v7670_v62 = vpop.f32.mrf.mxu0  ;;  %5534 = vmatprep.subr.mxu0 %v5616_v5  ;;  %v4309_v18 = vld [vmem:[%s8179_s1 + $0x7a0] sm:$0xff] }
 0xb03   :  { %4968 = vmatprep.subr.mxu1 %v4270_v20  ;;  %5535 = vmatpush3.msra.mxu0 %v4343_v19  ;;  %v4324_v20 = vld [vmem:[%s8179_s1 + $0x818] sm:$0xff]  ;;  %v3367_v16 = vld [vmem:[%s8183_s5 + $0xe0] sm:$0xff] }
 0xb04   :  { %4969 = vmatpush3.msra.mxu1 %v4254_v21  ;;  %v5515_v2 = vpop.f32.mrf.mxu0  ;;  %5536 = vmatprep.subr.mxu0 %v5616_v5  ;;  %v4308_v21 = vld [vmem:[%s8179_s1 + $0x798] sm:$0xff]  ;;  %v3363_v19 = vld [vmem:[%s8183_s5 + $0xc0] sm:$0xff] }
 0xb05   :  { %4970 = vmatprep.subr.mxu1 %v4269_v23  ;;  %5537 = vmatpush3.msra.mxu0 %v4342_v22  ;;  %v4323_v23 = vld [vmem:[%s8179_s1 + $0x810] sm:$0xff]  ;;  %v4377_v2 = vld [vmem:[%s8183_s5 + $0x180] sm:$0xff]  ;;  %v3360_v22 = vld [vmem:[%s8183_s5 + $0xa8] sm:$0xff] }
 0xb06   :  { %4971 = vmatpush3.msra.mxu1 %v4253_v24  ;;  %v4307_v24 = vld [vmem:[%s8179_s1 + $0x790] sm:$0xff]  ;;  %5538 = vmatprep.subr.mxu0 %v5616_v5 }
 0xb07   :  { %4972 = vmatprep.subr.mxu1 %v4268_v26  ;;  %v4322_v26 = vld [vmem:[%s8179_s1 + $0x808] sm:$0xff]  ;;  %5539 = vmatpush3.msra.mxu0 %v4341_v25  ;;  %v3357_v25 = vld [vmem:[%s8183_s5 + $0x90] sm:$0xff] }
 0xb08   :  { %4973 = vmatpush3.msra.mxu1 %v4252_v27  ;;  %v4306_v27 = vld [vmem:[%s8179_s1 + $0x788] sm:$0xff]  ;;  %5540 = vmatprep.subr.mxu0 %v5616_v5 }
 0xb09   :  { %4974 = vmatprep.subr.mxu1 %v4267_v30  ;;  %v4321_v30 = vld [vmem:[%s8179_s1 + $0x800] sm:$0xff]  ;;  %5541 = vmatpush3.msra.mxu0 %v4340_v28  ;;  %v3354_v28 = vld [vmem:[%s8183_s5 + $0x78] sm:$0xff] }
 0xb0a   :  { %4975 = vmatpush3.msra.mxu1 %v4251_v31  ;;  %v4305_v31 = vld [vmem:[%s8179_s1 + $0x780] sm:$0xff]  ;;  %5542 = vmatprep.subr.mxu0 %v5616_v5 }
 0xb0b   :  { %4996 = vmatprep.subr.mxu1 %v4336_v37  ;;  %5543 = vmatpush3.msra.mxu0 %v4339_v32  ;;  %v4374_v32 = vld [vmem:[%s8183_s5 + $0x168] sm:$0xff] }
 0xb0c   :  { %5544 = vmatprep.subr.mxu0 %v5616_v5 }
 0xbab   :  { %v2796_v41 = vpop.f32.mrf.mxu1 }
 0xbac   :  { %v2807_v44 = vmul.f32 %v4248_v40, %v2796_v41  ;;  %v4302_v41 = vld [vmem:[%s8181_s3 + $0x4] ss:$0 sm:$0xff] }
 0xbad   :  { %v5480_v46 = vpop.f32.mrf.mxu1 }
 0xbae   :  { %v2815_v47 = vadd.f32 %v4250_v42, %v2807_v44  ;;  %v4304_v44 = vld [vmem:[%s8182_s4 + $0x4] ss:$0 sm:$0xff] }
 0xbb0   :  { %v2816_v7 = vmax.f32 %v2815_v47, 0.0 }
 0xbb2   :  { %v2820_v48 = vrot.slane %v2816_v7, 4  ;;  %2823 = vst [vmem:[#allocation2 + $0x40] sm:$0xf] %v2816_v7 }
 0xbb4   :  { %2822 = vst [vmem:[#allocation2 + $0x10] sm:$0xf0] %v2820_v48 }
 0xbb9   :  { %v2826_v50 = vld [vmem:[#allocation2 + $0x40] sm:$0xf] }
 0xbba   :  { %2947 = vmatprep.mubr.f32.mxu1 %v2826_v50  ;;  %v3048_v50 = vld [vmem:[#allocation2 + $0x10] sm:$0xf] }
 0xbbb   :  { %2948 = vmatmul.mubr.f32.vlgmr.msra.gmra.mxu1 %v2825_v33  ;;  %v4338_v33 = vld [vmem:[%s8179_s1 + $0x888] sm:$0xff] }
 0xbbc   :  { %4997 = vmatpush3.msra.mxu1 %v4320_v51  ;;  %5545 = vmatpush3.msra.mxu0 %v4338_v33  ;;  %v3352_v33 = vld [vmem:[%s8183_s5 + $0x68] sm:$0xff] }
 0xbbd   :  { %4998 = vmatprep.subr.mxu1 %v4335_v43  ;;  %5546 = vmatprep.subr.mxu0 %v5616_v5 }
 0xbbe   :  { %4999 = vmatpush3.msra.mxu1 %v4319_v11  ;;  %5547 = vmatpush3.msra.mxu0 %v4337_v34  ;;  %v4373_v34 = vld [vmem:[%s8183_s5 + $0x160] sm:$0xff] }
 0xbbf   :  { %5000 = vmatprep.subr.mxu1 %v4334_v45  ;;  %5549 = vmatmul.mubr.f32.vlgmr.msra.gmra.mxu0 %v3050_v35  ;;  %v4392_v45 = vld [vmem:[%s8183_s5 + $0x1f8] sm:$0xff]  ;;  %v3351_v35 = vld [vmem:[%s8183_s5 + $0x60] sm:$0xff] }
 0xbc0   :  { %5001 = vmatpush3.msra.mxu1 %v4318_v52  ;;  %3469 = vmatprep.mubr.f32.mxu0 %v5616_v5  ;;  %v4391_v52 = vld [vmem:[%s8183_s5 + $0x1f0] sm:$0xff] }
 0xbc1   :  { %5002 = vmatprep.subr.mxu1 %v4333_v53  ;;  %3405 = vmatprep.subr.mxu0 %v4392_v45  ;;  %v4390_v53 = vld [vmem:[%s8183_s5 + $0x1e8] sm:$0xff]  ;;  %v4364_v45 = vld [vmem:[%s8183_s5 + $0x118] sm:$0xff] }
 0xbc2   :  { %5003 = vmatpush3.msra.mxu1 %v4317_v54  ;;  %3406 = vmatpush1.msra.mxu0 %v4391_v52  ;;  %v4389_v54 = vld [vmem:[%s8183_s5 + $0x1e0] sm:$0xff]  ;;  %v3342_v52 = vld [vmem:[%s8183_s5 + $0x18] sm:$0xff] }
 0xbc3   :  { %5004 = vmatprep.subr.mxu1 %v4332_v55  ;;  %3407 = vmatprep.subr.mxu0 %v4390_v53  ;;  %v4388_v55 = vld [vmem:[%s8183_s5 + $0x1d8] sm:$0xff]  ;;  %v4363_v53 = vld [vmem:[%s8183_s5 + $0x110] sm:$0xff] }
 0xbc4   :  { %5005 = vmatpush3.msra.mxu1 %v4316_v56  ;;  %3408 = vmatpush1.msra.mxu0 %v4389_v54  ;;  %v4387_v56 = vld [vmem:[%s8183_s5 + $0x1d0] sm:$0xff] }
 0xbc5   :  { %5006 = vmatprep.subr.mxu1 %v4331_v58  ;;  %3409 = vmatprep.subr.mxu0 %v4388_v55  ;;  %v4385_v58 = vld [vmem:[%s8183_s5 + $0x1c0] sm:$0xff]  ;;  %v3341_v54 = vld [vmem:[%s8183_s5 + $0x10] sm:$0xff]  ;;  %v4362_v55 = vld [vmem:[%s8183_s5 + $0x108] sm:$0xff] }
 0xbc6   :  { %5007 = vmatpush3.msra.mxu1 %v4315_v59  ;;  %3410 = vmatpush1.msra.mxu0 %v4387_v56  ;;  %v4384_v59 = vld [vmem:[%s8183_s5 + $0x1b8] sm:$0xff]  ;;  %v3340_v56 = vld [vmem:[%s8183_s5 + $0x8] sm:$0xff] }
 0xbc7   :  { %5008 = vmatprep.subr.mxu1 %v4330_v61  ;;  %3411 = vmatprep.subr.mxu0 %v4386_v57  ;;  %v4382_v61 = vld [vmem:[%s8183_s5 + $0x1a8] sm:$0xff]  ;;  %v4361_v57 = vld [vmem:[%s8183_s5 + $0x100] sm:$0xff] }
 0xbc8   :  { %5009 = vmatpush3.msra.mxu1 %v4314_v63  ;;  %3412 = vmatpush1.msra.mxu0 %v4385_v58  ;;  %v4380_v63 = vld [vmem:[%s8183_s5 + $0x198] sm:$0xff]  ;;  %v3339_v58 = vld [vmem:[%s8183_s5] sm:$0xff] }
 0xbc9   :  { %5010 = vmatprep.subr.mxu1 %v4329_v1  ;;  %3413 = vmatprep.subr.mxu0 %v4384_v59  ;;  %v4378_v1 = vld [vmem:[%s8183_s5 + $0x188] sm:$0xff]  ;;  %v3608_v59 = vld [vmem:[%s8186_s8 + $0xf8] sm:$0xff] }
 0xbca   :  { %5011 = vmatpush3.msra.mxu1 %v4313_v3  ;;  %3414 = vmatpush1.msra.mxu0 %v4383_v60  ;;  %v4376_v3 = vld [vmem:[%s8183_s5 + $0x178] sm:$0xff]  ;;  %v4358_v60 = vld [vmem:[%s8181_s3 + $0x5] ss:$0 sm:$0xff] }
 0xbcb   :  { %5012 = vmatprep.subr.mxu1 %v4328_v6  ;;  %3415 = vmatprep.subr.mxu0 %v4382_v61 }
 0xbcc   :  { %5013 = vmatpush3.msra.mxu1 %v4312_v8  ;;  %v4354_v8 = vld [vmem:[%s8180_s2 + $0x5] ss:$0 sm:$0xff] }
 0xbcd   :  { %5014 = vmatprep.subr.mxu1 %v4327_v10 }
 0xbce   :  { %5015 = vmatpush3.msra.mxu1 %v4311_v12 }
 0xbcf   :  { %5016 = vmatprep.subr.mxu1 %v4326_v14  ;;  %v3369_v14 = vld [vmem:[%s8183_s5 + $0xf0] sm:$0xff] }
 0xbd0   :  { %5017 = vmatpush3.msra.mxu1 %v4310_v15  ;;  %v3368_v15 = vld [vmem:[%s8183_s5 + $0xe8] sm:$0xff] }
 0xbd1   :  { %5018 = vmatprep.subr.mxu1 %v4325_v17  ;;  %v3366_v17 = vld [vmem:[%s8183_s5 + $0xd8] sm:$0xff] }
 0xbd2   :  { %5019 = vmatpush3.msra.mxu1 %v4309_v18  ;;  %v3365_v18 = vld [vmem:[%s8183_s5 + $0xd0] sm:$0xff] }
 0xbd3   :  { %5020 = vmatprep.subr.mxu1 %v4324_v20  ;;  %v3362_v20 = vld [vmem:[%s8183_s5 + $0xb8] sm:$0xff] }
 0xbd4   :  { %5021 = vmatpush3.msra.mxu1 %v4308_v21  ;;  %v3361_v21 = vld [vmem:[%s8183_s5 + $0xb0] sm:$0xff] }
 0xbd5   :  { %5022 = vmatprep.subr.mxu1 %v4323_v23  ;;  %v3359_v23 = vld [vmem:[%s8183_s5 + $0xa0] sm:$0xff] }
 0xbd6   :  { %5023 = vmatpush3.msra.mxu1 %v4307_v24  ;;  %v3358_v24 = vld [vmem:[%s8183_s5 + $0x98] sm:$0xff] }
 0xbd7   :  { %5024 = vmatprep.subr.mxu1 %v4322_v26  ;;  %v3356_v26 = vld [vmem:[%s8183_s5 + $0x88] sm:$0xff] }
 0xbd8   :  { %5025 = vmatpush3.msra.mxu1 %v4306_v27  ;;  %v3355_v27 = vld [vmem:[%s8183_s5 + $0x80] sm:$0xff] }
 0xbd9   :  { %5026 = vmatprep.subr.mxu1 %v4321_v30  ;;  %v4375_v30 = vld [vmem:[%s8183_s5 + $0x170] sm:$0xff] }
 0xbda   :  { %5027 = vmatpush3.msra.mxu1 %v4305_v31  ;;  %v3353_v31 = vld [vmem:[%s8183_s5 + $0x70] sm:$0xff] }
 0xbdb   :  { %5551 = vmatprep.subr.mxu1 %v5616_v5 }
 0xc7b   :  { %v4976_v36 = vpop.f32.mrf.mxu1 }
 0xc7d   :  { %v4977_v37 = vpop.f32.mrf.mxu1 }
 0xc7e   :  { %v4978_v39 = vadd.f32 %v4977_v37, %v4976_v36  ;;  %v4372_v36 = vld [vmem:[%s8183_s5 + $0x158] sm:$0xff] }
 0xc7f   :  { %v3242_v43 = vpop.f32.mrf.mxu0  ;;  %v3350_v37 = vld [vmem:[%s8183_s5 + $0x58] sm:$0xff] }
 0xc80   :  { %v2950_v40 = vadd.f32 %v4978_v39, %v4300_v38  ;;  %v4371_v38 = vld [vmem:[%s8183_s5 + $0x150] sm:$0xff] }
 0xc81   :  { %v5550_v11 = vpop.f32.mrf.mxu0  ;;  %v3349_v39 = vld [vmem:[%s8183_s5 + $0x50] sm:$0xff] }
 0xc82   :  { %v3020_v42 = vadd.f32 %v7670_v62, %v2950_v40  ;;  %v4381_v62 = vld [vmem:[%s8183_s5 + $0x1a0] sm:$0xff]  ;;  %v4370_v40 = vld [vmem:[%s8183_s5 + $0x148] sm:$0xff] }
 0xc83   :  { %3416 = vmatpush1.msra.mxu0 %v4381_v62  ;;  %v3343_v11 = vld [vmem:[%s8183_s5 + $0x20] sm:$0xff] }
 0xc84   :  { %v3030_v46 = vmul.f32 %v4302_v41, %v3020_v42  ;;  %3417 = vmatprep.subr.mxu0 %v4380_v63  ;;  %v3348_v41 = vld [vmem:[%s8183_s5 + $0x48] sm:$0xff]  ;;  %v4369_v42 = vld [vmem:[%s8183_s5 + $0x140] sm:$0xff] }
 0xc85   :  { %3418 = vmatpush1.msra.mxu0 %v4379_v0  ;;  %v4360_v62 = vld [vmem:[%s8182_s4 + $0x5] ss:$0 sm:$0xff] }
 0xc86   :  { %v3038_v47 = vadd.f32 %v4304_v44, %v3030_v46  ;;  %3419 = vmatprep.subr.mxu0 %v4378_v1  ;;  %v3347_v44 = vld [vmem:[%s8183_s5 + $0x40] sm:$0xff]  ;;  %v4368_v46 = vld [vmem:[%s8183_s5 + $0x138] sm:$0xff] }
 0xc87   :  { %3420 = vmatpush1.msra.mxu0 %v4377_v2 }
 0xc88   :  { %v3039_v7 = vmax.f32 %v3038_v47, 0.0  ;;  %3421 = vmatprep.subr.mxu0 %v4376_v3  ;;  %v3346_v47 = vld [vmem:[%s8183_s5 + $0x38] sm:$0xff] }
 0xc89   :  { %3422 = vmatpush1.msra.mxu0 %v4375_v30  ;;  %v3592_v3 = vld [vmem:[%s8186_s8 + $0x78] sm:$0xff]  ;;  %v3581_v30 = vld [vmem:[%s8186_s8 + $0x20] sm:$0xff] }
 0xc8a   :  { %v3043_v48 = vrot.slane %v3039_v7, 4  ;;  %3046 = vst [vmem:[#allocation2 + $0x40] sm:$0xf] %v3039_v7  ;;  %3423 = vmatprep.subr.mxu0 %v4374_v32  ;;  %v4367_v7 = vld [vmem:[%s8183_s5 + $0x130] sm:$0xff]  ;;  %v3580_v32 = vld [vmem:[%s8186_s8 + $0x18] sm:$0xff] }
 0xc8b   :  { %3424 = vmatpush1.msra.mxu0 %v4373_v34  ;;  %v3579_v34 = vld [vmem:[%s8186_s8 + $0x10] sm:$0xff] }
 0xc8c   :  { %3045 = vst [vmem:[#allocation2 + $0x10] sm:$0xf0] %v3043_v48  ;;  %3425 = vmatprep.subr.mxu0 %v4372_v36  ;;  %v3345_v48 = vld [vmem:[%s8183_s5 + $0x30] sm:$0xff]  ;;  %v3578_v36 = vld [vmem:[%s8186_s8 + $0x8] sm:$0xff] }
 0xc8d   :  { %3426 = vmatpush1.msra.mxu0 %v4371_v38  ;;  %v3577_v38 = vld [vmem:[%s8186_s8] sm:$0xff] }
 0xc8e   :  { %3427 = vmatprep.subr.mxu0 %v4370_v40  ;;  %v3710_v40 = vld [vmem:[%s8189_s11 + $0x70] sm:$0xff] }
 0xc8f   :  { %3428 = vmatpush1.msra.mxu0 %v4369_v42  ;;  %v3708_v42 = vld [vmem:[%s8189_s11 + $0x60] sm:$0xff] }
 0xc90   :  { %3429 = vmatprep.subr.mxu0 %v4368_v46  ;;  %v3706_v46 = vld [vmem:[%s8189_s11 + $0x50] sm:$0xff] }
 0xc91   :  { %v3049_v51 = vld [vmem:[#allocation2 + $0x40] sm:$0xf]  ;;  %3430 = vmatpush1.msra.mxu0 %v4367_v7 }
 0xc92   :  { %3170 = vmatprep.mubr.f32.mxu1 %v3049_v51  ;;  %v3344_v51 = vld [vmem:[%s8183_s5 + $0x28] sm:$0xff]  ;;  %v3704_v7 = vld [vmem:[%s8189_s11 + $0x40] sm:$0xff] }
 0xc93   :  { %3171 = vmatmul.mubr.f32.vlgmr.msra.gmra.mxu1 %v3048_v50  ;;  %v4366_v50 = vld [vmem:[%s8183_s5 + $0x128] sm:$0xff] }
 0xc94   :  { %5553 = vmatprep.mubr.msk.f32.mxu1 %vm5617_vm2, %v5616_v5  ;;  %3431 = vmatprep.subr.mxu0 %v4366_v50  ;;  %v3702_v50 = vld [vmem:[%s8189_s11 + $0x30] sm:$0xff] }
 0xd53   :  { %v5028_v4 = vpop.f32.mrf.mxu1 }
 0xd55   :  { %v5029_v6 = vpop.f32.mrf.mxu1 }
 0xd56   :  { %v5030_v9 = vadd.f32 %v5029_v6, %v5028_v4 }
 0xd58   :  { %v3173_v10 = vadd.f32 %v5030_v9, %v4354_v8  ;;  %v3607_v8 = vld [vmem:[%s8186_s8 + $0xf0] sm:$0xff] }
 0xd59   :  { %v3591_v9 = vld [vmem:[%s8186_s8 + $0x70] sm:$0xff] }
 0xd5a   :  { %v3243_v12 = vadd.f32 %v3242_v43, %v3173_v10  ;;  %v4365_v43 = vld [vmem:[%s8183_s5 + $0x120] sm:$0xff]  ;;  %v3606_v10 = vld [vmem:[%s8186_s8 + $0xe8] sm:$0xff] }
 0xd5b   :  { %3432 = vmatpush1.msra.mxu0 %v4365_v43  ;;  %v3547_v43 = vld [vmem:[%s8184_s6] sm:$0x3] }
 0xd5c   :  { %5552 = vmatpush3.msk.msra.mxu1 %vm1618_vm6, %v3243_v12  ;;  %3433 = vmatprep.subr.mxu0 %v4364_v45  ;;  %v3590_v12 = vld [vmem:[%s8186_s8 + $0x68] sm:$0xff] }
 0xd5d   :  { %5554 = vmatmul.mubr.msk.f32.vlgmr.msra.gmra.mxu1 %vm1615_vm7, %v6086_v49  ;;  %3476 = vmatprep.subr.mxu1 %v3370_v13  ;;  %v3364_v49 = vld [vmem:[%s8183_s5 + $0xc8] sm:$0xff]  ;;  %v3605_v13 = vld [vmem:[%s8186_s8 + $0xe0] sm:$0xff] }
 0xd5e   :  { %3477 = vmatpush1.msra.mxu1 %v3369_v14  ;;  %3540 = vmatprep.mubr.f32.mxu1 %v5616_v5  ;;  %v3589_v14 = vld [vmem:[%s8186_s8 + $0x60] sm:$0xff] }
 0xd5f   :  { %3478 = vmatprep.subr.mxu1 %v3368_v15  ;;  %3434 = vmatpush1.msra.mxu0 %v4363_v53  ;;  %v3604_v15 = vld [vmem:[%s8186_s8 + $0xd8] sm:$0xff] }
 0xd60   :  { %3479 = vmatpush1.msra.mxu1 %v3367_v16  ;;  %3435 = vmatprep.subr.mxu0 %v4362_v55  ;;  %v3588_v16 = vld [vmem:[%s8186_s8 + $0x58] sm:$0xff] }
 0xd61   :  { %3480 = vmatprep.subr.mxu1 %v3366_v17  ;;  %3436 = vmatpush1.msra.mxu0 %v4361_v57  ;;  %v3603_v17 = vld [vmem:[%s8186_s8 + $0xd0] sm:$0xff] }
 0xd62   :  { %3481 = vmatpush1.msra.mxu1 %v3365_v18  ;;  %5050 = vmatprep.subr.mxu0 %v3608_v59  ;;  %v3587_v18 = vld [vmem:[%s8186_s8 + $0x50] sm:$0xff] }
 0xd63   :  { %3482 = vmatprep.subr.mxu1 %v3364_v49  ;;  %v3602_v49 = vld [vmem:[%s8186_s8 + $0xc8] sm:$0xff] }
 0xd64   :  { %3483 = vmatpush1.msra.mxu1 %v3363_v19  ;;  %v3586_v19 = vld [vmem:[%s8186_s8 + $0x48] sm:$0xff] }
 0xd65   :  { %3484 = vmatprep.subr.mxu1 %v3362_v20  ;;  %v3601_v20 = vld [vmem:[%s8186_s8 + $0xc0] sm:$0xff] }
 0xd66   :  { %3485 = vmatpush1.msra.mxu1 %v3361_v21  ;;  %v3585_v21 = vld [vmem:[%s8186_s8 + $0x40] sm:$0xff] }
 0xd67   :  { %3486 = vmatprep.subr.mxu1 %v3360_v22  ;;  %v3600_v22 = vld [vmem:[%s8186_s8 + $0xb8] sm:$0xff] }
 0xd68   :  { %3487 = vmatpush1.msra.mxu1 %v3359_v23  ;;  %v3584_v23 = vld [vmem:[%s8186_s8 + $0x38] sm:$0xff] }
 0xd69   :  { %3488 = vmatprep.subr.mxu1 %v3358_v24  ;;  %v3599_v24 = vld [vmem:[%s8186_s8 + $0xb0] sm:$0xff] }
 0xd6a   :  { %3489 = vmatpush1.msra.mxu1 %v3357_v25  ;;  %v3583_v25 = vld [vmem:[%s8186_s8 + $0x30] sm:$0xff] }
 0xd6b   :  { %3490 = vmatprep.subr.mxu1 %v3356_v26  ;;  %v3598_v26 = vld [vmem:[%s8186_s8 + $0xa8] sm:$0xff] }
 0xd6c   :  { %3491 = vmatpush1.msra.mxu1 %v3355_v27  ;;  %v3582_v27 = vld [vmem:[%s8186_s8 + $0x28] sm:$0xff] }
 0xd6d   :  { %3492 = vmatprep.subr.mxu1 %v3354_v28  ;;  %v3597_v28 = vld [vmem:[%s8186_s8 + $0xa0] sm:$0xff] }
 0xd6e   :  { %3493 = vmatpush1.msra.mxu1 %v3353_v31  ;;  %v3596_v31 = vld [vmem:[%s8186_s8 + $0x98] sm:$0xff] }
 0xd6f   :  { %3494 = vmatprep.subr.mxu1 %v3352_v33  ;;  %v3595_v33 = vld [vmem:[%s8186_s8 + $0x90] sm:$0xff] }
 0xd70   :  { %3495 = vmatpush1.msra.mxu1 %v3351_v35  ;;  %v3594_v35 = vld [vmem:[%s8186_s8 + $0x88] sm:$0xff] }
 0xd71   :  { %3496 = vmatprep.subr.mxu1 %v3350_v37  ;;  %v3593_v37 = vld [vmem:[%s8186_s8 + $0x80] sm:$0xff] }
 0xd72   :  { %3497 = vmatpush1.msra.mxu1 %v3349_v39  ;;  %v3711_v39 = vld [vmem:[%s8189_s11 + $0x78] sm:$0xff] }
 0xd73   :  { %3498 = vmatprep.subr.mxu1 %v3348_v41  ;;  %v3709_v41 = vld [vmem:[%s8189_s11 + $0x68] sm:$0xff] }
 0xd74   :  { %3499 = vmatpush1.msra.mxu1 %v3347_v44  ;;  %v3707_v44 = vld [vmem:[%s8189_s11 + $0x58] sm:$0xff] }
 0xd75   :  { %3500 = vmatprep.subr.mxu1 %v3346_v47  ;;  %v3705_v47 = vld [vmem:[%s8189_s11 + $0x48] sm:$0xff] }
 0xd76   :  { %3501 = vmatpush1.msra.mxu1 %v3345_v48  ;;  %v3703_v48 = vld [vmem:[%s8189_s11 + $0x38] sm:$0xff] }
 0xd77   :  { %3502 = vmatprep.subr.mxu1 %v3344_v51  ;;  %v3551_v51 = vsub.s32 0, %v6079_v29 }
 0xd78   :  { %3503 = vmatpush1.msra.mxu1 %v3343_v11  ;;  %v3555_v11 = vsub.s32 1, %v6079_v29 }
 0xd79   :  { %3504 = vmatprep.subr.mxu1 %v3342_v52  ;;  %v3552_v45 = vrot.slane %v3547_v43, %v3551_v51  ;;  %v3561_v52 = vld [vmem:[%s8185_s7] sm:$0x3] }
 0xd7a   :  { %3505 = vmatpush1.msra.mxu1 %v3341_v54  ;;  %v3566_v57 = vrot.slane %v3561_v52, %v3551_v51 }
 0xd7b   :  { %3506 = vmatprep.subr.mxu1 %v3340_v56  ;;  %v3556_v56 = vrot.slane %v3547_v43, %v3555_v11 }
 0xd7c   :  { %3507 = vmatpush1.msra.mxu1 %v3339_v58 }
 0xd7d   :  { %5556 = vmatprep.subr.mxu1 %v5616_v5 }
 0xe1d   :  { %v3315_v61 = vpop.f32.mrf.mxu1 }
 0xe1e   :  { %v3326_v63 = vmul.f32 %v4358_v60, %v3315_v61 }
 0xe1f   :  { %v5555_v0 = vpop.f32.mrf.mxu1 }
 0xe20   :  { %v3334_v1 = vadd.f32 %v4360_v62, %v3326_v63  ;;  %v3570_v62 = vrot.slane %v3561_v52, %v3555_v11 }
 0xe22   :  { %v3335_v2 = vmax.f32 %v3334_v1, 0.0 }
 0xe24   :  { %3336 = vst [vmem:[#allocation3 + $0x1] sm:$0x1] %v3335_v2  ;;  %3337 = vst [vmem:[#allocation3 + $0x2] sm:$0x2] %v3335_v2 }
 0xe2b   :  { %v3371_v4 = vld [vmem:[#allocation3 + $0x2] sm:$0x3]  ;;  %v3338_v6 = vld [vmem:[#allocation3] sm:$0x3] }
 0xe2c   :  { %3470 = vmatmul.mubr.f32.vlgmr.msra.gmra.mxu0 %v3371_v4  ;;  %3541 = vmatmul.mubr.f32.vlgmr.msra.gmra.mxu1 %v3338_v6  ;;  %v3700_v4 = vld [vmem:[%s8189_s11 + $0x20] sm:$0xff]  ;;  %v3699_v6 = vld [vmem:[%s8189_s11 + $0x18] sm:$0xff] }
 0xe2d   :  { %5051 = vmatpush3.msra.mxu0 %v3592_v3  ;;  %5588 = vmatprep.mubr.msk.f32.mxu1 %vm5617_vm2, %v5616_v5  ;;  %v3701_v3 = vld [vmem:[%s8189_s11 + $0x28] sm:$0xff] }
 0xe2e   :  { %5052 = vmatprep.subr.mxu0 %v3607_v8  ;;  %5557 = vmatpush3.msra.mxu1 %v3711_v39  ;;  %v3698_v8 = vld [vmem:[%s8189_s11 + $0x10] sm:$0xff] }
 0xe2f   :  { %5053 = vmatpush3.msra.mxu0 %v3591_v9  ;;  %5558 = vmatprep.subr.mxu1 %v5616_v5  ;;  %v3697_v9 = vld [vmem:[%s8189_s11 + $0x8] sm:$0xff] }
 0xe30   :  { %5054 = vmatprep.subr.mxu0 %v3606_v10  ;;  %5559 = vmatpush3.msra.mxu1 %v3710_v40  ;;  %v3696_v10 = vld [vmem:[%s8189_s11] sm:$0xff]  ;;  %s5618_s11 = smov [#allocation4]  }
 0xe31   :  { %5055 = vmatpush3.msra.mxu0 %v3590_v12  ;;  %5560 = vmatprep.subr.mxu1 %v5616_v5  ;;  %s3796_s28 = sshll.u32 %s5618_s11, 4  ;;  %s3797_s28 = int_to_ptr.vmem [resolvable:$true] %s3796_s28 }
 0xe32   :  { %5056 = vmatprep.subr.mxu0 %v3605_v13  ;;  %5561 = vmatpush3.msra.mxu1 %v3709_v41  ;;  %p5599_p1 = scmp.lt.s32.totalorder %s3797_s28, %s3797_s28 }
 0xe33   :  { %5057 = vmatpush3.msra.mxu0 %v3589_v14  ;;  %5562 = vmatprep.subr.mxu1 %v5616_v5  ;;  %v4393_v14 = vld [vmem:[%s8187_s9] ss:$0 sm:$0xff]  ;;  %s5594_s9 = scalar_lea.vmem %s3797_s28, 32 }
 0xe34   :  { %5058 = vmatprep.subr.mxu0 %v3604_v15  ;;  %5563 = vmatpush3.msra.mxu1 %v3708_v42  ;;  %p5595_p0 = scmp.ne.s32.totalorder %s3797_s28, %s5594_s9  ;;  %p5600_p2 = scmp.lt.s32.totalorder %s5594_s9, %s5594_s9 }
 0xe35   :  { %5059 = vmatpush3.msra.mxu0 %v3588_v16  ;;  %5564 = vmatprep.subr.mxu1 %v5616_v5  ;;  %v4394_v16 = vld [vmem:[%s8188_s10] ss:$0 sm:$0xff] }
 0xe36   :  { %5060 = vmatprep.subr.mxu0 %v3603_v17  ;;  %5565 = vmatpush3.msra.mxu1 %v3707_v44  ;;  %p5601_p3 = por %p5600_p2, %p5599_p1 }
 0xe37   :  { %5061 = vmatpush3.msra.mxu0 %v3587_v18  ;;  %5566 = vmatprep.subr.mxu1 %v5616_v5 }
 0xe38   :  { %5062 = vmatprep.subr.mxu0 %v3602_v49  ;;  %5567 = vmatpush3.msra.mxu1 %v3706_v46  ;;  %p5602_p4 = pnand %p5601_p3, %p5595_p0 }
 0xe39   :  { %5063 = vmatpush3.msra.mxu0 %v3586_v19  ;;  %5568 = vmatprep.subr.mxu1 %v5616_v5 }
 0xe3a   :  { %5064 = vmatprep.subr.mxu0 %v3601_v20  ;;  %5569 = vmatpush3.msra.mxu1 %v3705_v47 }
 0xe3b   :  { %5065 = vmatpush3.msra.mxu0 %v3585_v21  ;;  %5570 = vmatprep.subr.mxu1 %v5616_v5 }
 0xe3c   :  { %5066 = vmatprep.subr.mxu0 %v3600_v22  ;;  %5571 = vmatpush3.msra.mxu1 %v3704_v7 }
 0xe3d   :  { %5067 = vmatpush3.msra.mxu0 %v3584_v23  ;;  %5572 = vmatprep.subr.mxu1 %v5616_v5 }
 0xe3e   :  { %5068 = vmatprep.subr.mxu0 %v3599_v24  ;;  %5573 = vmatpush3.msra.mxu1 %v3703_v48 }
 0xe3f   :  { %5069 = vmatpush3.msra.mxu0 %v3583_v25  ;;  %5574 = vmatprep.subr.mxu1 %v5616_v5 }
 0xe40   :  { %5070 = vmatprep.subr.mxu0 %v3598_v26  ;;  %5575 = vmatpush3.msra.mxu1 %v3702_v50 }
 0xe41   :  { %5071 = vmatpush3.msra.mxu0 %v3582_v27  ;;  %5576 = vmatprep.subr.mxu1 %v5616_v5 }
 0xe42   :  { %5072 = vmatprep.subr.mxu0 %v3597_v28  ;;  %5577 = vmatpush3.msra.mxu1 %v3701_v3 }
 0xe43   :  { %5073 = vmatpush3.msra.mxu0 %v3581_v30  ;;  %5578 = vmatprep.subr.mxu1 %v5616_v5 }
 0xe44   :  { %5074 = vmatprep.subr.mxu0 %v3596_v31  ;;  %5579 = vmatpush3.msra.mxu1 %v3700_v4 }
 0xe45   :  { %5075 = vmatpush3.msra.mxu0 %v3580_v32  ;;  %5580 = vmatprep.subr.mxu1 %v5616_v5 }
 0xe46   :  { %5076 = vmatprep.subr.mxu0 %v3595_v33  ;;  %5581 = vmatpush3.msra.mxu1 %v3699_v6 }
 0xe47   :  { %5077 = vmatpush3.msra.mxu0 %v3579_v34  ;;  %5582 = vmatprep.subr.mxu1 %v5616_v5 }
 0xe48   :  { %5078 = vmatprep.subr.mxu0 %v3594_v35  ;;  %5583 = vmatpush3.msra.mxu1 %v3698_v8 }
 0xe49   :  { %5079 = vmatpush3.msra.mxu0 %v3578_v36  ;;  %5584 = vmatprep.subr.mxu1 %v5616_v5 }
 0xe4a   :  { %5080 = vmatprep.subr.mxu0 %v3593_v37  ;;  %5585 = vmatpush3.msra.mxu1 %v3697_v9 }
 0xe4b   :  { %5081 = vmatpush3.msra.mxu0 %v3577_v38  ;;  %5586 = vmatprep.subr.mxu1 %v5616_v5  ;;  %v4395_v5 = vld [vmem:[%s8190_s12] ss:$0 sm:$0xff] }
 0xe4c   :  { %5587 = vmatpush3.msra.mxu1 %v3696_v10 }
 0xeec   :  { %v3471_v53 = vpop.f32.mrf.mxu0  ;;  %v3542_v54 = vpop.f32.mrf.mxu1 }
 0xeed   :  { %v3543_v55 = vadd.f32 %v3542_v54, %v3471_v53 }
 0xeee   :  { %v3473_v58 = vpop.f32.mrf.mxu0  ;;  %v3544_v59 = vpop.f32.mrf.mxu1 }
 0xeef   :  { %v3559_v60 = vmul.f32 %v3552_v45, %v3543_v55  ;;  %v3545_v61 = vadd.f32 %v3544_v59, %v3473_v58 }
 0xef1   :  { %v3560_v63 = vmul.f32 %v3556_v56, %v3545_v61  ;;  %v3573_v0 = vadd.f32 %v3566_v57, %v3559_v60 }
 0xef3   :  { %v3574_v1 = vadd.f32 %v3570_v62, %v3560_v63  ;;  %v3575_v29 = vmax.f32 %v3573_v0, 0.0 }
 0xef5   :  { %v3576_v2 = vmax.f32 %v3574_v1, 0.0 }
 0xef7   :  { %3673 = vmatprep.mubr.f32.mxu0 %v3576_v2 }
 0xef8   :  { %3674 = vmatmul.mubr.f32.vlgmr.msra.gmra.mxu0 %v3575_v29 }
 0xfb8   :  { %v5082_v12 = vpop.f32.mrf.mxu0 }
 0xfba   :  { %v5083_v13 = vpop.f32.mrf.mxu0 }
 0xfbb   :  { %v5084_v15 = vadd.f32 %v5083_v13, %v5082_v12 }
 0xfbd   :  { %v3686_v17 = vmul.f32 %v5084_v15, %v4393_v14 }
 0xfbf   :  { %v3694_v18 = vadd.f32 %v4394_v16, %v3686_v17 }
 0xfc1   :  { %v3695_v49 = vmax.f32 %v3694_v18, 0.0 }
 0xfc3   :  { %5589 = vmatmul.mubr.f32.vlgmr.msra.gmra.mxu1 %v3695_v49 }
0x1083   :  { %v3785_v19 = vpop.f32.mrf.mxu1 }
0x1084   :  { %v3786_v20 = vadd.f32 %v4395_v5, %v3785_v19 }
0x1085   :  { %v5590_v21 = vpop.f32.mrf.mxu1 }
0x1086   :  { %3789 = vst [vmem:[#allocation4] sm:$0x3] %v3786_v20 }
0x1087   :  { %5605 = shalt.err (!%p5602_p4)
}
0x1088   :  { %3799 = dma.vmem_to_hbm [thread:$0]  %s3797_s28, 32, %s8191_s13, [#allocation5]  }
0x1089   :  { %5614 = dma.done.wait [#allocation5], 32  }
0x108a   :  { %5615 = vsyncadd [#allocation5], 4294967264 }
0x108b   :  { %3803 = vsyncpa [#allocation5], 1 }

</bundles_post_ra>
